<compile_context>
chip_gen: v6e
topology: v6e:2x2x1
jax: 0.10.0
libtpu: 0.0.40
codegen_flags: <defaults>
</compile_context>

<pallas_src>
import functools

import jax
import jax.numpy as jnp
from jax.experimental import pallas as pl
from jax.experimental.pallas import tpu as pltpu

K_WAVELET = 126               # number of wavelet coefficients (real or imag)
N_CLS = 4                     # [tr_logit0, tr_logit1, tcl_logit0, tcl_logit1]
N_GT = 3 + 2 * K_WAVELET      # [tr_mask, tcl_mask, train_mask, real(126), imag(126)]
DEFAULT_TILE_PIXELS = 512     # multiple of 128


def _wl_loss_kernel(cls_ref, reg_ref, gt_ref, w_ref, neg_ref, acc_ref, acc_sc,
                    *, hw, tp, needs_mask):
    """Channel-major per-tile losses + partial-sum accumulation.

    Ref shapes (per grid step = one batch element x one pixel tile):
      cls_ref : (4,   tp)  classification logits (channels on sublanes)
      reg_ref : (252, tp)  predicted [real | imag] wavelet coefficients
      gt_ref  : (255, tp)  [tr_mask, tcl_mask, train_mask, real(126), imag(126)]
      w_ref   : (8,   252) row0 = real weights, row1 = imag weights, rest 0
      neg_ref : (1,   tp)  per-pixel OHEM negative CE loss (lane-dense output)
      acc_ref : (8,   1)   per-batch scalar reductions (written in epilogue)
      acc_sc  : (8,   tp)  VMEM scratch: lane-dense running partial sums
    """
    i = pl.program_id(1)

    @pl.when(i == 0)
    def _():
        acc_sc[...] = jnp.zeros((8, tp), dtype=acc_sc.dtype)

    f32 = jnp.float32
    if needs_mask:
        # Ragged last tile: mask out-of-range pixels (their VMEM contents are
        # undefined) so no garbage/NaN reaches the accumulators.
        lane = jax.lax.broadcasted_iota(jnp.int32, (1, tp), 1)
        valid = (i * tp + lane) < hw

        def guard(x):
            return jnp.where(valid, x, 0.0)
    else:
        def guard(x):
            return x

    # ---- classification logits (one sublane row per channel) ----
    l0 = cls_ref[0:1, :].astype(f32)
    l1 = cls_ref[1:2, :].astype(f32)
    t0 = cls_ref[2:3, :].astype(f32)
    t1 = cls_ref[3:4, :].astype(f32)

    tr_mask = guard(gt_ref[0:1, :].astype(f32))
    tcl_mask = gt_ref[1:2, :].astype(f32)           # only used as CE target
    train_mask = guard(gt_ref[2:3, :].astype(f32))

    def ce2(a, b, tgt):
        # 2-class cross entropy with a {0,1} target; single exp, no cross-lane
        # reduction:  lse(a, b) = max(a, b) + log(1 + exp(-|a - b|)).
        lse = jnp.maximum(a, b) + jnp.log(1.0 + jnp.exp(-jnp.abs(a - b)))
        sel = a * (1.0 - tgt) + b * tgt
        return guard(lse - sel)

    ce_tr = ce2(l0, l1, tr_mask)                     # (1, tp)
    ce_tcl = ce2(t0, t1, tcl_mask)                   # (1, tp)

    pos = tr_mask * train_mask                       # tr_train_mask (OHEM pos)
    neg = (1.0 - tr_mask) * train_mask               # OHEM negatives
    neg_ce = ce_tr * neg

    # per-pixel negative CE for the OHEM top-k performed outside the kernel
    neg_ref[...] = neg_ce

    # ---- weighted smooth-L1 over the 2*126 wavelet channels (beta = 1.0) ----
    # real/imag split + per-channel weight + channel reduction are fused into
    # one MXU matvec with the (8, 252) weight matrix.
    d = reg_ref[...].astype(f32) - gt_ref[3:N_GT, :].astype(f32)   # (252, tp)
    ad = jnp.abs(d)
    sl1 = jnp.where(ad < 1.0, 0.5 * d * d, ad - 0.5)
    wq = jnp.dot(w_ref[...].astype(f32), sl1,
                 preferred_element_type=jnp.float32)               # (8, tp)
    wr = guard(wq[0:1, :]) * pos                                   # weighted real
    wi = guard(wq[1:2, :]) * pos                                   # weighted imag

    # ---- lane-dense partial sums; cross-lane reduce deferred to epilogue ----
    acc_sc[0:1, :] += ce_tr * pos            # OHEM positive CE sum
    acc_sc[1:2, :] += pos                    # n_pos
    acc_sc[2:3, :] += neg                    # n_neg_total
    acc_sc[3:4, :] += ce_tcl * pos           # tcl positive CE sum
    acc_sc[4:5, :] += ce_tcl * (1.0 - pos)   # tcl negative CE sum (1 - tr_train_mask)
    acc_sc[5:6, :] += wr                     # weighted smooth-L1 real sum
    acc_sc[6:7, :] += wi                     # weighted smooth-L1 imag sum
    acc_sc[7:8, :] += neg_ce                 # total negative CE sum (OHEM shortcut)

    @pl.when(i == pl.num_programs(1) - 1)
    def _():
        acc_ref[...] = jnp.sum(acc_sc[...], axis=1, keepdims=True)   # (8, 1)


@functools.partial(jax.jit, static_argnames=("tile_pixels",))
def _forward_single(cls_pred, reg_pred, gt, weight2, ohem_ratio, *,
                    tile_pixels=DEFAULT_TILE_PIXELS):
    """One pyramid level: cls (N,4,H,W), reg (N,252,H,W), gt (N,255,H,W)."""
    n, cc, h, wd = cls_pred.shape
    hw = h * wd
    p = n * hw

    # Free reshapes only (no transpose / slice / cast): stay channel-major.
    cls2 = cls_pred.reshape(n, cc, hw)
    reg2 = reg_pred.reshape(n, 2 * K_WAVELET, hw)
    gt2 = gt.reshape(n, N_GT, hw)

    assert tile_pixels % 128 == 0
    tp = hw if hw <= tile_pixels else tile_pixels
    num_tiles = pl.cdiv(hw, tp)
    needs_mask = (num_tiles * tp != hw)

    kernel = functools.partial(_wl_loss_kernel, hw=hw, tp=tp,
                               needs_mask=needs_mask)

    neg_out, acc = pl.pallas_call(
        kernel,
        out_shape=(
            jax.ShapeDtypeStruct((n, 1, hw), jnp.float32),  # per-pixel OHEM neg CE
            jax.ShapeDtypeStruct((n, 8, 1), jnp.float32),   # per-batch reductions
        ),
        grid_spec=pltpu.PrefetchScalarGridSpec(
            num_scalar_prefetch=0,
            grid=(n, num_tiles),
            in_specs=[
                pl.BlockSpec((None, cc, tp), lambda b, i: (b, 0, i)),
                pl.BlockSpec((None, 2 * K_WAVELET, tp), lambda b, i: (b, 0, i)),
                pl.BlockSpec((None, N_GT, tp), lambda b, i: (b, 0, i)),
                pl.BlockSpec((8, 2 * K_WAVELET), lambda b, i: (0, 0)),
            ],
            out_specs=[
                pl.BlockSpec((None, 1, tp), lambda b, i: (b, 0, i)),
                pl.BlockSpec((None, 8, 1), lambda b, i: (b, 0, 0)),
            ],
            scratch_shapes=[pltpu.VMEM((8, tp), jnp.float32)],
        ),
        compiler_params=pltpu.CompilerParams(
            dimension_semantics=("parallel", "arbitrary")),
    )(cls2, reg2, gt2, weight2)

    s = jnp.sum(acc[:, :, 0], axis=0)                # (8,) summed over batch
    loss_pos_sum = s[0]
    n_pos = s[1]
    n_neg_total = s[2]
    tcl_pos_sum = s[3]
    tcl_neg_sum = s[4]
    real_sum = s[5]
    imag_sum = s[6]
    total_neg_sum = s[7]

    # ---- OHEM (loss_tr) ----
    has_pos = n_pos > 0
    n_neg = jnp.where(has_pos,
                      jnp.minimum(n_neg_total, jnp.floor(ohem_ratio * n_pos)),
                      jnp.float32(100.0))
    take_f = jnp.where(has_pos, n_neg, jnp.minimum(100.0, n_neg_total))
    take = take_f.astype(jnp.int32)

    neg_losses = neg_out.reshape(p)                  # 0 where not an OHEM negative

    def _sum_all_negatives():
        return total_neg_sum

    def _sum_topk_negatives():
        # TODO(synk): a statically-capped jax.lax.top_k (or threshold two-pass)
        # could replace the full sort when ohem_ratio * n_pos can be bounded.
        sorted_desc = jnp.sort(neg_losses)[::-1]
        csum = jnp.cumsum(sorted_desc)
        idx = jnp.clip(take - 1, 0, p - 1)
        return jnp.where(take > 0, csum[idx], jnp.float32(0.0))

    neg_sum = jax.lax.cond(take_f >= n_neg_total,
                           _sum_all_negatives, _sum_topk_negatives)
    loss_tr = (loss_pos_sum + neg_sum) / (n_pos + n_neg)

    # ---- loss_tcl ----
    n_neg_tcl = jnp.float32(p) - n_pos
    loss_tcl = jnp.where(
        has_pos,
        tcl_pos_sum / jnp.maximum(n_pos, 1.0)
        + 0.5 * tcl_neg_sum / jnp.maximum(n_neg_tcl, 1.0),
        0.0)

    # ---- loss_real / loss_imag ----
    denom = jnp.maximum(n_pos, 1.0) * jnp.float32(K_WAVELET)
    loss_real = jnp.where(has_pos, real_sum / denom, 0.0)
    loss_imag = jnp.where(has_pos, imag_sum / denom, 0.0)

    return loss_tr, loss_tcl, loss_real, loss_imag


class WLLossDiffWeightPallas:
    """JAX/Pallas re-implementation of WLLoss_diff_weight.forward."""

    def __init__(self, wavelet_type='sym5', ohem_ratio=3.0,
                 tile_pixels=DEFAULT_TILE_PIXELS):
        self.wavelet_type = wavelet_type
        self.ohem_ratio = ohem_ratio
        self.tile_pixels = tile_pixels
        # Deterministic "parameter" exactly as in the module __init__
        w = jnp.concatenate([
            jnp.ones((20,), jnp.float32),
            0.5 * jnp.ones((20,), jnp.float32),
            0.25 * jnp.ones((31,), jnp.float32),
            0.125 * jnp.ones((54,), jnp.float32),
            jnp.ones((1,), jnp.float32),
        ])
        self.weight = w                                    # (126,)
        # (8, 252) block-diagonal form: row 0 weights the real half, row 1 the
        # imag half (rows 2..7 are zero padding for MXU-friendly sublane size);
        # lets the kernel fuse weighting + channel reduction into one matvec.
        w2 = jnp.zeros((8, 2 * K_WAVELET), jnp.float32)
        w2 = w2.at[0, :K_WAVELET].set(w)
        w2 = w2.at[1, K_WAVELET:].set(w)
        self.weight2 = w2

    def __call__(self, preds, p3_maps, p4_maps, p5_maps):
        # TODO(synk): the three pyramid levels run as three pallas_calls; fusing
        # them would require a pixel-axis concat (an extra HBM pass) because the
        # levels have different spatial shapes.
        gts = [p3_maps, p4_maps, p5_maps]
        loss_tr = jnp.float32(0.0)
        loss_tcl = jnp.float32(0.0)
        loss_real = jnp.float32(0.0)
        loss_imag = jnp.float32(0.0)
        for (cls_p, reg_p), gt in zip(preds, gts):
            ltr, ltcl, lre, lim = _forward_single(
                cls_p, reg_p, gt, self.weight2, self.ohem_ratio,
                tile_pixels=self.tile_pixels)
            loss_tr = loss_tr + ltr
            loss_tcl = loss_tcl + ltcl
            loss_real = loss_real + lre
            loss_imag = loss_imag + lim
        return dict(loss_text=loss_tr, loss_center=loss_tcl,
                    loss_real=loss_real, loss_imag=loss_imag)


if __name__ == "__main__":
    key = jax.random.PRNGKey(0)
    N = 2
    k = K_WAVELET
    level_hw = [(32, 32), (16, 16), (8, 8)]   # p3 / p4 / p5

    preds = []
    gts = []
    for (H, W) in level_hw:
        key, k1, k2, k3, k4, k5, k6, k7 = jax.random.split(key, 8)
        cls = jax.random.normal(k1, (N, 4, H, W), jnp.float32)
        reg = 0.5 * jax.random.normal(k2, (N, 2 * k, H, W), jnp.float32)
        tr_m = jax.random.bernoulli(k3, 0.3, (N, 1, H, W)).astype(jnp.float32)
        tcl_m = jax.random.bernoulli(k4, 0.3, (N, 1, H, W)).astype(jnp.float32)
        train_m = jax.random.bernoulli(k5, 0.8, (N, 1, H, W)).astype(jnp.float32)
        real_map = jax.random.normal(k6, (N, k, H, W), jnp.float32)
        imag_map = jax.random.normal(k7, (N, k, H, W), jnp.float32)
        gt = jnp.concatenate([tr_m, tcl_m, train_m, real_map, imag_map], axis=1)
        preds.append([cls, reg])
        gts.append(gt)

    loss_mod = WLLossDiffWeightPallas(wavelet_type='sym5', ohem_ratio=3.0)
    out = loss_mod(preds, gts[0], gts[1], gts[2])
    out = jax.block_until_ready(out)
    assert all(bool(jnp.isfinite(v)) for v in out.values())
    print("KERNEL_OK")
</pallas_src>

<mosaic_0001>
module attributes {stable_mosaic.version = 11 : i64} {
  func.func @_wl_loss_kernel(%arg0: i32, %arg1: i32, %arg2: memref<1x4x512xf32, #tpu.memory_space<vmem>>, %arg3: memref<1x252x512xf32, #tpu.memory_space<vmem>>, %arg4: memref<1x255x512xf32, #tpu.memory_space<vmem>>, %arg5: memref<8x252xf32, #tpu.memory_space<vmem>>, %arg6: memref<1x1x512xf32, #tpu.memory_space<vmem>>, %arg7: memref<1x8x1xf32, #tpu.memory_space<vmem>>, %arg8: memref<8x512xf32, #tpu.memory_space<vmem>>) attributes {dimension_semantics = [#tpu.dimension_semantics<parallel>, #tpu.dimension_semantics<arbitrary>], iteration_bounds = array<i64: 2, 2>, scalar_prefetch = 0 : i64, scratch_operands = 1 : i64, tpu.core_type = #tpu.core_type<tc>, window_params = [{transform_indices = @transform_0, window_bounds = array<i64: 1, 4, 512>}, {transform_indices = @transform_1, window_bounds = array<i64: 1, 252, 512>}, {transform_indices = @transform_2, window_bounds = array<i64: 1, 255, 512>}, {pipeline_mode = #tpu.pipeline_mode<synchronous>, transform_indices = @transform_3, window_bounds = array<i64: 8, 252>}, {transform_indices = @transform_4, window_bounds = array<i64: 1, 1, 512>}, {transform_indices = @transform_5, window_bounds = array<i64: 1, 8, 1>}]} {
    %c0_i32 = arith.constant 0 : i32
    %0 = arith.cmpi eq, %arg1, %c0_i32 : i32
    %1 = arith.extui %0 : i1 to i32
    %c0_i32_0 = arith.constant 0 : i32
    %2 = arith.cmpi ne, %1, %c0_i32_0 : i32
    scf.if %2 {
      %cst_69 = arith.constant 0.000000e+00 : f32
      %109 = vector.broadcast %cst_69 : f32 to vector<8x512xf32>
      %c0_70 = arith.constant 0 : index
      %c0_71 = arith.constant 0 : index
      %110 = vector.load %arg8[%c0_70, %c0_71] : memref<8x512xf32, #tpu.memory_space<vmem>>, vector<8x512xf32>
      tpu.vector_store %arg8[%c0_70, %c0_71], %109 {strides = array<i32>} : memref<8x512xf32, #tpu.memory_space<vmem>>, vector<8x512xf32>,
    } else {
    }
    %c0 = arith.constant 0 : index
    %c0_1 = arith.constant 0 : index
    %c0_2 = arith.constant 0 : index
    %3 = vector.load %arg2[%c0, %c0_1, %c0_2] : memref<1x4x512xf32, #tpu.memory_space<vmem>>, vector<1x1x512xf32>
    %4 = vector.shape_cast %3 : vector<1x1x512xf32> to vector<1x512xf32>
    %c0_3 = arith.constant 0 : index
    %c1 = arith.constant 1 : index
    %c0_4 = arith.constant 0 : index
    %5 = vector.load %arg2[%c0_3, %c1, %c0_4] : memref<1x4x512xf32, #tpu.memory_space<vmem>>, vector<1x1x512xf32>
    %6 = vector.shape_cast %5 : vector<1x1x512xf32> to vector<1x512xf32>
    %c0_5 = arith.constant 0 : index
    %c2 = arith.constant 2 : index
    %c0_6 = arith.constant 0 : index
    %7 = vector.load %arg2[%c0_5, %c2, %c0_6] : memref<1x4x512xf32, #tpu.memory_space<vmem>>, vector<1x1x512xf32>
    %8 = vector.shape_cast %7 : vector<1x1x512xf32> to vector<1x512xf32>
    %c0_7 = arith.constant 0 : index
    %c3 = arith.constant 3 : index
    %c0_8 = arith.constant 0 : index
    %9 = vector.load %arg2[%c0_7, %c3, %c0_8] : memref<1x4x512xf32, #tpu.memory_space<vmem>>, vector<1x1x512xf32>
    %10 = vector.shape_cast %9 : vector<1x1x512xf32> to vector<1x512xf32>
    %c0_9 = arith.constant 0 : index
    %c0_10 = arith.constant 0 : index
    %c0_11 = arith.constant 0 : index
    %11 = vector.load %arg4[%c0_9, %c0_10, %c0_11] : memref<1x255x512xf32, #tpu.memory_space<vmem>>, vector<1x1x512xf32>
    %12 = vector.shape_cast %11 : vector<1x1x512xf32> to vector<1x512xf32>
    %c0_12 = arith.constant 0 : index
    %c1_13 = arith.constant 1 : index
    %c0_14 = arith.constant 0 : index
    %13 = vector.load %arg4[%c0_12, %c1_13, %c0_14] : memref<1x255x512xf32, #tpu.memory_space<vmem>>, vector<1x1x512xf32>
    %14 = vector.shape_cast %13 : vector<1x1x512xf32> to vector<1x512xf32>
    %c0_15 = arith.constant 0 : index
    %c2_16 = arith.constant 2 : index
    %c0_17 = arith.constant 0 : index
    %15 = vector.load %arg4[%c0_15, %c2_16, %c0_17] : memref<1x255x512xf32, #tpu.memory_space<vmem>>, vector<1x1x512xf32>
    %16 = vector.shape_cast %15 : vector<1x1x512xf32> to vector<1x512xf32>
    %17 = arith.maximumf %4, %6 : vector<1x512xf32>
    %18 = arith.subf %4, %6 : vector<1x512xf32>
    %19 = math.absf %18 : vector<1x512xf32>
    %cst = arith.constant 0.000000e+00 : f32
    %20 = vector.broadcast %cst : f32 to vector<1x512xf32>
    %21 = arith.subf %20, %19 : vector<1x512xf32>
    %22 = math.exp %21 : vector<1x512xf32>
    %cst_18 = arith.constant 1.000000e+00 : f32
    %23 = vector.broadcast %cst_18 : f32 to vector<1x512xf32>
    %24 = arith.addf %23, %22 : vector<1x512xf32>
    %25 = math.log %24 : vector<1x512xf32>
    %26 = arith.addf %17, %25 : vector<1x512xf32>
    %cst_19 = arith.constant 1.000000e+00 : f32
    %27 = vector.broadcast %cst_19 : f32 to vector<1x512xf32>
    %28 = arith.subf %27, %12 : vector<1x512xf32>
    %29 = arith.mulf %4, %28 : vector<1x512xf32>
    %30 = arith.mulf %6, %12 : vector<1x512xf32>
    %31 = arith.addf %29, %30 : vector<1x512xf32>
    %32 = arith.subf %26, %31 : vector<1x512xf32>
    %33 = arith.maximumf %8, %10 : vector<1x512xf32>
    %34 = arith.subf %8, %10 : vector<1x512xf32>
    %35 = math.absf %34 : vector<1x512xf32>
    %cst_20 = arith.constant 0.000000e+00 : f32
    %36 = vector.broadcast %cst_20 : f32 to vector<1x512xf32>
    %37 = arith.subf %36, %35 : vector<1x512xf32>
    %38 = math.exp %37 : vector<1x512xf32>
    %cst_21 = arith.constant 1.000000e+00 : f32
    %39 = vector.broadcast %cst_21 : f32 to vector<1x512xf32>
    %40 = arith.addf %39, %38 : vector<1x512xf32>
    %41 = math.log %40 : vector<1x512xf32>
    %42 = arith.addf %33, %41 : vector<1x512xf32>
    %cst_22 = arith.constant 1.000000e+00 : f32
    %43 = vector.broadcast %cst_22 : f32 to vector<1x512xf32>
    %44 = arith.subf %43, %14 : vector<1x512xf32>
    %45 = arith.mulf %8, %44 : vector<1x512xf32>
    %46 = arith.mulf %10, %14 : vector<1x512xf32>
    %47 = arith.addf %45, %46 : vector<1x512xf32>
    %48 = arith.subf %42, %47 : vector<1x512xf32>
    %49 = arith.mulf %12, %16 : vector<1x512xf32>
    %cst_23 = arith.constant 1.000000e+00 : f32
    %50 = vector.broadcast %cst_23 : f32 to vector<1x512xf32>
    %51 = arith.subf %50, %12 : vector<1x512xf32>
    %52 = arith.mulf %51, %16 : vector<1x512xf32>
    %53 = arith.mulf %32, %52 : vector<1x512xf32>
    %c0_24 = arith.constant 0 : index
    %c0_25 = arith.constant 0 : index
    %c0_26 = arith.constant 0 : index
    %54 = vector.load %arg6[%c0_24, %c0_25, %c0_26] : memref<1x1x512xf32, #tpu.memory_space<vmem>>, vector<1x1x512xf32>
    %55 = vector.shape_cast %54 : vector<1x1x512xf32> to vector<1x512xf32>
    %56 = vector.shape_cast %53 : vector<1x512xf32> to vector<1x1x512xf32>
    tpu.vector_store %arg6[%c0_24, %c0_25, %c0_26], %56 {strides = array<i32>} : memref<1x1x512xf32, #tpu.memory_space<vmem>>, vector<1x1x512xf32>,
    %c0_27 = arith.constant 0 : index
    %c0_28 = arith.constant 0 : index
    %c0_29 = arith.constant 0 : index
    %57 = vector.load %arg3[%c0_27, %c0_28, %c0_29] : memref<1x252x512xf32, #tpu.memory_space<vmem>>, vector<1x252x512xf32>
    %58 = vector.shape_cast %57 : vector<1x252x512xf32> to vector<252x512xf32>
    %c0_30 = arith.constant 0 : index
    %c3_31 = arith.constant 3 : index
    %c0_32 = arith.constant 0 : index
    %59 = vector.load %arg4[%c0_30, %c3_31, %c0_32] : memref<1x255x512xf32, #tpu.memory_space<vmem>>, vector<1x252x512xf32>
    %60 = vector.shape_cast %59 : vector<1x252x512xf32> to vector<252x512xf32>
    %61 = arith.subf %58, %60 : vector<252x512xf32>
    %62 = math.absf %61 : vector<252x512xf32>
    %cst_33 = arith.constant 1.000000e+00 : f32
    %63 = vector.broadcast %cst_33 : f32 to vector<252x512xf32>
    %64 = arith.cmpf olt, %62, %63 : vector<252x512xf32>
    %cst_34 = arith.constant 5.000000e-01 : f32
    %65 = vector.broadcast %cst_34 : f32 to vector<252x512xf32>
    %66 = arith.mulf %65, %61 : vector<252x512xf32>
    %67 = arith.mulf %66, %61 : vector<252x512xf32>
    %cst_35 = arith.constant 5.000000e-01 : f32
    %68 = vector.broadcast %cst_35 : f32 to vector<252x512xf32>
    %69 = arith.subf %62, %68 : vector<252x512xf32>
    %70 = arith.select %64, %67, %69 : vector<252x512xi1>, vector<252x512xf32>
    %c0_36 = arith.constant 0 : index
    %c0_37 = arith.constant 0 : index
    %71 = vector.load %arg5[%c0_36, %c0_37] : memref<8x252xf32, #tpu.memory_space<vmem>>, vector<8x252xf32>
    %cst_38 = arith.constant dense<0.000000e+00> : vector<8x512xf32>
    %72 = tpu.matmul %71, %70, %cst_38 {dimension_numbers = #tpu.dot_dimension_numbers<[1], [0], [0], [1], [0, 0, 1, 1], [], []>} : vector<8x252xf32>, vector<252x512xf32>, vector<8x512xf32> -> vector<8x512xf32>
    %73 = vector.extract_strided_slice %72 {offsets = [0, 0], sizes = [1, 512], strides = [1, 1]} : vector<8x512xf32> to vector<1x512xf32>
    %74 = arith.mulf %73, %49 : vector<1x512xf32>
    %75 = vector.extract_strided_slice %72 {offsets = [1, 0], sizes = [1, 512], strides = [1, 1]} : vector<8x512xf32> to vector<1x512xf32>
    %76 = arith.mulf %75, %49 : vector<1x512xf32>
    %c0_39 = arith.constant 0 : index
    %c0_40 = arith.constant 0 : index
    %77 = vector.load %arg8[%c0_39, %c0_40] : memref<8x512xf32, #tpu.memory_space<vmem>>, vector<1x512xf32>
    %78 = arith.mulf %32, %49 : vector<1x512xf32>
    %79 = arith.addf %77, %78 : vector<1x512xf32>
    %c0_41 = arith.constant 0 : index
    %c0_42 = arith.constant 0 : index
    %80 = vector.load %arg8[%c0_41, %c0_42] : memref<8x512xf32, #tpu.memory_space<vmem>>, vector<1x512xf32>
    tpu.vector_store %arg8[%c0_41, %c0_42], %79 {strides = array<i32>} : memref<8x512xf32, #tpu.memory_space<vmem>>, vector<1x512xf32>,
    %c1_43 = arith.constant 1 : index
    %c0_44 = arith.constant 0 : index
    %81 = vector.load %arg8[%c1_43, %c0_44] : memref<8x512xf32, #tpu.memory_space<vmem>>, vector<1x512xf32>
    %82 = arith.addf %81, %49 : vector<1x512xf32>
    %c1_45 = arith.constant 1 : index
    %c0_46 = arith.constant 0 : index
    %83 = vector.load %arg8[%c1_45, %c0_46] : memref<8x512xf32, #tpu.memory_space<vmem>>, vector<1x512xf32>
    tpu.vector_store %arg8[%c1_45, %c0_46], %82 {strides = array<i32>} : memref<8x512xf32, #tpu.memory_space<vmem>>, vector<1x512xf32>,
    %c2_47 = arith.constant 2 : index
    %c0_48 = arith.constant 0 : index
    %84 = vector.load %arg8[%c2_47, %c0_48] : memref<8x512xf32, #tpu.memory_space<vmem>>, vector<1x512xf32>
    %85 = arith.addf %84, %52 : vector<1x512xf32>
    %c2_49 = arith.constant 2 : index
    %c0_50 = arith.constant 0 : index
    %86 = vector.load %arg8[%c2_49, %c0_50] : memref<8x512xf32, #tpu.memory_space<vmem>>, vector<1x512xf32>
    tpu.vector_store %arg8[%c2_49, %c0_50], %85 {strides = array<i32>} : memref<8x512xf32, #tpu.memory_space<vmem>>, vector<1x512xf32>,
    %c3_51 = arith.constant 3 : index
    %c0_52 = arith.constant 0 : index
    %87 = vector.load %arg8[%c3_51, %c0_52] : memref<8x512xf32, #tpu.memory_space<vmem>>, vector<1x512xf32>
    %88 = arith.mulf %48, %49 : vector<1x512xf32>
    %89 = arith.addf %87, %88 : vector<1x512xf32>
    %c3_53 = arith.constant 3 : index
    %c0_54 = arith.constant 0 : index
    %90 = vector.load %arg8[%c3_53, %c0_54] : memref<8x512xf32, #tpu.memory_space<vmem>>, vector<1x512xf32>
    tpu.vector_store %arg8[%c3_53, %c0_54], %89 {strides = array<i32>} : memref<8x512xf32, #tpu.memory_space<vmem>>, vector<1x512xf32>,
    %c4 = arith.constant 4 : index
    %c0_55 = arith.constant 0 : index
    %91 = vector.load %arg8[%c4, %c0_55] : memref<8x512xf32, #tpu.memory_space<vmem>>, vector<1x512xf32>
    %cst_56 = arith.constant 1.000000e+00 : f32
    %92 = vector.broadcast %cst_56 : f32 to vector<1x512xf32>
    %93 = arith.subf %92, %49 : vector<1x512xf32>
    %94 = arith.mulf %48, %93 : vector<1x512xf32>
    %95 = arith.addf %91, %94 : vector<1x512xf32>
    %c4_57 = arith.constant 4 : index
    %c0_58 = arith.constant 0 : index
    %96 = vector.load %arg8[%c4_57, %c0_58] : memref<8x512xf32, #tpu.memory_space<vmem>>, vector<1x512xf32>
    tpu.vector_store %arg8[%c4_57, %c0_58], %95 {strides = array<i32>} : memref<8x512xf32, #tpu.memory_space<vmem>>, vector<1x512xf32>,
    %c5 = arith.constant 5 : index
    %c0_59 = arith.constant 0 : index
    %97 = vector.load %arg8[%c5, %c0_59] : memref<8x512xf32, #tpu.memory_space<vmem>>, vector<1x512xf32>
    %98 = arith.addf %97, %74 : vector<1x512xf32>
    %c5_60 = arith.constant 5 : index
    %c0_61 = arith.constant 0 : index
    %99 = vector.load %arg8[%c5_60, %c0_61] : memref<8x512xf32, #tpu.memory_space<vmem>>, vector<1x512xf32>
    tpu.vector_store %arg8[%c5_60, %c0_61], %98 {strides = array<i32>} : memref<8x512xf32, #tpu.memory_space<vmem>>, vector<1x512xf32>,
    %c6 = arith.constant 6 : index
    %c0_62 = arith.constant 0 : index
    %100 = vector.load %arg8[%c6, %c0_62] : memref<8x512xf32, #tpu.memory_space<vmem>>, vector<1x512xf32>
    %101 = arith.addf %100, %76 : vector<1x512xf32>
    %c6_63 = arith.constant 6 : index
    %c0_64 = arith.constant 0 : index
    %102 = vector.load %arg8[%c6_63, %c0_64] : memref<8x512xf32, #tpu.memory_space<vmem>>, vector<1x512xf32>
    tpu.vector_store %arg8[%c6_63, %c0_64], %101 {strides = array<i32>} : memref<8x512xf32, #tpu.memory_space<vmem>>, vector<1x512xf32>,
    %c7 = arith.constant 7 : index
    %c0_65 = arith.constant 0 : index
    %103 = vector.load %arg8[%c7, %c0_65] : memref<8x512xf32, #tpu.memory_space<vmem>>, vector<1x512xf32>
    %104 = arith.addf %103, %53 : vector<1x512xf32>
    %c7_66 = arith.constant 7 : index
    %c0_67 = arith.constant 0 : index
    %105 = vector.load %arg8[%c7_66, %c0_67] : memref<8x512xf32, #tpu.memory_space<vmem>>, vector<1x512xf32>
    tpu.vector_store %arg8[%c7_66, %c0_67], %104 {strides = array<i32>} : memref<8x512xf32, #tpu.memory_space<vmem>>, vector<1x512xf32>,
    %c1_i32 = arith.constant 1 : i32
    %106 = arith.cmpi eq, %arg1, %c1_i32 : i32
    %107 = arith.extui %106 : i1 to i32
    %c0_i32_68 = arith.constant 0 : i32
    %108 = arith.cmpi ne, %107, %c0_i32_68 : i32
    scf.if %108 {
      %c0_69 = arith.constant 0 : index
      %c0_70 = arith.constant 0 : index
      %109 = vector.load %arg8[%c0_69, %c0_70] : memref<8x512xf32, #tpu.memory_space<vmem>>, vector<8x512xf32>
      %cst_71 = arith.constant dense<0.000000e+00> : vector<8xf32>
      %110 = vector.multi_reduction <add>, %109, %cst_71 [1] : vector<8x512xf32> to vector<8xf32>
      %111 = vector.shape_cast %110 : vector<8xf32> to vector<8x1xf32>
      %c0_72 = arith.constant 0 : index
      %c0_73 = arith.constant 0 : index
      %c0_74 = arith.constant 0 : index
      %112 = vector.load %arg7[%c0_72, %c0_73, %c0_74] : memref<1x8x1xf32, #tpu.memory_space<vmem>>, vector<1x8x1xf32>
      %113 = vector.shape_cast %112 : vector<1x8x1xf32> to vector<8x1xf32>
      %114 = vector.shape_cast %111 : vector<8x1xf32> to vector<1x8x1xf32>
      tpu.vector_store %arg7[%c0_72, %c0_73, %c0_74], %114 {strides = array<i32>} : memref<1x8x1xf32, #tpu.memory_space<vmem>>, vector<1x8x1xf32>,
    } else {
    }
    return
  }
  func.func @transform_0(%arg0: i32, %arg1: i32) -> (i32, i32, i32) {
    %c0_i32 = arith.constant 0 : i32
    %c0_i32_0 = arith.constant 0 : i32
    return %arg0, %c0_i32, %arg1 : i32, i32, i32
  }
  func.func @transform_1(%arg0: i32, %arg1: i32) -> (i32, i32, i32) {
    %c0_i32 = arith.constant 0 : i32
    %c0_i32_0 = arith.constant 0 : i32
    return %arg0, %c0_i32, %arg1 : i32, i32, i32
  }
  func.func @transform_2(%arg0: i32, %arg1: i32) -> (i32, i32, i32) {
    %c0_i32 = arith.constant 0 : i32
    %c0_i32_0 = arith.constant 0 : i32
    return %arg0, %c0_i32, %arg1 : i32, i32, i32
  }
  func.func @transform_3(%arg0: i32, %arg1: i32) -> (i32, i32) {
    %c0_i32 = arith.constant 0 : i32
    %c0_i32_0 = arith.constant 0 : i32
    %c0_i32_1 = arith.constant 0 : i32
    return %c0_i32, %c0_i32_0 : i32, i32
  }
  func.func @transform_4(%arg0: i32, %arg1: i32) -> (i32, i32, i32) {
    %c0_i32 = arith.constant 0 : i32
    %c0_i32_0 = arith.constant 0 : i32
    return %arg0, %c0_i32, %arg1 : i32, i32, i32
  }
  func.func @transform_5(%arg0: i32, %arg1: i32) -> (i32, i32, i32) {
    %c0_i32 = arith.constant 0 : i32
    %c0_i32_0 = arith.constant 0 : i32
    %c0_i32_1 = arith.constant 0 : i32
    return %arg0, %c0_i32, %c0_i32_0 : i32, i32, i32
  }
}

</mosaic_0001>

<bundles_post_ra>
// kernel: _forward_single.1
= control target key start
LH: loop header
LB: loop body
LE: loop exit
PB: predicated region body
PF: predicated region fallthrough
CT: control target
= control target key end

     0   :  { %s3347_s18 = smov 0   ;;  %s3349_s19 = smov 0   ;;  %s5593_s0 = inlined_call_operand.vmem [shape: f32[2,4,1024], index: 0, kind: input, shape index: {}]   ;;  %s5594_s1 = inlined_call_operand.vmem [shape: f32[2,252,1024], index: 1, kind: input, shape index: {}]   ;;  %s5595_s2 = inlined_call_operand.vmem [shape: f32[2,255,1024], index: 2, kind: input, shape index: {}]   ;;  %s5596_s3 = inlined_call_operand.vmem [shape: f32[8,252], index: 3, kind: input, shape index: {}]   ;;  %s5597_s4 = inlined_call_operand.vmem [shape: f32[2,1,1024], index: 4, kind: output, shape index: {0}]   ;;  %s5598_s5 = inlined_call_operand.vmem [shape: f32[2,8,1], index: 5, kind: output, shape index: {1}]  }
   0x1   :  { %s3351_s20 = smov 0   ;;  %s3353_s21 = smov 0  }
   0x2   :  { %s3355_s22 = smov 0   ;;  %s3357_s23 = smov 0  }
   0x3   :  { %s3359_s24 = smov 0  }
   0x4 LB: > { %s25_s25 = sadd.s32 1, %s3305_s22  ;;  %s28_s26 = sadd.s32 1, %s3309_s23  ;;  %s3313_s24 = sphi %s3359_s24, %s16_s24   ;;  %s3309_s23 = sphi %s3357_s23, %s5785_s23   ;;  %s3305_s22 = sphi %s3355_s22, %s5784_s22   ;;  %s3301_s21 = sphi %s3353_s21, %s5783_s21   ;;  %s3297_s20 = sphi %s3351_s20, %s5782_s20   ;;  %s3293_s19 = sphi %s3349_s19, %s5781_s19   ;;  %s3289_s18 = sphi %s3347_s18, %s5780_s18  }
   0x5   : > { %p26_p0 = scmp.ge.s32.totalorder %s25_s25, 2  ;;  %p72_p1 = scmp.ne.s32.totalorder %s3293_s19, %s3289_s18 }
   0x6   : > { %p73_p2 = scmp.eq.s32.totalorder %s3313_s24, 0  ;;  %s65_s6 = sadd.s32 1, %s3293_s19 }
   0x7   : > { %s5787_s25 = smov (%p26_p0, %s25_s25), 0  ;;  %s5789_s26 = smov (!%p26_p0, %s28_s26), %s3309_s23 }
   0x8   : > { %p3390_p3 = por %p73_p2, %p72_p1  ;;  %p30_p4 = scmp.ge.s32.totalorder %s5789_s26, 2 }
   0x9   : > { %s61_s28 = ssub.s32 %s3305_s22, %s5787_s25  ;;  %p3032_p6 = scmp.ge.s32.totalorder %s3313_s24, 4 }
   0xa   : > { %s5791_s26 = smov (%p30_p4, %s5789_s26), 0 }
   0xb   : > { %s60_s29 = ssub.s32 %s3309_s23, %s5791_s26  ;;  %204 = sbr.rel (%p3032_p6) target bundleno = 158 (0x9e), region = 20 }
   0xc   : > { %s62_s30 = sor.u32 %s61_s28, %s60_s29 }
   0xd   : > { %p63_p5 = scmp.eq.s32.totalorder %s62_s30, 0 }
   0xf   : > { %s3402_s7 = scalar_select %p63_p5, %s3293_s19, %s65_s6  }
  0x10   : > { %220 = sbr.rel (!%p3390_p3) target bundleno = 87 (0x57), region = 28  ;;  %s222_s8 = sand.u32 (%p3390_p3), 1, %s3293_s19  }
  0x11   : > { %s3034_s9 = sshll.u32 (%p3390_p3), %s3305_s22, 2  ;;  %s3033_s10 = sshll.u32 (%p3390_p3), %s222_s8, 10 }
  0x12   : > { %s3035_s11 = sshll.u32 (%p3390_p3), %s3309_s23, 8  ;;  %s3418_s17 = scalar_lea.vmem (%p3390_p3), [#allocation3], %s3033_s10 }
  0x13   : > { %s227_s12 = sadd.s32 (%p3390_p3), %s3035_s11, %s3034_s9 }
  0x14   : > { %s3036_s13 = sshll.u32 (%p3390_p3), %s227_s12, 3 }
  0x15   : > { %s3413_s16 = scalar_lea.vmem %s5594_s1, %s3036_s13 }
  0x16   : > { %v242_v0 = vld [vmem:[%s3413_s16] sm:$0xff]  ;;  %v244_v1 = vld [vmem:[%s3413_s16 + $0x8] sm:$0xff]  ;;  %v246_v2 = vld [vmem:[%s3413_s16 + $0x10] sm:$0xff] }
  0x17   : > { %243 = vst [vmem:[%s3418_s17] sm:$0xff] %v242_v0  ;;  %245 = vst [vmem:[%s3418_s17 + $0x8] sm:$0xff] %v244_v1  ;;  %v248_v3 = vld [vmem:[%s3413_s16 + $0x18] sm:$0xff]  ;;  %v250_v4 = vld [vmem:[%s3413_s16 + $0x40] sm:$0xff] }
  0x18   : > { %247 = vst [vmem:[%s3418_s17 + $0x10] sm:$0xff] %v246_v2  ;;  %v252_v5 = vld [vmem:[%s3413_s16 + $0x48] sm:$0xff]  ;;  %249 = vst [vmem:[%s3418_s17 + $0x18] sm:$0xff] %v248_v3  ;;  %v254_v6 = vld [vmem:[%s3413_s16 + $0x50] sm:$0xff] }
  0x19   : > { %251 = vst [vmem:[%s3418_s17 + $0x20] sm:$0xff] %v250_v4  ;;  %253 = vst [vmem:[%s3418_s17 + $0x28] sm:$0xff] %v252_v5  ;;  %v256_v7 = vld [vmem:[%s3413_s16 + $0x58] sm:$0xff]  ;;  %v258_v8 = vld [vmem:[%s3413_s16 + $0x80] sm:$0xff] }
  0x1a   : > { %255 = vst [vmem:[%s3418_s17 + $0x30] sm:$0xff] %v254_v6  ;;  %257 = vst [vmem:[%s3418_s17 + $0x38] sm:$0xff] %v256_v7  ;;  %v260_v9 = vld [vmem:[%s3413_s16 + $0x88] sm:$0xff]  ;;  %v262_v10 = vld [vmem:[%s3413_s16 + $0x90] sm:$0xff] }
  0x1b   : > { %259 = vst [vmem:[%s3418_s17 + $0x40] sm:$0xff] %v258_v8  ;;  %v264_v11 = vld [vmem:[%s3413_s16 + $0x98] sm:$0xff]  ;;  %261 = vst [vmem:[%s3418_s17 + $0x48] sm:$0xff] %v260_v9  ;;  %v266_v12 = vld [vmem:[%s3413_s16 + $0xc0] sm:$0xff] }
  0x1c   : > { %263 = vst [vmem:[%s3418_s17 + $0x50] sm:$0xff] %v262_v10  ;;  %265 = vst [vmem:[%s3418_s17 + $0x58] sm:$0xff] %v264_v11  ;;  %v268_v13 = vld [vmem:[%s3413_s16 + $0xc8] sm:$0xff]  ;;  %v270_v14 = vld [vmem:[%s3413_s16 + $0xd0] sm:$0xff] }
  0x1d   : > { %267 = vst [vmem:[%s3418_s17 + $0x60] sm:$0xff] %v266_v12  ;;  %269 = vst [vmem:[%s3418_s17 + $0x68] sm:$0xff] %v268_v13  ;;  %v272_v15 = vld [vmem:[%s3413_s16 + $0xd8] sm:$0xff]  ;;  %v274_v16 = vld [vmem:[%s3413_s16 + $0x100] sm:$0xff] }
  0x1e   : > { %271 = vst [vmem:[%s3418_s17 + $0x70] sm:$0xff] %v270_v14  ;;  %v276_v17 = vld [vmem:[%s3413_s16 + $0x108] sm:$0xff]  ;;  %273 = vst [vmem:[%s3418_s17 + $0x78] sm:$0xff] %v272_v15  ;;  %v278_v18 = vld [vmem:[%s3413_s16 + $0x110] sm:$0xff] }
  0x1f   : > { %275 = vst [vmem:[%s3418_s17 + $0x80] sm:$0xff] %v274_v16  ;;  %277 = vst [vmem:[%s3418_s17 + $0x88] sm:$0xff] %v276_v17  ;;  %v280_v19 = vld [vmem:[%s3413_s16 + $0x118] sm:$0xff]  ;;  %v282_v20 = vld [vmem:[%s3413_s16 + $0x140] sm:$0xff] }
  0x20   : > { %279 = vst [vmem:[%s3418_s17 + $0x90] sm:$0xff] %v278_v18  ;;  %281 = vst [vmem:[%s3418_s17 + $0x98] sm:$0xff] %v280_v19  ;;  %v284_v21 = vld [vmem:[%s3413_s16 + $0x148] sm:$0xff]  ;;  %v286_v22 = vld [vmem:[%s3413_s16 + $0x150] sm:$0xff] }
  0x21   : > { %283 = vst [vmem:[%s3418_s17 + $0xa0] sm:$0xff] %v282_v20  ;;  %v288_v23 = vld [vmem:[%s3413_s16 + $0x158] sm:$0xff]  ;;  %285 = vst [vmem:[%s3418_s17 + $0xa8] sm:$0xff] %v284_v21  ;;  %v290_v24 = vld [vmem:[%s3413_s16 + $0x180] sm:$0xff] }
  0x22   : > { %287 = vst [vmem:[%s3418_s17 + $0xb0] sm:$0xff] %v286_v22  ;;  %289 = vst [vmem:[%s3418_s17 + $0xb8] sm:$0xff] %v288_v23  ;;  %v292_v25 = vld [vmem:[%s3413_s16 + $0x188] sm:$0xff]  ;;  %v294_v26 = vld [vmem:[%s3413_s16 + $0x190] sm:$0xff] }
  0x23   : > { %291 = vst [vmem:[%s3418_s17 + $0xc0] sm:$0xff] %v290_v24  ;;  %293 = vst [vmem:[%s3418_s17 + $0xc8] sm:$0xff] %v292_v25  ;;  %v296_v27 = vld [vmem:[%s3413_s16 + $0x198] sm:$0xff]  ;;  %v298_v28 = vld [vmem:[%s3413_s16 + $0x1c0] sm:$0xff] }
  0x24   : > { %295 = vst [vmem:[%s3418_s17 + $0xd0] sm:$0xff] %v294_v26  ;;  %v300_v29 = vld [vmem:[%s3413_s16 + $0x1c8] sm:$0xff]  ;;  %297 = vst [vmem:[%s3418_s17 + $0xd8] sm:$0xff] %v296_v27  ;;  %v302_v30 = vld [vmem:[%s3413_s16 + $0x1d0] sm:$0xff] }
  0x25   : > { %299 = vst [vmem:[%s3418_s17 + $0xe0] sm:$0xff] %v298_v28  ;;  %301 = vst [vmem:[%s3418_s17 + $0xe8] sm:$0xff] %v300_v29  ;;  %v304_v31 = vld [vmem:[%s3413_s16 + $0x1d8] sm:$0xff]  ;;  %v306_v32 = vld [vmem:[%s3413_s16 + $0x200] sm:$0xff] }
  0x26   : > { %303 = vst [vmem:[%s3418_s17 + $0xf0] sm:$0xff] %v302_v30  ;;  %305 = vst [vmem:[%s3418_s17 + $0xf8] sm:$0xff] %v304_v31  ;;  %v308_v33 = vld [vmem:[%s3413_s16 + $0x208] sm:$0xff]  ;;  %v310_v34 = vld [vmem:[%s3413_s16 + $0x210] sm:$0xff] }
  0x27   : > { %307 = vst [vmem:[%s3418_s17 + $0x100] sm:$0xff] %v306_v32  ;;  %v312_v35 = vld [vmem:[%s3413_s16 + $0x218] sm:$0xff]  ;;  %309 = vst [vmem:[%s3418_s17 + $0x108] sm:$0xff] %v308_v33  ;;  %v314_v36 = vld [vmem:[%s3413_s16 + $0x240] sm:$0xff] }
  0x28   : > { %311 = vst [vmem:[%s3418_s17 + $0x110] sm:$0xff] %v310_v34  ;;  %313 = vst [vmem:[%s3418_s17 + $0x118] sm:$0xff] %v312_v35  ;;  %v316_v37 = vld [vmem:[%s3413_s16 + $0x248] sm:$0xff]  ;;  %v318_v38 = vld [vmem:[%s3413_s16 + $0x250] sm:$0xff] }
  0x29   : > { %315 = vst [vmem:[%s3418_s17 + $0x120] sm:$0xff] %v314_v36  ;;  %317 = vst [vmem:[%s3418_s17 + $0x128] sm:$0xff] %v316_v37  ;;  %v320_v39 = vld [vmem:[%s3413_s16 + $0x258] sm:$0xff]  ;;  %v322_v40 = vld [vmem:[%s3413_s16 + $0x280] sm:$0xff] }
  0x2a   : > { %319 = vst [vmem:[%s3418_s17 + $0x130] sm:$0xff] %v318_v38  ;;  %v324_v41 = vld [vmem:[%s3413_s16 + $0x288] sm:$0xff]  ;;  %321 = vst [vmem:[%s3418_s17 + $0x138] sm:$0xff] %v320_v39  ;;  %v326_v42 = vld [vmem:[%s3413_s16 + $0x290] sm:$0xff] }
  0x2b   : > { %323 = vst [vmem:[%s3418_s17 + $0x140] sm:$0xff] %v322_v40  ;;  %325 = vst [vmem:[%s3418_s17 + $0x148] sm:$0xff] %v324_v41  ;;  %v328_v43 = vld [vmem:[%s3413_s16 + $0x298] sm:$0xff]  ;;  %v330_v44 = vld [vmem:[%s3413_s16 + $0x2c0] sm:$0xff] }
  0x2c   : > { %327 = vst [vmem:[%s3418_s17 + $0x150] sm:$0xff] %v326_v42  ;;  %329 = vst [vmem:[%s3418_s17 + $0x158] sm:$0xff] %v328_v43  ;;  %v332_v45 = vld [vmem:[%s3413_s16 + $0x2c8] sm:$0xff]  ;;  %v334_v46 = vld [vmem:[%s3413_s16 + $0x2d0] sm:$0xff] }
  0x2d   : > { %331 = vst [vmem:[%s3418_s17 + $0x160] sm:$0xff] %v330_v44  ;;  %v336_v47 = vld [vmem:[%s3413_s16 + $0x2d8] sm:$0xff]  ;;  %333 = vst [vmem:[%s3418_s17 + $0x168] sm:$0xff] %v332_v45  ;;  %v338_v48 = vld [vmem:[%s3413_s16 + $0x300] sm:$0xff] }
  0x2e   : > { %335 = vst [vmem:[%s3418_s17 + $0x170] sm:$0xff] %v334_v46  ;;  %337 = vst [vmem:[%s3418_s17 + $0x178] sm:$0xff] %v336_v47  ;;  %v340_v49 = vld [vmem:[%s3413_s16 + $0x308] sm:$0xff]  ;;  %v342_v50 = vld [vmem:[%s3413_s16 + $0x310] sm:$0xff] }
  0x2f   : > { %339 = vst [vmem:[%s3418_s17 + $0x180] sm:$0xff] %v338_v48  ;;  %341 = vst [vmem:[%s3418_s17 + $0x188] sm:$0xff] %v340_v49  ;;  %v344_v51 = vld [vmem:[%s3413_s16 + $0x318] sm:$0xff]  ;;  %v346_v52 = vld [vmem:[%s3413_s16 + $0x340] sm:$0xff] }
  0x30   : > { %343 = vst [vmem:[%s3418_s17 + $0x190] sm:$0xff] %v342_v50  ;;  %v348_v53 = vld [vmem:[%s3413_s16 + $0x348] sm:$0xff]  ;;  %345 = vst [vmem:[%s3418_s17 + $0x198] sm:$0xff] %v344_v51  ;;  %v350_v54 = vld [vmem:[%s3413_s16 + $0x350] sm:$0xff] }
  0x31   : > { %347 = vst [vmem:[%s3418_s17 + $0x1a0] sm:$0xff] %v346_v52  ;;  %349 = vst [vmem:[%s3418_s17 + $0x1a8] sm:$0xff] %v348_v53  ;;  %v352_v55 = vld [vmem:[%s3413_s16 + $0x358] sm:$0xff]  ;;  %v354_v56 = vld [vmem:[%s3413_s16 + $0x380] sm:$0xff] }
  0x32   : > { %351 = vst [vmem:[%s3418_s17 + $0x1b0] sm:$0xff] %v350_v54  ;;  %353 = vst [vmem:[%s3418_s17 + $0x1b8] sm:$0xff] %v352_v55  ;;  %v356_v57 = vld [vmem:[%s3413_s16 + $0x388] sm:$0xff]  ;;  %v358_v58 = vld [vmem:[%s3413_s16 + $0x390] sm:$0xff] }
  0x33   : > { %355 = vst [vmem:[%s3418_s17 + $0x1c0] sm:$0xff] %v354_v56  ;;  %v360_v59 = vld [vmem:[%s3413_s16 + $0x398] sm:$0xff]  ;;  %357 = vst [vmem:[%s3418_s17 + $0x1c8] sm:$0xff] %v356_v57  ;;  %v362_v60 = vld [vmem:[%s3413_s16 + $0x3c0] sm:$0xff] }
  0x34   : > { %359 = vst [vmem:[%s3418_s17 + $0x1d0] sm:$0xff] %v358_v58  ;;  %361 = vst [vmem:[%s3418_s17 + $0x1d8] sm:$0xff] %v360_v59  ;;  %v364_v61 = vld [vmem:[%s3413_s16 + $0x3c8] sm:$0xff]  ;;  %v366_v62 = vld [vmem:[%s3413_s16 + $0x3d0] sm:$0xff] }
  0x35   : > { %363 = vst [vmem:[%s3418_s17 + $0x1e0] sm:$0xff] %v362_v60  ;;  %365 = vst [vmem:[%s3418_s17 + $0x1e8] sm:$0xff] %v364_v61  ;;  %v368_v63 = vld [vmem:[%s3413_s16 + $0x3d8] sm:$0xff]  ;;  %v370_v0 = vld [vmem:[%s3413_s16 + $0x400] sm:$0xff] }
  0x36   : > { %367 = vst [vmem:[%s3418_s17 + $0x1f0] sm:$0xff] %v366_v62  ;;  %v372_v1 = vld [vmem:[%s3413_s16 + $0x408] sm:$0xff]  ;;  %369 = vst [vmem:[%s3418_s17 + $0x1f8] sm:$0xff] %v368_v63  ;;  %v374_v2 = vld [vmem:[%s3413_s16 + $0x410] sm:$0xff] }
  0x37   : > { %371 = vst [vmem:[%s3418_s17 + $0x200] sm:$0xff] %v370_v0  ;;  %373 = vst [vmem:[%s3418_s17 + $0x208] sm:$0xff] %v372_v1  ;;  %v376_v3 = vld [vmem:[%s3413_s16 + $0x418] sm:$0xff]  ;;  %v378_v4 = vld [vmem:[%s3413_s16 + $0x440] sm:$0xff] }
  0x38   : > { %375 = vst [vmem:[%s3418_s17 + $0x210] sm:$0xff] %v374_v2  ;;  %377 = vst [vmem:[%s3418_s17 + $0x218] sm:$0xff] %v376_v3  ;;  %v380_v5 = vld [vmem:[%s3413_s16 + $0x448] sm:$0xff]  ;;  %v382_v6 = vld [vmem:[%s3413_s16 + $0x450] sm:$0xff] }
  0x39   : > { %379 = vst [vmem:[%s3418_s17 + $0x220] sm:$0xff] %v378_v4  ;;  %v384_v7 = vld [vmem:[%s3413_s16 + $0x458] sm:$0xff]  ;;  %381 = vst [vmem:[%s3418_s17 + $0x228] sm:$0xff] %v380_v5  ;;  %v386_v8 = vld [vmem:[%s3413_s16 + $0x480] sm:$0xff] }
  0x3a   : > { %383 = vst [vmem:[%s3418_s17 + $0x230] sm:$0xff] %v382_v6  ;;  %385 = vst [vmem:[%s3418_s17 + $0x238] sm:$0xff] %v384_v7  ;;  %v388_v9 = vld [vmem:[%s3413_s16 + $0x488] sm:$0xff]  ;;  %v390_v10 = vld [vmem:[%s3413_s16 + $0x490] sm:$0xff] }
  0x3b   : > { %387 = vst [vmem:[%s3418_s17 + $0x240] sm:$0xff] %v386_v8  ;;  %389 = vst [vmem:[%s3418_s17 + $0x248] sm:$0xff] %v388_v9  ;;  %v392_v11 = vld [vmem:[%s3413_s16 + $0x498] sm:$0xff]  ;;  %v394_v12 = vld [vmem:[%s3413_s16 + $0x4c0] sm:$0xff] }
  0x3c   : > { %391 = vst [vmem:[%s3418_s17 + $0x250] sm:$0xff] %v390_v10  ;;  %v396_v13 = vld [vmem:[%s3413_s16 + $0x4c8] sm:$0xff]  ;;  %393 = vst [vmem:[%s3418_s17 + $0x258] sm:$0xff] %v392_v11  ;;  %v398_v14 = vld [vmem:[%s3413_s16 + $0x4d0] sm:$0xff] }
  0x3d   : > { %395 = vst [vmem:[%s3418_s17 + $0x260] sm:$0xff] %v394_v12  ;;  %397 = vst [vmem:[%s3418_s17 + $0x268] sm:$0xff] %v396_v13  ;;  %v400_v15 = vld [vmem:[%s3413_s16 + $0x4d8] sm:$0xff]  ;;  %v402_v16 = vld [vmem:[%s3413_s16 + $0x500] sm:$0xff] }
  0x3e   : > { %399 = vst [vmem:[%s3418_s17 + $0x270] sm:$0xff] %v398_v14  ;;  %401 = vst [vmem:[%s3418_s17 + $0x278] sm:$0xff] %v400_v15  ;;  %v404_v17 = vld [vmem:[%s3413_s16 + $0x508] sm:$0xff]  ;;  %v406_v18 = vld [vmem:[%s3413_s16 + $0x510] sm:$0xff] }
  0x3f   : > { %403 = vst [vmem:[%s3418_s17 + $0x280] sm:$0xff] %v402_v16  ;;  %v408_v19 = vld [vmem:[%s3413_s16 + $0x518] sm:$0xff]  ;;  %405 = vst [vmem:[%s3418_s17 + $0x288] sm:$0xff] %v404_v17  ;;  %v410_v20 = vld [vmem:[%s3413_s16 + $0x540] sm:$0xff] }
  0x40   : > { %407 = vst [vmem:[%s3418_s17 + $0x290] sm:$0xff] %v406_v18  ;;  %409 = vst [vmem:[%s3418_s17 + $0x298] sm:$0xff] %v408_v19  ;;  %v412_v21 = vld [vmem:[%s3413_s16 + $0x548] sm:$0xff]  ;;  %v414_v22 = vld [vmem:[%s3413_s16 + $0x550] sm:$0xff] }
  0x41   : > { %411 = vst [vmem:[%s3418_s17 + $0x2a0] sm:$0xff] %v410_v20  ;;  %413 = vst [vmem:[%s3418_s17 + $0x2a8] sm:$0xff] %v412_v21  ;;  %v416_v23 = vld [vmem:[%s3413_s16 + $0x558] sm:$0xff]  ;;  %v418_v24 = vld [vmem:[%s3413_s16 + $0x580] sm:$0xff] }
  0x42   : > { %415 = vst [vmem:[%s3418_s17 + $0x2b0] sm:$0xff] %v414_v22  ;;  %v420_v25 = vld [vmem:[%s3413_s16 + $0x588] sm:$0xff]  ;;  %417 = vst [vmem:[%s3418_s17 + $0x2b8] sm:$0xff] %v416_v23  ;;  %v422_v26 = vld [vmem:[%s3413_s16 + $0x590] sm:$0xff] }
  0x43   : > { %419 = vst [vmem:[%s3418_s17 + $0x2c0] sm:$0xff] %v418_v24  ;;  %421 = vst [vmem:[%s3418_s17 + $0x2c8] sm:$0xff] %v420_v25  ;;  %v424_v27 = vld [vmem:[%s3413_s16 + $0x598] sm:$0xff]  ;;  %v426_v28 = vld [vmem:[%s3413_s16 + $0x5c0] sm:$0xff] }
  0x44   : > { %423 = vst [vmem:[%s3418_s17 + $0x2d0] sm:$0xff] %v422_v26  ;;  %425 = vst [vmem:[%s3418_s17 + $0x2d8] sm:$0xff] %v424_v27  ;;  %v428_v29 = vld [vmem:[%s3413_s16 + $0x5c8] sm:$0xff]  ;;  %v430_v30 = vld [vmem:[%s3413_s16 + $0x5d0] sm:$0xff] }
  0x45   : > { %427 = vst [vmem:[%s3418_s17 + $0x2e0] sm:$0xff] %v426_v28  ;;  %v432_v31 = vld [vmem:[%s3413_s16 + $0x5d8] sm:$0xff]  ;;  %429 = vst [vmem:[%s3418_s17 + $0x2e8] sm:$0xff] %v428_v29  ;;  %v434_v32 = vld [vmem:[%s3413_s16 + $0x600] sm:$0xff] }
  0x46   : > { %431 = vst [vmem:[%s3418_s17 + $0x2f0] sm:$0xff] %v430_v30  ;;  %433 = vst [vmem:[%s3418_s17 + $0x2f8] sm:$0xff] %v432_v31  ;;  %v436_v33 = vld [vmem:[%s3413_s16 + $0x608] sm:$0xff]  ;;  %v438_v34 = vld [vmem:[%s3413_s16 + $0x610] sm:$0xff] }
  0x47   : > { %435 = vst [vmem:[%s3418_s17 + $0x300] sm:$0xff] %v434_v32  ;;  %437 = vst [vmem:[%s3418_s17 + $0x308] sm:$0xff] %v436_v33  ;;  %v440_v35 = vld [vmem:[%s3413_s16 + $0x618] sm:$0xff]  ;;  %v442_v36 = vld [vmem:[%s3413_s16 + $0x640] sm:$0xff] }
  0x48   : > { %439 = vst [vmem:[%s3418_s17 + $0x310] sm:$0xff] %v438_v34  ;;  %v444_v37 = vld [vmem:[%s3413_s16 + $0x648] sm:$0xff]  ;;  %441 = vst [vmem:[%s3418_s17 + $0x318] sm:$0xff] %v440_v35  ;;  %v446_v38 = vld [vmem:[%s3413_s16 + $0x650] sm:$0xff] }
  0x49   : > { %443 = vst [vmem:[%s3418_s17 + $0x320] sm:$0xff] %v442_v36  ;;  %445 = vst [vmem:[%s3418_s17 + $0x328] sm:$0xff] %v444_v37  ;;  %v448_v39 = vld [vmem:[%s3413_s16 + $0x658] sm:$0xff]  ;;  %v450_v40 = vld [vmem:[%s3413_s16 + $0x680] sm:$0xff] }
  0x4a   : > { %447 = vst [vmem:[%s3418_s17 + $0x330] sm:$0xff] %v446_v38  ;;  %449 = vst [vmem:[%s3418_s17 + $0x338] sm:$0xff] %v448_v39  ;;  %v452_v41 = vld [vmem:[%s3413_s16 + $0x688] sm:$0xff]  ;;  %v454_v42 = vld [vmem:[%s3413_s16 + $0x690] sm:$0xff] }
  0x4b   : > { %451 = vst [vmem:[%s3418_s17 + $0x340] sm:$0xff] %v450_v40  ;;  %v456_v43 = vld [vmem:[%s3413_s16 + $0x698] sm:$0xff]  ;;  %453 = vst [vmem:[%s3418_s17 + $0x348] sm:$0xff] %v452_v41  ;;  %v458_v44 = vld [vmem:[%s3413_s16 + $0x6c0] sm:$0xff] }
  0x4c   : > { %455 = vst [vmem:[%s3418_s17 + $0x350] sm:$0xff] %v454_v42  ;;  %457 = vst [vmem:[%s3418_s17 + $0x358] sm:$0xff] %v456_v43  ;;  %v460_v45 = vld [vmem:[%s3413_s16 + $0x6c8] sm:$0xff]  ;;  %v462_v46 = vld [vmem:[%s3413_s16 + $0x6d0] sm:$0xff] }
  0x4d   : > { %459 = vst [vmem:[%s3418_s17 + $0x360] sm:$0xff] %v458_v44  ;;  %461 = vst [vmem:[%s3418_s17 + $0x368] sm:$0xff] %v460_v45  ;;  %v464_v47 = vld [vmem:[%s3413_s16 + $0x6d8] sm:$0xff]  ;;  %v466_v48 = vld [vmem:[%s3413_s16 + $0x700] sm:$0xff] }
  0x4e   : > { %463 = vst [vmem:[%s3418_s17 + $0x370] sm:$0xff] %v462_v46  ;;  %v468_v49 = vld [vmem:[%s3413_s16 + $0x708] sm:$0xff]  ;;  %465 = vst [vmem:[%s3418_s17 + $0x378] sm:$0xff] %v464_v47  ;;  %v470_v50 = vld [vmem:[%s3413_s16 + $0x710] sm:$0xff] }
  0x4f   : > { %467 = vst [vmem:[%s3418_s17 + $0x380] sm:$0xff] %v466_v48  ;;  %469 = vst [vmem:[%s3418_s17 + $0x388] sm:$0xff] %v468_v49  ;;  %v472_v51 = vld [vmem:[%s3413_s16 + $0x718] sm:$0xff]  ;;  %v474_v52 = vld [vmem:[%s3413_s16 + $0x740] sm:$0xff] }
  0x50   : > { %471 = vst [vmem:[%s3418_s17 + $0x390] sm:$0xff] %v470_v50  ;;  %473 = vst [vmem:[%s3418_s17 + $0x398] sm:$0xff] %v472_v51  ;;  %v476_v53 = vld [vmem:[%s3413_s16 + $0x748] sm:$0xff]  ;;  %v478_v54 = vld [vmem:[%s3413_s16 + $0x750] sm:$0xff] }
  0x51   : > { %475 = vst [vmem:[%s3418_s17 + $0x3a0] sm:$0xff] %v474_v52  ;;  %v480_v55 = vld [vmem:[%s3413_s16 + $0x758] sm:$0xff]  ;;  %477 = vst [vmem:[%s3418_s17 + $0x3a8] sm:$0xff] %v476_v53  ;;  %v482_v56 = vld [vmem:[%s3413_s16 + $0x780] sm:$0xff] }
  0x52   : > { %479 = vst [vmem:[%s3418_s17 + $0x3b0] sm:$0xff] %v478_v54  ;;  %481 = vst [vmem:[%s3418_s17 + $0x3b8] sm:$0xff] %v480_v55  ;;  %v484_v57 = vld [vmem:[%s3413_s16 + $0x788] sm:$0xff]  ;;  %v486_v58 = vld [vmem:[%s3413_s16 + $0x790] sm:$0xff] }
  0x53   : > { %483 = vst [vmem:[%s3418_s17 + $0x3c0] sm:$0xff] %v482_v56  ;;  %485 = vst [vmem:[%s3418_s17 + $0x3c8] sm:$0xff] %v484_v57  ;;  %v488_v59 = vld [vmem:[%s3413_s16 + $0x798] sm:$0xff]  ;;  %v490_v60 = vld [vmem:[%s3413_s16 + $0x7c0] sm:$0xff] }
  0x54   : > { %487 = vst [vmem:[%s3418_s17 + $0x3d0] sm:$0xff] %v486_v58  ;;  %v492_v61 = vld [vmem:[%s3413_s16 + $0x7c8] sm:$0xff]  ;;  %489 = vst [vmem:[%s3418_s17 + $0x3d8] sm:$0xff] %v488_v59  ;;  %v494_v62 = vld [vmem:[%s3413_s16 + $0x7d0] sm:$0xff] }
  0x55   : > { %491 = vst [vmem:[%s3418_s17 + $0x3e0] sm:$0xff] %v490_v60  ;;  %493 = vst [vmem:[%s3418_s17 + $0x3e8] sm:$0xff] %v492_v61  ;;  %v496_v63 = vld [vmem:[%s3413_s16 + $0x7d8] sm:$0xff] }
  0x56   : > { %495 = vst [vmem:[%s3418_s17 + $0x3f0] sm:$0xff] %v494_v62  ;;  %497 = vst [vmem:[%s3418_s17 + $0x3f8] sm:$0xff] %v496_v63 }
  0x57 PF: > { %503 = sbr.rel (!%p3390_p3) target bundleno = 158 (0x9e), region = 51  ;;  %s505_s28 = sand.u32 (%p3390_p3), 1, %s3293_s19  }
  0x58   : > { %s3038_s29 = sshll.u32 (%p3390_p3), %s3305_s22, 2  ;;  %s3037_s30 = sshll.u32 (%p3390_p3), %s505_s28, 10 }
  0x59   : > { %s3039_s6 = sshll.u32 (%p3390_p3), %s3309_s23, 8  ;;  %s3686_s27 = scalar_lea.vmem (%p3390_p3), [#allocation4], %s3037_s30 }
  0x5a   : > { %s510_s8 = sadd.s32 (%p3390_p3), %s3039_s6, %s3038_s29 }
  0x5b   : > { %s3040_s9 = sshll.u32 (%p3390_p3), %s510_s8, 3 }
  0x5c   : > { %s3681_s12 = scalar_lea.vmem %s5595_s2, %s3040_s9 }
  0x5d   : > { %v525_v0 = vld [vmem:[%s3681_s12] sm:$0xff]  ;;  %v527_v1 = vld [vmem:[%s3681_s12 + $0x8] sm:$0xff]  ;;  %v529_v2 = vld [vmem:[%s3681_s12 + $0x10] sm:$0xff] }
  0x5e   : > { %526 = vst [vmem:[%s3686_s27] sm:$0xff] %v525_v0  ;;  %528 = vst [vmem:[%s3686_s27 + $0x8] sm:$0xff] %v527_v1  ;;  %v531_v3 = vld [vmem:[%s3681_s12 + $0x18] sm:$0xff]  ;;  %v533_v4 = vld [vmem:[%s3681_s12 + $0x40] sm:$0xff] }
  0x5f   : > { %530 = vst [vmem:[%s3686_s27 + $0x10] sm:$0xff] %v529_v2  ;;  %v535_v5 = vld [vmem:[%s3681_s12 + $0x48] sm:$0xff]  ;;  %532 = vst [vmem:[%s3686_s27 + $0x18] sm:$0xff] %v531_v3  ;;  %v537_v6 = vld [vmem:[%s3681_s12 + $0x50] sm:$0xff] }
  0x60   : > { %534 = vst [vmem:[%s3686_s27 + $0x20] sm:$0xff] %v533_v4  ;;  %536 = vst [vmem:[%s3686_s27 + $0x28] sm:$0xff] %v535_v5  ;;  %v539_v7 = vld [vmem:[%s3681_s12 + $0x58] sm:$0xff]  ;;  %v541_v8 = vld [vmem:[%s3681_s12 + $0x80] sm:$0xff] }
  0x61   : > { %538 = vst [vmem:[%s3686_s27 + $0x30] sm:$0xff] %v537_v6  ;;  %540 = vst [vmem:[%s3686_s27 + $0x38] sm:$0xff] %v539_v7  ;;  %v543_v9 = vld [vmem:[%s3681_s12 + $0x88] sm:$0xff]  ;;  %v545_v10 = vld [vmem:[%s3681_s12 + $0x90] sm:$0xff] }
  0x62   : > { %542 = vst [vmem:[%s3686_s27 + $0x40] sm:$0xff] %v541_v8  ;;  %v547_v11 = vld [vmem:[%s3681_s12 + $0x98] sm:$0xff]  ;;  %544 = vst [vmem:[%s3686_s27 + $0x48] sm:$0xff] %v543_v9  ;;  %v549_v12 = vld [vmem:[%s3681_s12 + $0xc0] sm:$0xff] }
  0x63   : > { %546 = vst [vmem:[%s3686_s27 + $0x50] sm:$0xff] %v545_v10  ;;  %548 = vst [vmem:[%s3686_s27 + $0x58] sm:$0xff] %v547_v11  ;;  %v551_v13 = vld [vmem:[%s3681_s12 + $0xc8] sm:$0xff]  ;;  %v553_v14 = vld [vmem:[%s3681_s12 + $0xd0] sm:$0xff] }
  0x64   : > { %550 = vst [vmem:[%s3686_s27 + $0x60] sm:$0xff] %v549_v12  ;;  %552 = vst [vmem:[%s3686_s27 + $0x68] sm:$0xff] %v551_v13  ;;  %v555_v15 = vld [vmem:[%s3681_s12 + $0xd8] sm:$0xff]  ;;  %v557_v16 = vld [vmem:[%s3681_s12 + $0x100] sm:$0xff] }
  0x65   : > { %554 = vst [vmem:[%s3686_s27 + $0x70] sm:$0xff] %v553_v14  ;;  %v559_v17 = vld [vmem:[%s3681_s12 + $0x108] sm:$0xff]  ;;  %556 = vst [vmem:[%s3686_s27 + $0x78] sm:$0xff] %v555_v15  ;;  %v561_v18 = vld [vmem:[%s3681_s12 + $0x110] sm:$0xff] }
  0x66   : > { %558 = vst [vmem:[%s3686_s27 + $0x80] sm:$0xff] %v557_v16  ;;  %560 = vst [vmem:[%s3686_s27 + $0x88] sm:$0xff] %v559_v17  ;;  %v563_v19 = vld [vmem:[%s3681_s12 + $0x118] sm:$0xff]  ;;  %v565_v20 = vld [vmem:[%s3681_s12 + $0x140] sm:$0xff] }
  0x67   : > { %562 = vst [vmem:[%s3686_s27 + $0x90] sm:$0xff] %v561_v18  ;;  %564 = vst [vmem:[%s3686_s27 + $0x98] sm:$0xff] %v563_v19  ;;  %v567_v21 = vld [vmem:[%s3681_s12 + $0x148] sm:$0xff]  ;;  %v569_v22 = vld [vmem:[%s3681_s12 + $0x150] sm:$0xff] }
  0x68   : > { %566 = vst [vmem:[%s3686_s27 + $0xa0] sm:$0xff] %v565_v20  ;;  %v571_v23 = vld [vmem:[%s3681_s12 + $0x158] sm:$0xff]  ;;  %568 = vst [vmem:[%s3686_s27 + $0xa8] sm:$0xff] %v567_v21  ;;  %v573_v24 = vld [vmem:[%s3681_s12 + $0x180] sm:$0xff] }
  0x69   : > { %570 = vst [vmem:[%s3686_s27 + $0xb0] sm:$0xff] %v569_v22  ;;  %572 = vst [vmem:[%s3686_s27 + $0xb8] sm:$0xff] %v571_v23  ;;  %v575_v25 = vld [vmem:[%s3681_s12 + $0x188] sm:$0xff]  ;;  %v577_v26 = vld [vmem:[%s3681_s12 + $0x190] sm:$0xff] }
  0x6a   : > { %574 = vst [vmem:[%s3686_s27 + $0xc0] sm:$0xff] %v573_v24  ;;  %576 = vst [vmem:[%s3686_s27 + $0xc8] sm:$0xff] %v575_v25  ;;  %v579_v27 = vld [vmem:[%s3681_s12 + $0x198] sm:$0xff]  ;;  %v581_v28 = vld [vmem:[%s3681_s12 + $0x1c0] sm:$0xff] }
  0x6b   : > { %578 = vst [vmem:[%s3686_s27 + $0xd0] sm:$0xff] %v577_v26  ;;  %v583_v29 = vld [vmem:[%s3681_s12 + $0x1c8] sm:$0xff]  ;;  %580 = vst [vmem:[%s3686_s27 + $0xd8] sm:$0xff] %v579_v27  ;;  %v585_v30 = vld [vmem:[%s3681_s12 + $0x1d0] sm:$0xff] }
  0x6c   : > { %582 = vst [vmem:[%s3686_s27 + $0xe0] sm:$0xff] %v581_v28  ;;  %584 = vst [vmem:[%s3686_s27 + $0xe8] sm:$0xff] %v583_v29  ;;  %v587_v31 = vld [vmem:[%s3681_s12 + $0x1d8] sm:$0xff]  ;;  %v589_v32 = vld [vmem:[%s3681_s12 + $0x200] sm:$0xff] }
  0x6d   : > { %586 = vst [vmem:[%s3686_s27 + $0xf0] sm:$0xff] %v585_v30  ;;  %588 = vst [vmem:[%s3686_s27 + $0xf8] sm:$0xff] %v587_v31  ;;  %v591_v33 = vld [vmem:[%s3681_s12 + $0x208] sm:$0xff]  ;;  %v593_v34 = vld [vmem:[%s3681_s12 + $0x210] sm:$0xff] }
  0x6e   : > { %590 = vst [vmem:[%s3686_s27 + $0x100] sm:$0xff] %v589_v32  ;;  %v595_v35 = vld [vmem:[%s3681_s12 + $0x218] sm:$0xff]  ;;  %592 = vst [vmem:[%s3686_s27 + $0x108] sm:$0xff] %v591_v33  ;;  %v597_v36 = vld [vmem:[%s3681_s12 + $0x240] sm:$0xff] }
  0x6f   : > { %594 = vst [vmem:[%s3686_s27 + $0x110] sm:$0xff] %v593_v34  ;;  %596 = vst [vmem:[%s3686_s27 + $0x118] sm:$0xff] %v595_v35  ;;  %v599_v37 = vld [vmem:[%s3681_s12 + $0x248] sm:$0xff]  ;;  %v601_v38 = vld [vmem:[%s3681_s12 + $0x250] sm:$0xff] }
  0x70   : > { %598 = vst [vmem:[%s3686_s27 + $0x120] sm:$0xff] %v597_v36  ;;  %600 = vst [vmem:[%s3686_s27 + $0x128] sm:$0xff] %v599_v37  ;;  %v603_v39 = vld [vmem:[%s3681_s12 + $0x258] sm:$0xff]  ;;  %v605_v40 = vld [vmem:[%s3681_s12 + $0x280] sm:$0xff] }
  0x71   : > { %602 = vst [vmem:[%s3686_s27 + $0x130] sm:$0xff] %v601_v38  ;;  %v607_v41 = vld [vmem:[%s3681_s12 + $0x288] sm:$0xff]  ;;  %604 = vst [vmem:[%s3686_s27 + $0x138] sm:$0xff] %v603_v39  ;;  %v609_v42 = vld [vmem:[%s3681_s12 + $0x290] sm:$0xff] }
  0x72   : > { %606 = vst [vmem:[%s3686_s27 + $0x140] sm:$0xff] %v605_v40  ;;  %608 = vst [vmem:[%s3686_s27 + $0x148] sm:$0xff] %v607_v41  ;;  %v611_v43 = vld [vmem:[%s3681_s12 + $0x298] sm:$0xff]  ;;  %v613_v44 = vld [vmem:[%s3681_s12 + $0x2c0] sm:$0xff] }
  0x73   : > { %610 = vst [vmem:[%s3686_s27 + $0x150] sm:$0xff] %v609_v42  ;;  %612 = vst [vmem:[%s3686_s27 + $0x158] sm:$0xff] %v611_v43  ;;  %v615_v45 = vld [vmem:[%s3681_s12 + $0x2c8] sm:$0xff]  ;;  %v617_v46 = vld [vmem:[%s3681_s12 + $0x2d0] sm:$0xff] }
  0x74   : > { %614 = vst [vmem:[%s3686_s27 + $0x160] sm:$0xff] %v613_v44  ;;  %v619_v47 = vld [vmem:[%s3681_s12 + $0x2d8] sm:$0xff]  ;;  %616 = vst [vmem:[%s3686_s27 + $0x168] sm:$0xff] %v615_v45  ;;  %v621_v48 = vld [vmem:[%s3681_s12 + $0x300] sm:$0xff] }
  0x75   : > { %618 = vst [vmem:[%s3686_s27 + $0x170] sm:$0xff] %v617_v46  ;;  %620 = vst [vmem:[%s3686_s27 + $0x178] sm:$0xff] %v619_v47  ;;  %v623_v49 = vld [vmem:[%s3681_s12 + $0x308] sm:$0xff]  ;;  %v625_v50 = vld [vmem:[%s3681_s12 + $0x310] sm:$0xff] }
  0x76   : > { %622 = vst [vmem:[%s3686_s27 + $0x180] sm:$0xff] %v621_v48  ;;  %624 = vst [vmem:[%s3686_s27 + $0x188] sm:$0xff] %v623_v49  ;;  %v627_v51 = vld [vmem:[%s3681_s12 + $0x318] sm:$0xff]  ;;  %v629_v52 = vld [vmem:[%s3681_s12 + $0x340] sm:$0xff] }
  0x77   : > { %626 = vst [vmem:[%s3686_s27 + $0x190] sm:$0xff] %v625_v50  ;;  %v631_v53 = vld [vmem:[%s3681_s12 + $0x348] sm:$0xff]  ;;  %628 = vst [vmem:[%s3686_s27 + $0x198] sm:$0xff] %v627_v51  ;;  %v633_v54 = vld [vmem:[%s3681_s12 + $0x350] sm:$0xff] }
  0x78   : > { %630 = vst [vmem:[%s3686_s27 + $0x1a0] sm:$0xff] %v629_v52  ;;  %632 = vst [vmem:[%s3686_s27 + $0x1a8] sm:$0xff] %v631_v53  ;;  %v635_v55 = vld [vmem:[%s3681_s12 + $0x358] sm:$0xff]  ;;  %v637_v56 = vld [vmem:[%s3681_s12 + $0x380] sm:$0xff] }
  0x79   : > { %634 = vst [vmem:[%s3686_s27 + $0x1b0] sm:$0xff] %v633_v54  ;;  %636 = vst [vmem:[%s3686_s27 + $0x1b8] sm:$0xff] %v635_v55  ;;  %v639_v57 = vld [vmem:[%s3681_s12 + $0x388] sm:$0xff]  ;;  %v641_v58 = vld [vmem:[%s3681_s12 + $0x390] sm:$0xff] }
  0x7a   : > { %638 = vst [vmem:[%s3686_s27 + $0x1c0] sm:$0xff] %v637_v56  ;;  %v643_v59 = vld [vmem:[%s3681_s12 + $0x398] sm:$0xff]  ;;  %640 = vst [vmem:[%s3686_s27 + $0x1c8] sm:$0xff] %v639_v57  ;;  %v645_v60 = vld [vmem:[%s3681_s12 + $0x3c0] sm:$0xff] }
  0x7b   : > { %642 = vst [vmem:[%s3686_s27 + $0x1d0] sm:$0xff] %v641_v58  ;;  %644 = vst [vmem:[%s3686_s27 + $0x1d8] sm:$0xff] %v643_v59  ;;  %v647_v61 = vld [vmem:[%s3681_s12 + $0x3c8] sm:$0xff]  ;;  %v649_v62 = vld [vmem:[%s3681_s12 + $0x3d0] sm:$0xff] }
  0x7c   : > { %646 = vst [vmem:[%s3686_s27 + $0x1e0] sm:$0xff] %v645_v60  ;;  %648 = vst [vmem:[%s3686_s27 + $0x1e8] sm:$0xff] %v647_v61  ;;  %v651_v63 = vld [vmem:[%s3681_s12 + $0x3d8] sm:$0xff]  ;;  %v653_v0 = vld [vmem:[%s3681_s12 + $0x400] sm:$0xff] }
  0x7d   : > { %650 = vst [vmem:[%s3686_s27 + $0x1f0] sm:$0xff] %v649_v62  ;;  %v655_v1 = vld [vmem:[%s3681_s12 + $0x408] sm:$0xff]  ;;  %652 = vst [vmem:[%s3686_s27 + $0x1f8] sm:$0xff] %v651_v63  ;;  %v657_v2 = vld [vmem:[%s3681_s12 + $0x410] sm:$0xff] }
  0x7e   : > { %654 = vst [vmem:[%s3686_s27 + $0x200] sm:$0xff] %v653_v0  ;;  %656 = vst [vmem:[%s3686_s27 + $0x208] sm:$0xff] %v655_v1  ;;  %v659_v3 = vld [vmem:[%s3681_s12 + $0x418] sm:$0xff]  ;;  %v661_v4 = vld [vmem:[%s3681_s12 + $0x440] sm:$0xff] }
  0x7f   : > { %658 = vst [vmem:[%s3686_s27 + $0x210] sm:$0xff] %v657_v2  ;;  %660 = vst [vmem:[%s3686_s27 + $0x218] sm:$0xff] %v659_v3  ;;  %v663_v5 = vld [vmem:[%s3681_s12 + $0x448] sm:$0xff]  ;;  %v665_v6 = vld [vmem:[%s3681_s12 + $0x450] sm:$0xff] }
  0x80   : > { %662 = vst [vmem:[%s3686_s27 + $0x220] sm:$0xff] %v661_v4  ;;  %v667_v7 = vld [vmem:[%s3681_s12 + $0x458] sm:$0xff]  ;;  %664 = vst [vmem:[%s3686_s27 + $0x228] sm:$0xff] %v663_v5  ;;  %v669_v8 = vld [vmem:[%s3681_s12 + $0x480] sm:$0xff] }
  0x81   : > { %666 = vst [vmem:[%s3686_s27 + $0x230] sm:$0xff] %v665_v6  ;;  %668 = vst [vmem:[%s3686_s27 + $0x238] sm:$0xff] %v667_v7  ;;  %v671_v9 = vld [vmem:[%s3681_s12 + $0x488] sm:$0xff]  ;;  %v673_v10 = vld [vmem:[%s3681_s12 + $0x490] sm:$0xff] }
  0x82   : > { %670 = vst [vmem:[%s3686_s27 + $0x240] sm:$0xff] %v669_v8  ;;  %672 = vst [vmem:[%s3686_s27 + $0x248] sm:$0xff] %v671_v9  ;;  %v675_v11 = vld [vmem:[%s3681_s12 + $0x498] sm:$0xff]  ;;  %v677_v12 = vld [vmem:[%s3681_s12 + $0x4c0] sm:$0xff] }
  0x83   : > { %674 = vst [vmem:[%s3686_s27 + $0x250] sm:$0xff] %v673_v10  ;;  %v679_v13 = vld [vmem:[%s3681_s12 + $0x4c8] sm:$0xff]  ;;  %676 = vst [vmem:[%s3686_s27 + $0x258] sm:$0xff] %v675_v11  ;;  %v681_v14 = vld [vmem:[%s3681_s12 + $0x4d0] sm:$0xff] }
  0x84   : > { %678 = vst [vmem:[%s3686_s27 + $0x260] sm:$0xff] %v677_v12  ;;  %680 = vst [vmem:[%s3686_s27 + $0x268] sm:$0xff] %v679_v13  ;;  %v683_v15 = vld [vmem:[%s3681_s12 + $0x4d8] sm:$0xff]  ;;  %v685_v16 = vld [vmem:[%s3681_s12 + $0x500] sm:$0xff] }
  0x85   : > { %682 = vst [vmem:[%s3686_s27 + $0x270] sm:$0xff] %v681_v14  ;;  %684 = vst [vmem:[%s3686_s27 + $0x278] sm:$0xff] %v683_v15  ;;  %v687_v17 = vld [vmem:[%s3681_s12 + $0x508] sm:$0xff]  ;;  %v689_v18 = vld [vmem:[%s3681_s12 + $0x510] sm:$0xff] }
  0x86   : > { %686 = vst [vmem:[%s3686_s27 + $0x280] sm:$0xff] %v685_v16  ;;  %v691_v19 = vld [vmem:[%s3681_s12 + $0x518] sm:$0xff]  ;;  %688 = vst [vmem:[%s3686_s27 + $0x288] sm:$0xff] %v687_v17  ;;  %v693_v20 = vld [vmem:[%s3681_s12 + $0x540] sm:$0xff] }
  0x87   : > { %690 = vst [vmem:[%s3686_s27 + $0x290] sm:$0xff] %v689_v18  ;;  %692 = vst [vmem:[%s3686_s27 + $0x298] sm:$0xff] %v691_v19  ;;  %v695_v21 = vld [vmem:[%s3681_s12 + $0x548] sm:$0xff]  ;;  %v697_v22 = vld [vmem:[%s3681_s12 + $0x550] sm:$0xff] }
  0x88   : > { %694 = vst [vmem:[%s3686_s27 + $0x2a0] sm:$0xff] %v693_v20  ;;  %696 = vst [vmem:[%s3686_s27 + $0x2a8] sm:$0xff] %v695_v21  ;;  %v699_v23 = vld [vmem:[%s3681_s12 + $0x558] sm:$0xff]  ;;  %v701_v24 = vld [vmem:[%s3681_s12 + $0x580] sm:$0xff] }
  0x89   : > { %698 = vst [vmem:[%s3686_s27 + $0x2b0] sm:$0xff] %v697_v22  ;;  %v703_v25 = vld [vmem:[%s3681_s12 + $0x588] sm:$0xff]  ;;  %700 = vst [vmem:[%s3686_s27 + $0x2b8] sm:$0xff] %v699_v23  ;;  %v705_v26 = vld [vmem:[%s3681_s12 + $0x590] sm:$0xff] }
  0x8a   : > { %702 = vst [vmem:[%s3686_s27 + $0x2c0] sm:$0xff] %v701_v24  ;;  %704 = vst [vmem:[%s3686_s27 + $0x2c8] sm:$0xff] %v703_v25  ;;  %v707_v27 = vld [vmem:[%s3681_s12 + $0x598] sm:$0xff]  ;;  %v709_v28 = vld [vmem:[%s3681_s12 + $0x5c0] sm:$0xff] }
  0x8b   : > { %706 = vst [vmem:[%s3686_s27 + $0x2d0] sm:$0xff] %v705_v26  ;;  %708 = vst [vmem:[%s3686_s27 + $0x2d8] sm:$0xff] %v707_v27  ;;  %v711_v29 = vld [vmem:[%s3681_s12 + $0x5c8] sm:$0xff]  ;;  %v713_v30 = vld [vmem:[%s3681_s12 + $0x5d0] sm:$0xff] }
  0x8c   : > { %710 = vst [vmem:[%s3686_s27 + $0x2e0] sm:$0xff] %v709_v28  ;;  %v715_v31 = vld [vmem:[%s3681_s12 + $0x5d8] sm:$0xff]  ;;  %712 = vst [vmem:[%s3686_s27 + $0x2e8] sm:$0xff] %v711_v29  ;;  %v717_v32 = vld [vmem:[%s3681_s12 + $0x600] sm:$0xff] }
  0x8d   : > { %714 = vst [vmem:[%s3686_s27 + $0x2f0] sm:$0xff] %v713_v30  ;;  %716 = vst [vmem:[%s3686_s27 + $0x2f8] sm:$0xff] %v715_v31  ;;  %v719_v33 = vld [vmem:[%s3681_s12 + $0x608] sm:$0xff]  ;;  %v721_v34 = vld [vmem:[%s3681_s12 + $0x610] sm:$0xff] }
  0x8e   : > { %718 = vst [vmem:[%s3686_s27 + $0x300] sm:$0xff] %v717_v32  ;;  %720 = vst [vmem:[%s3686_s27 + $0x308] sm:$0xff] %v719_v33  ;;  %v723_v35 = vld [vmem:[%s3681_s12 + $0x618] sm:$0xff]  ;;  %v725_v36 = vld [vmem:[%s3681_s12 + $0x640] sm:$0xff] }
  0x8f   : > { %722 = vst [vmem:[%s3686_s27 + $0x310] sm:$0xff] %v721_v34  ;;  %v727_v37 = vld [vmem:[%s3681_s12 + $0x648] sm:$0xff]  ;;  %724 = vst [vmem:[%s3686_s27 + $0x318] sm:$0xff] %v723_v35  ;;  %v729_v38 = vld [vmem:[%s3681_s12 + $0x650] sm:$0xff] }
  0x90   : > { %726 = vst [vmem:[%s3686_s27 + $0x320] sm:$0xff] %v725_v36  ;;  %728 = vst [vmem:[%s3686_s27 + $0x328] sm:$0xff] %v727_v37  ;;  %v731_v39 = vld [vmem:[%s3681_s12 + $0x658] sm:$0xff]  ;;  %v733_v40 = vld [vmem:[%s3681_s12 + $0x680] sm:$0xff] }
  0x91   : > { %730 = vst [vmem:[%s3686_s27 + $0x330] sm:$0xff] %v729_v38  ;;  %732 = vst [vmem:[%s3686_s27 + $0x338] sm:$0xff] %v731_v39  ;;  %v735_v41 = vld [vmem:[%s3681_s12 + $0x688] sm:$0xff]  ;;  %v737_v42 = vld [vmem:[%s3681_s12 + $0x690] sm:$0xff] }
  0x92   : > { %734 = vst [vmem:[%s3686_s27 + $0x340] sm:$0xff] %v733_v40  ;;  %v739_v43 = vld [vmem:[%s3681_s12 + $0x698] sm:$0xff]  ;;  %736 = vst [vmem:[%s3686_s27 + $0x348] sm:$0xff] %v735_v41  ;;  %v741_v44 = vld [vmem:[%s3681_s12 + $0x6c0] sm:$0xff] }
  0x93   : > { %738 = vst [vmem:[%s3686_s27 + $0x350] sm:$0xff] %v737_v42  ;;  %740 = vst [vmem:[%s3686_s27 + $0x358] sm:$0xff] %v739_v43  ;;  %v743_v45 = vld [vmem:[%s3681_s12 + $0x6c8] sm:$0xff]  ;;  %v745_v46 = vld [vmem:[%s3681_s12 + $0x6d0] sm:$0xff] }
  0x94   : > { %742 = vst [vmem:[%s3686_s27 + $0x360] sm:$0xff] %v741_v44  ;;  %744 = vst [vmem:[%s3686_s27 + $0x368] sm:$0xff] %v743_v45  ;;  %v747_v47 = vld [vmem:[%s3681_s12 + $0x6d8] sm:$0xff]  ;;  %v749_v48 = vld [vmem:[%s3681_s12 + $0x700] sm:$0xff] }
  0x95   : > { %746 = vst [vmem:[%s3686_s27 + $0x370] sm:$0xff] %v745_v46  ;;  %v751_v49 = vld [vmem:[%s3681_s12 + $0x708] sm:$0xff]  ;;  %748 = vst [vmem:[%s3686_s27 + $0x378] sm:$0xff] %v747_v47  ;;  %v753_v50 = vld [vmem:[%s3681_s12 + $0x710] sm:$0xff] }
  0x96   : > { %750 = vst [vmem:[%s3686_s27 + $0x380] sm:$0xff] %v749_v48  ;;  %752 = vst [vmem:[%s3686_s27 + $0x388] sm:$0xff] %v751_v49  ;;  %v755_v51 = vld [vmem:[%s3681_s12 + $0x718] sm:$0xff]  ;;  %v757_v52 = vld [vmem:[%s3681_s12 + $0x740] sm:$0xff] }
  0x97   : > { %754 = vst [vmem:[%s3686_s27 + $0x390] sm:$0xff] %v753_v50  ;;  %756 = vst [vmem:[%s3686_s27 + $0x398] sm:$0xff] %v755_v51  ;;  %v759_v53 = vld [vmem:[%s3681_s12 + $0x748] sm:$0xff]  ;;  %v761_v54 = vld [vmem:[%s3681_s12 + $0x750] sm:$0xff] }
  0x98   : > { %758 = vst [vmem:[%s3686_s27 + $0x3a0] sm:$0xff] %v757_v52  ;;  %v763_v55 = vld [vmem:[%s3681_s12 + $0x758] sm:$0xff]  ;;  %760 = vst [vmem:[%s3686_s27 + $0x3a8] sm:$0xff] %v759_v53  ;;  %v765_v56 = vld [vmem:[%s3681_s12 + $0x780] sm:$0xff] }
  0x99   : > { %762 = vst [vmem:[%s3686_s27 + $0x3b0] sm:$0xff] %v761_v54  ;;  %764 = vst [vmem:[%s3686_s27 + $0x3b8] sm:$0xff] %v763_v55  ;;  %v767_v57 = vld [vmem:[%s3681_s12 + $0x788] sm:$0xff]  ;;  %v769_v58 = vld [vmem:[%s3681_s12 + $0x790] sm:$0xff] }
  0x9a   : > { %766 = vst [vmem:[%s3686_s27 + $0x3c0] sm:$0xff] %v765_v56  ;;  %768 = vst [vmem:[%s3686_s27 + $0x3c8] sm:$0xff] %v767_v57  ;;  %v771_v59 = vld [vmem:[%s3681_s12 + $0x798] sm:$0xff]  ;;  %v773_v60 = vld [vmem:[%s3681_s12 + $0x7c0] sm:$0xff] }
  0x9b   : > { %770 = vst [vmem:[%s3686_s27 + $0x3d0] sm:$0xff] %v769_v58  ;;  %v775_v61 = vld [vmem:[%s3681_s12 + $0x7c8] sm:$0xff]  ;;  %772 = vst [vmem:[%s3686_s27 + $0x3d8] sm:$0xff] %v771_v59  ;;  %v777_v62 = vld [vmem:[%s3681_s12 + $0x7d0] sm:$0xff] }
  0x9c   : > { %774 = vst [vmem:[%s3686_s27 + $0x3e0] sm:$0xff] %v773_v60  ;;  %776 = vst [vmem:[%s3686_s27 + $0x3e8] sm:$0xff] %v775_v61  ;;  %v779_v63 = vld [vmem:[%s3681_s12 + $0x7d8] sm:$0xff] }
  0x9d   : > { %778 = vst [vmem:[%s3686_s27 + $0x3f0] sm:$0xff] %v777_v62  ;;  %780 = vst [vmem:[%s3686_s27 + $0x3f8] sm:$0xff] %v779_v63 }
  0x9e PF: > { %p3041_p7 = scmp.ge.s32.totalorder %s3313_s24, 1  ;;  %p785_p8 = scmp.lt.s32.totalorder %s3313_s24, 5 }
  0xa0   : > { %p786_p9 = pnand %p3041_p7, %p785_p8 }
  0xa1   : > { %s792_s13 = sand.u32 (!%p786_p9), 1, %s3289_s18   ;;  %s3044_s14 = sshll.u32 (!%p786_p9), %s3297_s20, 2 }
  0xa2   : > { %789 = sbr.rel (%p786_p9) target bundleno = 833 (0x341), region = 74  ;;  %s3042_s15 = sshll.u32 (!%p786_p9), %s792_s13, 10 }
  0xa3   : > { %p847_p10 = scmp.lt.s32.totalorder (!%p786_p9), %s3301_s21, 1  ;;  %p849_p11 = scmp.lt.s32.totalorder (!%p786_p9), %s3044_s14, 7 }
  0xa4   : > { %s3966_s27 = scalar_lea.vmem (!%p786_p9), [#allocation4], %s3042_s15  ;;  %p3050_p12 = scmp.ne.s32.totalorder (!%p786_p9), %s3297_s20, 0 }
  0xa7   : > { %s5793_s21 = smov (!%p847_p10, %s3301_s21), 1  ;;  %s5795_s14 = smov (!%p849_p11, %s3044_s14), 7 }
  0xa8   : > { %s3045_s16 = sshll.u32 %s5793_s21, 3  ;;  %s3964_s21 = scalar_lea.vmem [#allocation3], %s3042_s15 }
  0xa9   : > { %s3950_s29 = scalar_lea.vmem %s5598_s5, %s3045_s16  ;;  %s3952_s30 = sadd.s32 %s3045_s16, %s5795_s14 }
  0xaa   : > { %s3046_s6 = sshll.u32 %s3952_s30, 2  ;;  %s865_s18 = scalar_lea.vmem %s5597_s4, %s3952_s30 }
  0xab   : > { %s3962_s12 = scalar_lea.vmem %s5593_s0, %s3046_s6  ;;  %874 = sbr.rel (%p3050_p12) target bundleno = 179 (0xb3), region = 86 }
  0xb0   : > { %v3315_v0 = vmov 0.0  }
  0xb1   : > { %875 = vst [vmem:[#allocation2] sm:$0xff] %v3315_v0  ;;  %876 = vst [vmem:[#allocation2 + $0x8] sm:$0xff] %v3315_v0 }
  0xb2   : > { %877 = vst [vmem:[#allocation2 + $0x10] sm:$0xff] %v3315_v0  ;;  %878 = vst [vmem:[#allocation2 + $0x18] sm:$0xff] %v3315_v0 }
  0xb3 PF: > { %v1118_v1 = vld [vmem:[%s3966_s27 + $0x1e8] sm:$0xff]  ;;  %vm1313_vm0 = vcmask 1044480   ;;  %v3976_v6 = vld [vmem:[%s3966_s27 + $0x1f8] sm:$0xff]  ;;  %v1117_v11 = vld [vmem:[%s3966_s27 + $0x1e0] sm:$0xff]  ;;  %p3190_p13 = scmp.ne.s32.totalorder %s3297_s20, 1 }
  0xb4   : > { %v3971_v2 = vld [vmem:[%s3966_s27 + $0x208] sm:$0xff]  ;;  %v1432_v4 = vrot.slane %v1118_v1, 3  ;;  %v3979_v7 = vld [vmem:[%s3966_s27 + $0x218] sm:$0xff]  ;;  %v1436_v9 = vrot.slane %v3976_v6, 3  ;;  %v3986_v12 = vld [vmem:[%s3966_s27 + $0x200] sm:$0xff]  ;;  %v1430_v15 = vrot.slane %v1117_v11, 3 }
  0xb5   : > { %v990_v3 = vld [vmem:[%s3964_s21 + $0x1e8] sm:$0xff]  ;;  %v1440_v5 = vrot.slane %v3971_v2, 3  ;;  %v992_v8 = vld [vmem:[%s3964_s21 + $0x1f8] sm:$0xff]  ;;  %v1444_v10 = vrot.slane %v3979_v7, 3  ;;  %v989_v14 = vld [vmem:[%s3964_s21 + $0x1e0] sm:$0xff]  ;;  %v1438_v16 = vrot.slane %v3986_v12, 3 }
  0xb6   : > { %v3994_v17 = vld [vmem:[%s3966_s27 + $0x1f0] sm:$0xff]  ;;  %v4006_v24 = vld [vmem:[%s3966_s27 + $0x1c8] sm:$0xff]  ;;  %v4024_v44 = vld [vmem:[%s3966_s27 + $0x1d8] sm:$0xff] }
  0xb7   : > { %v1441_v13 = vsel %vm1313_vm0, %v1432_v4, %v1440_v5  ;;  %v3997_v18 = vld [vmem:[%s3966_s27 + $0x210] sm:$0xff]  ;;  %v1445_v20 = vsel %vm1313_vm0, %v1436_v9, %v1444_v10  ;;  %v1434_v22 = vrot.slane %v3994_v17, 3  ;;  %v1439_v26 = vsel %vm1313_vm0, %v1430_v15, %v1438_v16  ;;  %v986_v39 = vld [vmem:[%s3964_s21 + $0x1c8] sm:$0xff]  ;;  %v4027_v45 = vld [vmem:[%s3966_s27 + $0x1c0] sm:$0xff] }
  0xb8   : > { %v1755_v19 = vsub.f32 %v990_v3, %v1441_v13  ;;  %v991_v21 = vld [vmem:[%s3964_s21 + $0x1f0] sm:$0xff]  ;;  %v1442_v23 = vrot.slane %v3997_v18, 3  ;;  %v1757_v25 = vsub.f32 %v992_v8, %v1445_v20  ;;  %v1424_v27 = vrot.slane %v4006_v24, 3  ;;  %v4039_v55 = vld [vmem:[%s3966_s27 + $0x1a8] sm:$0xff]  ;;  %v988_v0 = vld [vmem:[%s3964_s21 + $0x1d8] sm:$0xff] }
  0xb9   : > { %v1754_v30 = vsub.f32 %v989_v14, %v1439_v26  ;;  %v4036_v54 = vld [vmem:[%s3966_s27 + $0x1d0] sm:$0xff]  ;;  %v1428_v58 = vrot.slane %v4024_v44, 3  ;;  %v1422_v59 = vrot.slane %v4027_v45, 3  ;;  %v985_v1 = vld [vmem:[%s3964_s21 + $0x1c0] sm:$0xff]  ;;  %v982_v11 = vld [vmem:[%s3964_s21 + $0x1a8] sm:$0xff]  ;;  %v1416_v13 = vrot.slane %v4039_v55, 3 }
  0xba   : > { %v1883_v28 = vand.u32 2147483647, %v1755_v19  ;;  %v2139_v29 = vmul.f32 0.5, %v1755_v19  ;;  %v1443_v31 = vsel %vm1313_vm0, %v1434_v22, %v1442_v23  ;;  %v1885_v32 = vand.u32 2147483647, %v1757_v25  ;;  %v987_v6 = vld [vmem:[%s3964_s21 + $0x1d0] sm:$0xff] }
  0xbb   : > { %v2141_v33 = vmul.f32 0.5, %v1757_v25  ;;  %v1756_v34 = vsub.f32 %v991_v21, %v1443_v31  ;;  %v1433_v35 = vsel %vm1313_vm0, %v1424_v27, %v1432_v4  ;;  %v1882_v38 = vand.u32 2147483647, %v1754_v30  ;;  %v4060_v14 = vld [vmem:[%s3966_s27 + $0x1b8] sm:$0xff]  ;;  %v1109_v40 = vld [vmem:[%s3966_s27 + $0x1a0] sm:$0xff]  ;;  %v4088_v47 = vld [vmem:[%s3966_s27 + $0x1b0] sm:$0xff] }
  0xbc   : > { %vm2011_vm1 = vcmp.lt.f32.partialorder %v1883_v28, 1.0  ;;  %v2267_v36 = vmul.f32 %v2139_v29, %v1755_v19  ;;  %v3117_v37 = vadd.f32 -0.5, %v1883_v28  ;;  %vm4019_vm2 = vcmp.lt.f32.partialorder %v1885_v32, 1.0  ;;  %v4103_v56 = vld [vmem:[%s3966_s27 + $0x180] sm:$0xff] }
  0xbd   : > { %v2269_v41 = vmul.f32 %v2141_v33, %v1757_v25  ;;  %v3119_v42 = vadd.f32 -0.5, %v1885_v32  ;;  %v2138_v43 = vmul.f32 0.5, %v1754_v30  ;;  %vm4029_vm3 = vcmp.lt.f32.partialorder %v1882_v38, 1.0  ;;  %v3051_v12 = vld [vmem:[%s3962_s12 + $0x1] ss:$4 sm:$0xf] }
  0xbe   : > { %v2523_v46 = vsel %vm2011_vm1, %v2267_v36, %v3117_v37  ;;  %v3116_v48 = vadd.f32 -0.5, %v1882_v38  ;;  %v1884_v49 = vand.u32 2147483647, %v1756_v34  ;;  %v2140_v52 = vmul.f32 0.5, %v1756_v34 }
  0xbf   : > { %2609 = vmatprep.subr.mxu0 %v2523_v46  ;;  %v2525_v50 = vsel %vm4019_vm2, %v2269_v41, %v3119_v42  ;;  %v2266_v51 = vmul.f32 %v2138_v43, %v1754_v30  ;;  %v1751_v53 = vsub.f32 %v986_v39, %v1433_v35  ;;  %v1437_v3 = vsel %vm1313_vm0, %v1428_v58, %v1436_v9  ;;  %v984_v46 = vld [vmem:[%s3964_s21 + $0x1b8] sm:$0xff] }
  0xc0   : > { %2680 = vmatprep.subr.mxu1 %v2525_v50  ;;  %vm4041_vm4 = vcmp.lt.f32.partialorder %v1884_v49, 1.0  ;;  %v3118_v57 = vadd.f32 -0.5, %v1884_v49  ;;  %v2268_v61 = vmul.f32 %v2140_v52, %v1756_v34  ;;  %v1431_v4 = vsel %vm1313_vm0, %v1422_v59, %v1430_v15 }
  0xc1   : > { %v2522_v60 = vsel %vm4029_vm3, %v2266_v51, %v3116_v48  ;;  %v1879_v62 = vand.u32 2147483647, %v1751_v53  ;;  %v2135_v63 = vmul.f32 0.5, %v1751_v53  ;;  %v1426_v8 = vrot.slane %v4036_v54, 3  ;;  %v4091_v48 = vld [vmem:[%s3966_s27 + $0x188] sm:$0xff] }
  0xc2   : > { %2610 = vmatpush1.msra.mxu0 %v2522_v60  ;;  %v2524_v19 = vsel %vm4041_vm4, %v2268_v61, %v3118_v57  ;;  %v1753_v9 = vsub.f32 %v988_v0, %v1437_v3  ;;  %v1750_v24 = vsub.f32 %v985_v1, %v1431_v4  ;;  %v1425_v25 = vsel %vm1313_vm0, %v1416_v13, %v1424_v27  ;;  %v983_v3 = vld [vmem:[%s3964_s21 + $0x1b0] sm:$0xff] }
  0xc3   : > { %vm2007_vm5 = vcmp.lt.f32.partialorder %v1879_v62, 1.0  ;;  %v2263_v20 = vmul.f32 %v2135_v63, %v1751_v53  ;;  %v3113_v21 = vadd.f32 -0.5, %v1879_v62  ;;  %2681 = vmatpush1.msra.mxu1 %v2524_v19  ;;  %v1435_v15 = vsel %vm1313_vm0, %v1426_v8, %v1434_v22  ;;  %v4100_v53 = vld [vmem:[%s3966_s27 + $0x198] sm:$0xff]  ;;  %v981_v62 = vld [vmem:[%s3964_s21 + $0x1a0] sm:$0xff] }
  0xc4   : > { %v1752_v28 = vsub.f32 %v987_v6, %v1435_v15  ;;  %v1747_v29 = vsub.f32 %v982_v11, %v1425_v25  ;;  %v1420_v30 = vrot.slane %v4060_v14, 3  ;;  %v1881_v31 = vand.u32 2147483647, %v1753_v9  ;;  %v978_v15 = vld [vmem:[%s3964_s21 + $0x188] sm:$0xff] }
  0xc5   : > { %v2519_v26 = vsel %vm2007_vm5, %v2263_v20, %v3113_v21  ;;  %v2137_v32 = vmul.f32 0.5, %v1753_v9  ;;  %v1878_v33 = vand.u32 2147483647, %v1750_v24  ;;  %v2134_v17 = vmul.f32 0.5, %v1750_v24 }
  0xc6   : > { %2611 = vmatprep.subr.mxu0 %v2519_v26  ;;  %v1880_v34 = vand.u32 2147483647, %v1752_v28  ;;  %v2136_v22 = vmul.f32 0.5, %v1752_v28  ;;  %v1875_v35 = vand.u32 2147483647, %v1747_v29  ;;  %v2131_v36 = vmul.f32 0.5, %v1747_v29 }
  0xc7   : > { %vm4073_vm6 = vcmp.lt.f32.partialorder %v1881_v31, 1.0  ;;  %v2265_v37 = vmul.f32 %v2137_v32, %v1753_v9  ;;  %v3115_v38 = vadd.f32 -0.5, %v1881_v31  ;;  %vm4077_vm7 = vcmp.lt.f32.partialorder %v1878_v33, 1.0 }
  0xc8   : > { %v2262_v41 = vmul.f32 %v2134_v17, %v1750_v24  ;;  %v3112_v42 = vadd.f32 -0.5, %v1878_v33  ;;  %vm4082_vm8 = vcmp.lt.f32.partialorder %v1880_v34, 1.0  ;;  %v2264_v44 = vmul.f32 %v2136_v22, %v1752_v28 }
  0xc9   : > { %v2521_v49 = vsel %vm4073_vm6, %v2265_v37, %v3115_v38  ;;  %v3114_v50 = vadd.f32 -0.5, %v1880_v34  ;;  %vm4095_vm9 = vcmp.lt.f32.partialorder %v1875_v35, 1.0  ;;  %v2259_v52 = vmul.f32 %v2131_v36, %v1747_v29 }
  0xca   : > { %2682 = vmatprep.subr.mxu1 %v2521_v49  ;;  %v2518_v57 = vsel %vm4077_vm7, %v2262_v41, %v3112_v42  ;;  %v3109_v60 = vadd.f32 -0.5, %v1875_v35  ;;  %v1429_v61 = vsel %vm1313_vm0, %v1420_v30, %v1428_v58  ;;  %v1414_v63 = vrot.slane %v1109_v40, 3  ;;  %v4143_v35 = vld [vmem:[%s3966_s27 + $0x190] sm:$0xff]  ;;  %v4152_v49 = vld [vmem:[%s3966_s27 + $0x178] sm:$0xff] }
  0xcb   : > { %2612 = vmatpush1.msra.mxu0 %v2518_v57  ;;  %v2520_v0 = vsel %vm4082_vm8, %v2264_v44, %v3114_v50  ;;  %v1749_v1 = vsub.f32 %v984_v46, %v1429_v61  ;;  %v1418_v4 = vrot.slane %v4088_v47, 3  ;;  %v1408_v6 = vrot.slane %v4091_v48, 3  ;;  %v4149_v47 = vld [vmem:[%s3966_s27 + $0x168] sm:$0xff]  ;;  %v4218_v50 = vld [vmem:[%s3966_s27 + $0x140] sm:$0xff] }
  0xcc   : > { %2683 = vmatpush1.msra.mxu1 %v2520_v0  ;;  %v2515_v11 = vsel %vm4095_vm9, %v2259_v52, %v3109_v60  ;;  %v1423_v58 = vsel %vm1313_vm0, %v1414_v63, %v1422_v59  ;;  %v1412_v14 = vrot.slane %v4100_v53, 3  ;;  %v1406_v19 = vrot.slane %v4103_v56, 3  ;;  %v980_v59 = vld [vmem:[%s3964_s21 + $0x198] sm:$0xff]  ;;  %v979_v0 = vld [vmem:[%s3964_s21 + $0x190] sm:$0xff] }
  0xcd   : > { %2613 = vmatprep.subr.mxu0 %v2515_v11  ;;  %v1877_v20 = vand.u32 2147483647, %v1749_v1  ;;  %v2133_v21 = vmul.f32 0.5, %v1749_v1  ;;  %v1746_v9 = vsub.f32 %v981_v62, %v1423_v58  ;;  %v1427_v24 = vsel %vm1313_vm0, %v1418_v4, %v1426_v8  ;;  %v974_v58 = vld [vmem:[%s3964_s21 + $0x168] sm:$0xff] }
  0xce   : > { %v1748_v25 = vsub.f32 %v983_v3, %v1427_v24  ;;  %v1417_v45 = vsel %vm1313_vm0, %v1408_v6, %v1416_v13  ;;  %v1421_v26 = vsel %vm1313_vm0, %v1412_v14, %v1420_v30  ;;  %v1415_v54 = vsel %vm1313_vm0, %v1406_v19, %v1414_v63  ;;  %v977_v30 = vld [vmem:[%s3964_s21 + $0x180] sm:$0xff]  ;;  %v4176_v24 = vld [vmem:[%s3966_s27 + $0x170] sm:$0xff] }
  0xcf   : > { %vm2005_vm10 = vcmp.lt.f32.partialorder %v1877_v20, 1.0  ;;  %v2261_v8 = vmul.f32 %v2133_v21, %v1749_v1  ;;  %v3111_v28 = vadd.f32 -0.5, %v1877_v20  ;;  %v1874_v29 = vand.u32 2147483647, %v1746_v9  ;;  %v4164_v1 = vld [vmem:[%s3966_s27 + $0x160] sm:$0xff]  ;;  %v976_v21 = vld [vmem:[%s3964_s21 + $0x178] sm:$0xff] }
  0xd0   : > { %v2130_v55 = vmul.f32 0.5, %v1746_v9  ;;  %v1876_v31 = vand.u32 2147483647, %v1748_v25  ;;  %v2132_v32 = vmul.f32 0.5, %v1748_v25  ;;  %v1743_v33 = vsub.f32 %v978_v15, %v1417_v45 }
  0xd1   : > { %v2517_v13 = vsel %vm2005_vm10, %v2261_v8, %v3111_v28  ;;  %vm4137_vm11 = vcmp.lt.f32.partialorder %v1874_v29, 1.0  ;;  %v3108_v34 = vadd.f32 -0.5, %v1874_v29  ;;  %v1745_v22 = vsub.f32 %v980_v59, %v1421_v26  ;;  %v4181_v59 = vld [vmem:[%s3966_s27 + $0x148] sm:$0xff] }
  0xd2   : > { %2684 = vmatprep.subr.mxu1 %v2517_v13  ;;  %v2258_v36 = vmul.f32 %v2130_v55, %v1746_v9  ;;  %vm2004_vm12 = vcmp.lt.f32.partialorder %v1876_v31, 1.0  ;;  %v2260_v27 = vmul.f32 %v2132_v32, %v1748_v25  ;;  %v3110_v37 = vadd.f32 -0.5, %v1876_v31  ;;  %v973_v31 = vld [vmem:[%s3964_s21 + $0x160] sm:$0xff] }
  0xd3   : > { %v1871_v38 = vand.u32 2147483647, %v1743_v33  ;;  %v2127_v39 = vmul.f32 0.5, %v1743_v33  ;;  %v1873_v40 = vand.u32 2147483647, %v1745_v22  ;;  %v2129_v41 = vmul.f32 0.5, %v1745_v22 }
  0xd4   : > { %v2514_v42 = vsel %vm4137_vm11, %v2258_v36, %v3108_v34  ;;  %v2516_v43 = vsel %vm2004_vm12, %v2260_v27, %v3110_v37  ;;  %v1742_v44 = vsub.f32 %v977_v30, %v1415_v54  ;;  %v1410_v46 = vrot.slane %v4143_v35, 3 }
  0xd5   : > { %2614 = vmatpush1.msra.mxu0 %v2514_v42  ;;  %2685 = vmatpush1.msra.mxu1 %v2516_v43  ;;  %vm4154_vm13 = vcmp.lt.f32.partialorder %v1871_v38, 1.0  ;;  %v2255_v51 = vmul.f32 %v2127_v39, %v1743_v33  ;;  %v3105_v52 = vadd.f32 -0.5, %v1871_v38  ;;  %vm4158_vm14 = vcmp.lt.f32.partialorder %v1873_v40, 1.0  ;;  %v975_v39 = vld [vmem:[%s3964_s21 + $0x170] sm:$0xff] }
  0xd6   : > { %v2257_v60 = vmul.f32 %v2129_v41, %v1745_v22  ;;  %v3107_v61 = vadd.f32 -0.5, %v1873_v40  ;;  %v1870_v62 = vand.u32 2147483647, %v1742_v44  ;;  %v2126_v63 = vmul.f32 0.5, %v1742_v44 }
  0xd7   : > { %v2511_v3 = vsel %vm4154_vm13, %v2255_v51, %v3105_v52  ;;  %v1419_v11 = vsel %vm1313_vm0, %v1410_v46, %v1418_v4  ;;  %v1400_v20 = vrot.slane %v4149_v47, 3  ;;  %v1404_v9 = vrot.slane %v4152_v49, 3  ;;  %v1100_v47 = vld [vmem:[%s3966_s27 + $0x158] sm:$0xff] }
  0xd8   : > { %2615 = vmatprep.subr.mxu0 %v2511_v3  ;;  %v2513_v15 = vsel %vm4158_vm14, %v2257_v60, %v3107_v61  ;;  %vm1998_vm15 = vcmp.lt.f32.partialorder %v1870_v62, 1.0  ;;  %v2254_v25 = vmul.f32 %v2126_v63, %v1742_v44  ;;  %v3104_v45 = vadd.f32 -0.5, %v1870_v62  ;;  %v970_v44 = vld [vmem:[%s3964_s21 + $0x148] sm:$0xff]  ;;  %v4231_v61 = vld [vmem:[%s3966_s27 + $0x150] sm:$0xff] }
  0xd9   : > { %2686 = vmatprep.subr.mxu1 %v2513_v15  ;;  %v1744_v4 = vsub.f32 %v979_v0, %v1419_v11  ;;  %v1409_v26 = vsel %vm1313_vm0, %v1400_v20, %v1408_v6  ;;  %v1413_v54 = vsel %vm1313_vm0, %v1404_v9, %v1412_v14  ;;  %v1398_v8 = vrot.slane %v4164_v1, 3  ;;  %v4234_v62 = vld [vmem:[%s3966_s27 + $0x128] sm:$0xff] }
  0xda   : > { %v2510_v28 = vsel %vm1998_vm15, %v2254_v25, %v3104_v45  ;;  %v1739_v29 = vsub.f32 %v974_v58, %v1409_v26  ;;  %v1741_v55 = vsub.f32 %v976_v21, %v1413_v54  ;;  %v1402_v32 = vrot.slane %v4176_v24, 3  ;;  %v972_v58 = vld [vmem:[%s3964_s21 + $0x158] sm:$0xff] }
  0xdb   : > { %2616 = vmatpush1.msra.mxu0 %v2510_v28  ;;  %v1872_v33 = vand.u32 2147483647, %v1744_v4  ;;  %v2128_v48 = vmul.f32 0.5, %v1744_v4  ;;  %v1407_v53 = vsel %vm1313_vm0, %v1398_v8, %v1406_v19  ;;  %v1392_v6 = vrot.slane %v4181_v59, 3  ;;  %v1093_v59 = vld [vmem:[%s3966_s27 + $0x120] sm:$0xff] }
  0xdc   : > { %v1867_v14 = vand.u32 2147483647, %v1739_v29  ;;  %v2123_v13 = vmul.f32 0.5, %v1739_v29  ;;  %v1869_v17 = vand.u32 2147483647, %v1741_v55  ;;  %v2125_v34 = vmul.f32 0.5, %v1741_v55 }
  0xdd   : > { %vm4200_vm1 = vcmp.lt.f32.partialorder %v1872_v33, 1.0  ;;  %v2256_v30 = vmul.f32 %v2128_v48, %v1744_v4  ;;  %v3106_v36 = vadd.f32 -0.5, %v1872_v33  ;;  %v1738_v56 = vsub.f32 %v973_v31, %v1407_v53  ;;  %v4253_v53 = vld [vmem:[%s3966_s27 + $0x138] sm:$0xff] }
  0xde   : > { %vm4204_vm2 = vcmp.lt.f32.partialorder %v1867_v14, 1.0  ;;  %v2251_v19 = vmul.f32 %v2123_v13, %v1739_v29  ;;  %v3101_v37 = vadd.f32 -0.5, %v1867_v14  ;;  %vm4208_vm3 = vcmp.lt.f32.partialorder %v1869_v17, 1.0 }
  0xdf   : > { %v2512_v40 = vsel %vm4200_vm1, %v2256_v30, %v3106_v36  ;;  %v2253_v41 = vmul.f32 %v2125_v34, %v1741_v55  ;;  %v3103_v42 = vadd.f32 -0.5, %v1869_v17  ;;  %v1866_v43 = vand.u32 2147483647, %v1738_v56  ;;  %v969_v55 = vld [vmem:[%s3964_s21 + $0x140] sm:$0xff]  ;;  %v971_v36 = vld [vmem:[%s3964_s21 + $0x150] sm:$0xff] }
  0xe0   : > { %2687 = vmatpush1.msra.mxu1 %v2512_v40  ;;  %v2507_v51 = vsel %vm4204_vm2, %v2251_v19, %v3101_v37  ;;  %v2122_v52 = vmul.f32 0.5, %v1738_v56  ;;  %v1411_v57 = vsel %vm1313_vm0, %v1402_v32, %v1410_v46  ;;  %v1401_v60 = vsel %vm1313_vm0, %v1392_v6, %v1400_v20  ;;  %v968_v19 = vld [vmem:[%s3964_s21 + $0x138] sm:$0xff] }
  0xe1   : > { %2617 = vmatprep.subr.mxu0 %v2507_v51  ;;  %v2509_v63 = vsel %vm4208_vm3, %v2253_v41, %v3103_v42  ;;  %vm4238_vm4 = vcmp.lt.f32.partialorder %v1866_v43, 1.0  ;;  %v3100_v35 = vadd.f32 -0.5, %v1866_v43  ;;  %v1740_v3 = vsub.f32 %v975_v39, %v1411_v57 }
  0xe2   : > { %2688 = vmatprep.subr.mxu1 %v2509_v63  ;;  %v2250_v46 = vmul.f32 %v2122_v52, %v1738_v56  ;;  %v1735_v11 = vsub.f32 %v970_v44, %v1401_v60  ;;  %v1396_v20 = vrot.slane %v1100_v47, 3  ;;  %v1390_v21 = vrot.slane %v4218_v50, 3  ;;  %v966_v56 = vld [vmem:[%s3964_s21 + $0x128] sm:$0xff] }
  0xe3   : > { %v1868_v15 = vand.u32 2147483647, %v1740_v3  ;;  %v2124_v25 = vmul.f32 0.5, %v1740_v3  ;;  %v1394_v45 = vrot.slane %v4231_v61, 3  ;;  %v1384_v4 = vrot.slane %v4234_v62, 3 }
  0xe4   : > { %v2506_v26 = vsel %vm4238_vm4, %v2250_v46, %v3100_v35  ;;  %v1863_v54 = vand.u32 2147483647, %v1735_v11  ;;  %v2119_v28 = vmul.f32 0.5, %v1735_v11  ;;  %v1405_v29 = vsel %vm1313_vm0, %v1396_v20, %v1404_v9 }
  0xe5   : > { %2618 = vmatpush1.msra.mxu0 %v2506_v26  ;;  %vm1996_vm5 = vcmp.lt.f32.partialorder %v1868_v15, 1.0  ;;  %v2252_v31 = vmul.f32 %v2124_v25, %v1740_v3  ;;  %v3102_v33 = vadd.f32 -0.5, %v1868_v15  ;;  %v1737_v48 = vsub.f32 %v972_v58, %v1405_v29  ;;  %v965_v15 = vld [vmem:[%s3964_s21 + $0x120] sm:$0xff]  ;;  %v4296_v25 = vld [vmem:[%s3966_s27 + $0x130] sm:$0xff]  ;;  %v4299_v26 = vld [vmem:[%s3966_s27 + $0x108] sm:$0xff] }
  0xe6   : > { %vm4255_vm6 = vcmp.lt.f32.partialorder %v1863_v54, 1.0  ;;  %v2247_v13 = vmul.f32 %v2119_v28, %v1735_v11  ;;  %v3097_v17 = vadd.f32 -0.5, %v1863_v54  ;;  %v1399_v49 = vsel %vm1313_vm0, %v1390_v21, %v1398_v8 }
  0xe7   : > { %v2508_v9 = vsel %vm1996_vm5, %v2252_v31, %v3102_v33  ;;  %v1865_v34 = vand.u32 2147483647, %v1737_v48  ;;  %v2121_v22 = vmul.f32 0.5, %v1737_v48  ;;  %v1734_v30 = vsub.f32 %v969_v55, %v1399_v49  ;;  %v4310_v31 = vld [vmem:[%s3966_s27 + $0x118] sm:$0xff]  ;;  %v4313_v33 = vld [vmem:[%s3966_s27 + $0x100] sm:$0xff] }
  0xe8   : > { %2689 = vmatpush1.msra.mxu1 %v2508_v9  ;;  %v2503_v27 = vsel %vm4255_vm6, %v2247_v13, %v3097_v17  ;;  %v1403_v1 = vsel %vm1313_vm0, %v1394_v45, %v1402_v32  ;;  %v1393_v8 = vsel %vm1313_vm0, %v1384_v4, %v1392_v6  ;;  %v1388_v37 = vrot.slane %v4253_v53, 3 }
  0xe9   : > { %2619 = vmatprep.subr.mxu0 %v2503_v27  ;;  %vm1993_vm7 = vcmp.lt.f32.partialorder %v1865_v34, 1.0  ;;  %v2249_v38 = vmul.f32 %v2121_v22, %v1737_v48  ;;  %v3099_v39 = vadd.f32 -0.5, %v1865_v34  ;;  %v1862_v40 = vand.u32 2147483647, %v1734_v30  ;;  %v4316_v48 = vld [vmem:[%s3966_s27 + $0x110] sm:$0xff] }
  0xea   : > { %v2118_v41 = vmul.f32 0.5, %v1734_v30  ;;  %v1736_v24 = vsub.f32 %v971_v36, %v1403_v1  ;;  %v1731_v42 = vsub.f32 %v966_v56, %v1393_v8  ;;  %v1397_v32 = vsel %vm1313_vm0, %v1388_v37, %v1396_v20  ;;  %v967_v22 = vld [vmem:[%s3964_s21 + $0x130] sm:$0xff]  ;;  %v962_v36 = vld [vmem:[%s3964_s21 + $0x108] sm:$0xff]  ;;  %v964_v1 = vld [vmem:[%s3964_s21 + $0x118] sm:$0xff] }
  0xeb   : > { %v2505_v43 = vsel %vm1993_vm7, %v2249_v38, %v3099_v39  ;;  %vm4284_vm8 = vcmp.lt.f32.partialorder %v1862_v40, 1.0  ;;  %v3096_v6 = vadd.f32 -0.5, %v1862_v40  ;;  %v1733_v47 = vsub.f32 %v968_v19, %v1397_v32  ;;  %v961_v32 = vld [vmem:[%s3964_s21 + $0x100] sm:$0xff] }
  0xec   : > { %2690 = vmatprep.subr.mxu1 %v2505_v43  ;;  %v2246_v51 = vmul.f32 %v2118_v41, %v1734_v30  ;;  %v1864_v52 = vand.u32 2147483647, %v1736_v24  ;;  %v2120_v57 = vmul.f32 0.5, %v1736_v24  ;;  %v1859_v60 = vand.u32 2147483647, %v1731_v42 }
  0xed   : > { %v2115_v63 = vmul.f32 0.5, %v1731_v42  ;;  %v1861_v0 = vand.u32 2147483647, %v1733_v47  ;;  %v2117_v35 = vmul.f32 0.5, %v1733_v47  ;;  %v1382_v3 = vrot.slane %v1093_v59, 3 }
  0xee   : > { %v2502_v46 = vsel %vm4284_vm8, %v2246_v51, %v3096_v6  ;;  %vm4290_vm9 = vcmp.lt.f32.partialorder %v1864_v52, 1.0  ;;  %v2248_v58 = vmul.f32 %v2120_v57, %v1736_v24  ;;  %v3098_v20 = vadd.f32 -0.5, %v1864_v52 }
  0xef   : > { %2620 = vmatpush1.msra.mxu0 %v2502_v46  ;;  %vm4301_vm10 = vcmp.lt.f32.partialorder %v1859_v60, 1.0  ;;  %v2243_v28 = vmul.f32 %v2115_v63, %v1731_v42  ;;  %v3093_v29 = vadd.f32 -0.5, %v1859_v60  ;;  %vm4305_vm11 = vcmp.lt.f32.partialorder %v1861_v0, 1.0  ;;  %v954_v63 = vld [vmem:[%s3964_s21 + $0xc8] sm:$0xff] }
  0xf0   : > { %v2504_v14 = vsel %vm4290_vm9, %v2248_v58, %v3098_v20  ;;  %v2245_v13 = vmul.f32 %v2117_v35, %v1733_v47  ;;  %v3095_v17 = vadd.f32 -0.5, %v1861_v0  ;;  %v1391_v49 = vsel %vm1313_vm0, %v1382_v3, %v1390_v21  ;;  %v4359_v0 = vld [vmem:[%s3966_s27 + $0xe8] sm:$0xff]  ;;  %v4362_v35 = vld [vmem:[%s3966_s27 + $0xf8] sm:$0xff] }
  0xf1   : > { %2691 = vmatpush1.msra.mxu1 %v2504_v14  ;;  %v2499_v9 = vsel %vm4301_vm10, %v2243_v28, %v3093_v29  ;;  %v1730_v34 = vsub.f32 %v965_v15, %v1391_v49  ;;  %v1386_v30 = vrot.slane %v4296_v25, 3  ;;  %v1376_v56 = vrot.slane %v4299_v26, 3  ;;  %v963_v28 = vld [vmem:[%s3964_s21 + $0x110] sm:$0xff]  ;;  %v4372_v29 = vld [vmem:[%s3966_s27 + $0xe0] sm:$0xff]  ;;  %v958_v14 = vld [vmem:[%s3964_s21 + $0xe8] sm:$0xff] }
  0xf2   : > { %2621 = vmatprep.subr.mxu0 %v2499_v9  ;;  %v2501_v27 = vsel %vm4305_vm11, %v2245_v13, %v3095_v17  ;;  %v1380_v50 = vrot.slane %v4310_v31, 3  ;;  %v1374_v21 = vrot.slane %v4313_v33, 3  ;;  %v1378_v8 = vrot.slane %v4316_v48, 3  ;;  %v960_v17 = vld [vmem:[%s3964_s21 + $0xf8] sm:$0xff]  ;;  %v4384_v9 = vld [vmem:[%s3966_s27 + $0xf0] sm:$0xff] }
  0xf3   : > { %2692 = vmatprep.subr.mxu1 %v2501_v27  ;;  %v1858_v19 = vand.u32 2147483647, %v1730_v34  ;;  %v2114_v38 = vmul.f32 0.5, %v1730_v34  ;;  %v1395_v39 = vsel %vm1313_vm0, %v1386_v30, %v1394_v45  ;;  %v1385_v40 = vsel %vm1313_vm0, %v1376_v56, %v1384_v4  ;;  %v4389_v27 = vld [vmem:[%s3966_s27 + $0xc8] sm:$0xff] }
  0xf4   : > { %v1732_v41 = vsub.f32 %v967_v22, %v1395_v39  ;;  %v1727_v24 = vsub.f32 %v962_v36, %v1385_v40  ;;  %v1389_v42 = vsel %vm1313_vm0, %v1380_v50, %v1388_v37  ;;  %v1383_v59 = vsel %vm1313_vm0, %v1374_v21, %v1382_v3 }
  0xf5   : > { %vm1986_vm12 = vcmp.lt.f32.partialorder %v1858_v19, 1.0  ;;  %v2242_v61 = vmul.f32 %v2114_v38, %v1730_v34  ;;  %v3092_v45 = vadd.f32 -0.5, %v1858_v19  ;;  %v1729_v62 = vsub.f32 %v964_v1, %v1389_v42 }
  0xf6   : > { %v1860_v43 = vand.u32 2147483647, %v1732_v41  ;;  %v2116_v44 = vmul.f32 0.5, %v1732_v41  ;;  %v1855_v4 = vand.u32 2147483647, %v1727_v24  ;;  %v2111_v6 = vmul.f32 0.5, %v1727_v24 }
  0xf7   : > { %v2498_v47 = vsel %vm1986_vm12, %v2242_v61, %v3092_v45  ;;  %v1857_v51 = vand.u32 2147483647, %v1729_v62  ;;  %v2113_v53 = vmul.f32 0.5, %v1729_v62  ;;  %v1726_v52 = vsub.f32 %v961_v32, %v1383_v59 }
  0xf8   : > { %2622 = vmatpush1.msra.mxu0 %v2498_v47  ;;  %vm4350_vm13 = vcmp.lt.f32.partialorder %v1860_v43, 1.0  ;;  %v2244_v57 = vmul.f32 %v2116_v44, %v1732_v41  ;;  %v3094_v60 = vadd.f32 -0.5, %v1860_v43  ;;  %vm4354_vm14 = vcmp.lt.f32.partialorder %v1855_v4, 1.0 }
  0xf9   : > { %v2239_v3 = vmul.f32 %v2111_v6, %v1727_v24  ;;  %v3089_v46 = vadd.f32 -0.5, %v1855_v4  ;;  %vm4364_vm15 = vcmp.lt.f32.partialorder %v1857_v51, 1.0  ;;  %v2241_v58 = vmul.f32 %v2113_v53, %v1729_v62  ;;  %v957_v24 = vld [vmem:[%s3964_s21 + $0xe0] sm:$0xff]  ;;  %v959_v53 = vld [vmem:[%s3964_s21 + $0xf0] sm:$0xff] }
  0xfa   : > { %v2500_v20 = vsel %vm4350_vm13, %v2244_v57, %v3094_v60  ;;  %v3091_v15 = vadd.f32 -0.5, %v1857_v51  ;;  %v1854_v25 = vand.u32 2147483647, %v1726_v52  ;;  %v2110_v54 = vmul.f32 0.5, %v1726_v52 }
  0xfb   : > { %2693 = vmatpush1.msra.mxu1 %v2500_v20  ;;  %v2495_v55 = vsel %vm4354_vm14, %v2239_v3, %v3089_v46  ;;  %v1387_v31 = vsel %vm1313_vm0, %v1378_v8, %v1386_v30  ;;  %v1368_v13 = vrot.slane %v4359_v0, 3  ;;  %v1372_v49 = vrot.slane %v4362_v35, 3  ;;  %v1084_v0 = vld [vmem:[%s3966_s27 + $0xd8] sm:$0xff]  ;;  %v4424_v3 = vld [vmem:[%s3966_s27 + $0xc0] sm:$0xff] }
  0xfc   : > { %2623 = vmatprep.subr.mxu0 %v2495_v55  ;;  %v2497_v34 = vsel %vm4364_vm15, %v2241_v58, %v3091_v15  ;;  %vm1982_vm1 = vcmp.lt.f32.partialorder %v1854_v25, 1.0  ;;  %v2238_v22 = vmul.f32 %v2110_v54, %v1726_v52  ;;  %v3088_v36 = vadd.f32 -0.5, %v1854_v25  ;;  %v4437_v15 = vld [vmem:[%s3966_s27 + $0xd0] sm:$0xff]  ;;  %v4440_v25 = vld [vmem:[%s3966_s27 + $0xa8] sm:$0xff] }
  0xfd   : > { %2694 = vmatprep.subr.mxu1 %v2497_v34  ;;  %v1728_v30 = vsub.f32 %v963_v28, %v1387_v31  ;;  %v1377_v1 = vsel %vm1313_vm0, %v1368_v13, %v1376_v56  ;;  %v1381_v19 = vsel %vm1313_vm0, %v1372_v49, %v1380_v50  ;;  %v1366_v38 = vrot.slane %v4372_v29, 3 }
  0xfe   : > { %v2494_v39 = vsel %vm1982_vm1, %v2238_v22, %v3088_v36  ;;  %v1723_v40 = vsub.f32 %v958_v14, %v1377_v1  ;;  %v1725_v41 = vsub.f32 %v960_v17, %v1381_v19  ;;  %v1370_v42 = vrot.slane %v4384_v9, 3  ;;  %v956_v14 = vld [vmem:[%s3964_s21 + $0xd8] sm:$0xff] }
  0xff   : > { %2624 = vmatpush1.msra.mxu0 %v2494_v39  ;;  %v1856_v32 = vand.u32 2147483647, %v1728_v30  ;;  %v2112_v59 = vmul.f32 0.5, %v1728_v30  ;;  %v1375_v26 = vsel %vm1313_vm0, %v1366_v38, %v1374_v21  ;;  %v1360_v56 = vrot.slane %v4389_v27, 3  ;;  %v1077_v27 = vld [vmem:[%s3966_s27 + $0xa0] sm:$0xff] }
 0x100   : > { %v1851_v50 = vand.u32 2147483647, %v1723_v40  ;;  %v2107_v61 = vmul.f32 0.5, %v1723_v40  ;;  %v1853_v45 = vand.u32 2147483647, %v1725_v41  ;;  %v2109_v62 = vmul.f32 0.5, %v1725_v41 }
 0x101   : > { %vm4406_vm2 = vcmp.lt.f32.partialorder %v1856_v32, 1.0  ;;  %v2240_v44 = vmul.f32 %v2112_v59, %v1728_v30  ;;  %v3090_v4 = vadd.f32 -0.5, %v1856_v32  ;;  %v1722_v33 = vsub.f32 %v957_v24, %v1375_v26  ;;  %v4459_v26 = vld [vmem:[%s3966_s27 + $0xb8] sm:$0xff] }
 0x102   : > { %vm4410_vm3 = vcmp.lt.f32.partialorder %v1851_v50, 1.0  ;;  %v2235_v21 = vmul.f32 %v2107_v61, %v1723_v40  ;;  %v3085_v47 = vadd.f32 -0.5, %v1851_v50  ;;  %vm4414_vm4 = vcmp.lt.f32.partialorder %v1853_v45, 1.0 }
 0x103   : > { %v2496_v52 = vsel %vm4406_vm2, %v2240_v44, %v3090_v4  ;;  %v2237_v37 = vmul.f32 %v2109_v62, %v1725_v41  ;;  %v3087_v57 = vadd.f32 -0.5, %v1853_v45  ;;  %v1850_v60 = vand.u32 2147483647, %v1722_v33  ;;  %v953_v41 = vld [vmem:[%s3964_s21 + $0xc0] sm:$0xff]  ;;  %v955_v4 = vld [vmem:[%s3964_s21 + $0xd0] sm:$0xff] }
 0x104   : > { %2695 = vmatpush1.msra.mxu1 %v2496_v52  ;;  %v2491_v46 = vsel %vm4410_vm3, %v2235_v21, %v3085_v47  ;;  %v2106_v11 = vmul.f32 0.5, %v1722_v33  ;;  %v1379_v58 = vsel %vm1313_vm0, %v1370_v42, %v1378_v8  ;;  %v1369_v20 = vsel %vm1313_vm0, %v1360_v56, %v1368_v13  ;;  %v952_v21 = vld [vmem:[%s3964_s21 + $0xb8] sm:$0xff] }
 0x105   : > { %2625 = vmatprep.subr.mxu0 %v2491_v46  ;;  %v2493_v54 = vsel %vm4414_vm4, %v2237_v37, %v3087_v57  ;;  %vm4444_vm5 = vcmp.lt.f32.partialorder %v1850_v60, 1.0  ;;  %v3084_v48 = vadd.f32 -0.5, %v1850_v60  ;;  %v1724_v55 = vsub.f32 %v959_v53, %v1379_v58 }
 0x106   : > { %2696 = vmatprep.subr.mxu1 %v2493_v54  ;;  %v2234_v8 = vmul.f32 %v2106_v11, %v1722_v33  ;;  %v1719_v31 = vsub.f32 %v954_v63, %v1369_v20  ;;  %v1364_v13 = vrot.slane %v1084_v0, 3  ;;  %v1358_v17 = vrot.slane %v4424_v3, 3  ;;  %v950_v33 = vld [vmem:[%s3964_s21 + $0xa8] sm:$0xff] }
 0x107   : > { %v1852_v34 = vand.u32 2147483647, %v1724_v55  ;;  %v2108_v22 = vmul.f32 0.5, %v1724_v55  ;;  %v1362_v36 = vrot.slane %v4437_v15, 3  ;;  %v1352_v30 = vrot.slane %v4440_v25, 3 }
 0x108   : > { %v2490_v1 = vsel %vm4444_vm5, %v2234_v8, %v3084_v48  ;;  %v1847_v19 = vand.u32 2147483647, %v1719_v31  ;;  %v2103_v39 = vmul.f32 0.5, %v1719_v31  ;;  %v1373_v40 = vsel %vm1313_vm0, %v1364_v13, %v1372_v49 }
 0x109   : > { %2626 = vmatpush1.msra.mxu0 %v2490_v1  ;;  %vm1980_vm6 = vcmp.lt.f32.partialorder %v1852_v34, 1.0  ;;  %v2236_v24 = vmul.f32 %v2108_v22, %v1724_v55  ;;  %v3086_v32 = vadd.f32 -0.5, %v1852_v34  ;;  %v1721_v59 = vsub.f32 %v956_v14, %v1373_v40  ;;  %v949_v34 = vld [vmem:[%s3964_s21 + $0xa0] sm:$0xff]  ;;  %v4502_v22 = vld [vmem:[%s3966_s27 + $0xb0] sm:$0xff]  ;;  %v4505_v1 = vld [vmem:[%s3966_s27 + $0x88] sm:$0xff] }
 0x10a   : > { %vm4461_vm7 = vcmp.lt.f32.partialorder %v1847_v19, 1.0  ;;  %v2231_v61 = vmul.f32 %v2103_v39, %v1719_v31  ;;  %v3081_v45 = vadd.f32 -0.5, %v1847_v19  ;;  %v1367_v35 = vsel %vm1313_vm0, %v1358_v17, %v1366_v38 }
 0x10b   : > { %v2492_v49 = vsel %vm1980_vm6, %v2236_v24, %v3086_v32  ;;  %v1849_v62 = vand.u32 2147483647, %v1721_v59  ;;  %v2105_v43 = vmul.f32 0.5, %v1721_v59  ;;  %v1718_v44 = vsub.f32 %v953_v41, %v1367_v35  ;;  %v4516_v24 = vld [vmem:[%s3966_s27 + $0x98] sm:$0xff]  ;;  %v4519_v32 = vld [vmem:[%s3966_s27 + $0x80] sm:$0xff] }
 0x10c   : > { %2697 = vmatpush1.msra.mxu1 %v2492_v49  ;;  %v2487_v6 = vsel %vm4461_vm7, %v2231_v61, %v3081_v45  ;;  %v1371_v29 = vsel %vm1313_vm0, %v1362_v36, %v1370_v42  ;;  %v1361_v38 = vsel %vm1313_vm0, %v1352_v30, %v1360_v56  ;;  %v1356_v47 = vrot.slane %v4459_v26, 3 }
 0x10d   : > { %2627 = vmatprep.subr.mxu0 %v2487_v6  ;;  %vm1977_vm8 = vcmp.lt.f32.partialorder %v1849_v62, 1.0  ;;  %v2233_v51 = vmul.f32 %v2105_v43, %v1721_v59  ;;  %v3083_v53 = vadd.f32 -0.5, %v1849_v62  ;;  %v1846_v52 = vand.u32 2147483647, %v1718_v44  ;;  %v4522_v59 = vld [vmem:[%s3966_s27 + $0x90] sm:$0xff] }
 0x10e   : > { %v2102_v37 = vmul.f32 0.5, %v1718_v44  ;;  %v1720_v9 = vsub.f32 %v955_v4, %v1371_v29  ;;  %v1715_v57 = vsub.f32 %v950_v33, %v1361_v38  ;;  %v1365_v42 = vsel %vm1313_vm0, %v1356_v47, %v1364_v13  ;;  %v951_v43 = vld [vmem:[%s3964_s21 + $0xb0] sm:$0xff]  ;;  %v946_v4 = vld [vmem:[%s3964_s21 + $0x88] sm:$0xff]  ;;  %v948_v29 = vld [vmem:[%s3964_s21 + $0x98] sm:$0xff] }
 0x10f   : > { %v2489_v60 = vsel %vm1977_vm8, %v2233_v51, %v3083_v53  ;;  %vm4490_vm9 = vcmp.lt.f32.partialorder %v1846_v52, 1.0  ;;  %v3080_v56 = vadd.f32 -0.5, %v1846_v52  ;;  %v1717_v0 = vsub.f32 %v952_v21, %v1365_v42  ;;  %v945_v42 = vld [vmem:[%s3964_s21 + $0x80] sm:$0xff] }
 0x110   : > { %2698 = vmatprep.subr.mxu1 %v2489_v60  ;;  %v2230_v46 = vmul.f32 %v2102_v37, %v1718_v44  ;;  %v1848_v11 = vand.u32 2147483647, %v1720_v9  ;;  %v2104_v58 = vmul.f32 0.5, %v1720_v9  ;;  %v1843_v20 = vand.u32 2147483647, %v1715_v57 }
 0x111   : > { %v2099_v54 = vmul.f32 0.5, %v1715_v57  ;;  %v1845_v28 = vand.u32 2147483647, %v1717_v0  ;;  %v2101_v48 = vmul.f32 0.5, %v1717_v0  ;;  %v1350_v55 = vrot.slane %v1077_v27, 3 }
 0x112   : > { %v2486_v8 = vsel %vm4490_vm9, %v2230_v46, %v3080_v56  ;;  %vm4496_vm10 = vcmp.lt.f32.partialorder %v1848_v11, 1.0  ;;  %v2232_v14 = vmul.f32 %v2104_v58, %v1720_v9  ;;  %v3082_v13 = vadd.f32 -0.5, %v1848_v11 }
 0x113   : > { %2628 = vmatpush1.msra.mxu0 %v2486_v8  ;;  %vm4507_vm11 = vcmp.lt.f32.partialorder %v1843_v20, 1.0  ;;  %v2227_v39 = vmul.f32 %v2099_v54, %v1715_v57  ;;  %v3077_v40 = vadd.f32 -0.5, %v1843_v20  ;;  %vm4511_vm12 = vcmp.lt.f32.partialorder %v1845_v28, 1.0  ;;  %v938_v54 = vld [vmem:[%s3964_s21 + $0x48] sm:$0xff] }
 0x114   : > { %v2488_v50 = vsel %vm4496_vm10, %v2232_v14, %v3082_v13  ;;  %v2229_v61 = vmul.f32 %v2101_v48, %v1717_v0  ;;  %v3079_v45 = vadd.f32 -0.5, %v1845_v28  ;;  %v1359_v35 = vsel %vm1313_vm0, %v1350_v55, %v1358_v17  ;;  %v4565_v28 = vld [vmem:[%s3966_s27 + $0x68] sm:$0xff]  ;;  %v4568_v48 = vld [vmem:[%s3966_s27 + $0x78] sm:$0xff] }
 0x115   : > { %2699 = vmatpush1.msra.mxu1 %v2488_v50  ;;  %v2483_v49 = vsel %vm4507_vm11, %v2227_v39, %v3077_v40  ;;  %v1714_v62 = vsub.f32 %v949_v34, %v1359_v35  ;;  %v1354_v44 = vrot.slane %v4502_v22, 3  ;;  %v1344_v33 = vrot.slane %v4505_v1, 3  ;;  %v947_v39 = vld [vmem:[%s3964_s21 + $0x90] sm:$0xff]  ;;  %v4578_v40 = vld [vmem:[%s3966_s27 + $0x60] sm:$0xff]  ;;  %v942_v50 = vld [vmem:[%s3964_s21 + $0x68] sm:$0xff] }
 0x116   : > { %2629 = vmatprep.subr.mxu0 %v2483_v49  ;;  %v2485_v6 = vsel %vm4511_vm12, %v2229_v61, %v3079_v45  ;;  %v1348_v3 = vrot.slane %v4516_v24, 3  ;;  %v1342_v17 = vrot.slane %v4519_v32, 3  ;;  %v1346_v38 = vrot.slane %v4522_v59, 3  ;;  %v944_v45 = vld [vmem:[%s3964_s21 + $0x78] sm:$0xff]  ;;  %v4590_v49 = vld [vmem:[%s3966_s27 + $0x70] sm:$0xff] }
 0x117   : > { %2700 = vmatprep.subr.mxu1 %v2485_v6  ;;  %v1842_v21 = vand.u32 2147483647, %v1714_v62  ;;  %v2098_v51 = vmul.f32 0.5, %v1714_v62  ;;  %v1363_v53 = vsel %vm1313_vm0, %v1354_v44, %v1362_v36  ;;  %v1353_v52 = vsel %vm1313_vm0, %v1344_v33, %v1352_v30  ;;  %v4595_v6 = vld [vmem:[%s3966_s27 + $0x48] sm:$0xff] }
 0x118   : > { %v1716_v37 = vsub.f32 %v951_v43, %v1363_v53  ;;  %v1711_v9 = vsub.f32 %v946_v4, %v1353_v52  ;;  %v1357_v57 = vsel %vm1313_vm0, %v1348_v3, %v1356_v47  ;;  %v1351_v27 = vsel %vm1313_vm0, %v1342_v17, %v1350_v55 }
 0x119   : > { %vm1970_vm13 = vcmp.lt.f32.partialorder %v1842_v21, 1.0  ;;  %v2226_v15 = vmul.f32 %v2098_v51, %v1714_v62  ;;  %v3076_v36 = vadd.f32 -0.5, %v1842_v21  ;;  %v1713_v25 = vsub.f32 %v948_v29, %v1357_v57 }
 0x11a   : > { %v1844_v60 = vand.u32 2147483647, %v1716_v37  ;;  %v2100_v63 = vmul.f32 0.5, %v1716_v37  ;;  %v1839_v30 = vand.u32 2147483647, %v1711_v9  ;;  %v2095_v56 = vmul.f32 0.5, %v1711_v9 }
 0x11b   : > { %v2482_v0 = vsel %vm1970_vm13, %v2226_v15, %v3076_v36  ;;  %v1841_v46 = vand.u32 2147483647, %v1713_v25  ;;  %v2097_v26 = vmul.f32 0.5, %v1713_v25  ;;  %v1710_v11 = vsub.f32 %v945_v42, %v1351_v27 }
 0x11c   : > { %2630 = vmatpush1.msra.mxu0 %v2482_v0  ;;  %vm4556_vm14 = vcmp.lt.f32.partialorder %v1844_v60, 1.0  ;;  %v2228_v58 = vmul.f32 %v2100_v63, %v1716_v37  ;;  %v3078_v20 = vadd.f32 -0.5, %v1844_v60  ;;  %vm4560_vm15 = vcmp.lt.f32.partialorder %v1839_v30, 1.0 }
 0x11d   : > { %v2223_v55 = vmul.f32 %v2095_v56, %v1711_v9  ;;  %v3073_v8 = vadd.f32 -0.5, %v1839_v30  ;;  %vm4570_vm1 = vcmp.lt.f32.partialorder %v1841_v46, 1.0  ;;  %v2225_v14 = vmul.f32 %v2097_v26, %v1713_v25  ;;  %v941_v9 = vld [vmem:[%s3964_s21 + $0x60] sm:$0xff]  ;;  %v943_v26 = vld [vmem:[%s3964_s21 + $0x70] sm:$0xff] }
 0x11e   : > { %v2484_v13 = vsel %vm4556_vm14, %v2228_v58, %v3078_v20  ;;  %v3075_v34 = vadd.f32 -0.5, %v1841_v46  ;;  %v1838_v22 = vand.u32 2147483647, %v1710_v11  ;;  %v2094_v19 = vmul.f32 0.5, %v1710_v11 }
 0x11f   : > { %2701 = vmatpush1.msra.mxu1 %v2484_v13  ;;  %v2479_v41 = vsel %vm4560_vm15, %v2223_v55, %v3073_v8  ;;  %v1355_v24 = vsel %vm1313_vm0, %v1346_v38, %v1354_v44  ;;  %v1336_v61 = vrot.slane %v4565_v28, 3  ;;  %v1340_v35 = vrot.slane %v4568_v48, 3  ;;  %v1068_v28 = vld [vmem:[%s3966_s27 + $0x58] sm:$0xff]  ;;  %v4630_v55 = vld [vmem:[%s3966_s27 + $0x40] sm:$0xff] }
 0x120   : > { %2631 = vmatprep.subr.mxu0 %v2479_v41  ;;  %v2481_v62 = vsel %vm4570_vm1, %v2225_v14, %v3075_v34  ;;  %vm1966_vm2 = vcmp.lt.f32.partialorder %v1838_v22, 1.0  ;;  %v2222_v43 = vmul.f32 %v2094_v19, %v1710_v11  ;;  %v3072_v4 = vadd.f32 -0.5, %v1838_v22  ;;  %v4643_v34 = vld [vmem:[%s3966_s27 + $0x50] sm:$0xff]  ;;  %v4646_v22 = vld [vmem:[%s3966_s27 + $0x28] sm:$0xff] }
 0x121   : > { %2702 = vmatprep.subr.mxu1 %v2481_v62  ;;  %v1712_v44 = vsub.f32 %v947_v39, %v1355_v24  ;;  %v1345_v29 = vsel %vm1313_vm0, %v1336_v61, %v1344_v33  ;;  %v1349_v21 = vsel %vm1313_vm0, %v1340_v35, %v1348_v3  ;;  %v1334_v51 = vrot.slane %v4578_v40, 3  ;;  %v1058_v39 = vld [vmem:[%s3966_s27 + $0x8] sm:$0xf8] }
 0x122   : > { %v2478_v53 = vsel %vm1966_vm2, %v2222_v43, %v3072_v4  ;;  %v1707_v52 = vsub.f32 %v942_v50, %v1345_v29  ;;  %v1709_v37 = vsub.f32 %v944_v45, %v1349_v21  ;;  %v1338_v57 = vrot.slane %v4590_v49, 3  ;;  %v940_v50 = vld [vmem:[%s3964_s21 + $0x58] sm:$0xff] }
 0x123   : > { %2632 = vmatpush1.msra.mxu0 %v2478_v53  ;;  %v1840_v42 = vand.u32 2147483647, %v1712_v44  ;;  %v2096_v27 = vmul.f32 0.5, %v1712_v44  ;;  %v1343_v1 = vsel %vm1313_vm0, %v1334_v51, %v1342_v17  ;;  %v1328_v33 = vrot.slane %v4595_v6, 3 }
 0x124   : > { %v1835_v3 = vand.u32 2147483647, %v1707_v52  ;;  %v2091_v15 = vmul.f32 0.5, %v1707_v52  ;;  %v1837_v36 = vand.u32 2147483647, %v1709_v37  ;;  %v2093_v25 = vmul.f32 0.5, %v1709_v37 }
 0x125   : > { %vm4612_vm3 = vcmp.lt.f32.partialorder %v1840_v42, 1.0  ;;  %v2224_v63 = vmul.f32 %v2096_v27, %v1712_v44  ;;  %v3074_v30 = vadd.f32 -0.5, %v1840_v42  ;;  %v1706_v32 = vsub.f32 %v941_v9, %v1343_v1  ;;  %v4665_v1 = vld [vmem:[%s3966_s27 + $0x38] sm:$0xff] }
 0x126   : > { %vm4616_vm4 = vcmp.lt.f32.partialorder %v1835_v3, 1.0  ;;  %v2219_v17 = vmul.f32 %v2091_v15, %v1707_v52  ;;  %v3069_v0 = vadd.f32 -0.5, %v1835_v3  ;;  %vm4620_vm5 = vcmp.lt.f32.partialorder %v1837_v36, 1.0 }
 0x127   : > { %v2480_v11 = vsel %vm4612_vm3, %v2224_v63, %v3074_v30  ;;  %v2221_v47 = vmul.f32 %v2093_v25, %v1709_v37  ;;  %v3071_v58 = vadd.f32 -0.5, %v1837_v36  ;;  %v1834_v20 = vand.u32 2147483647, %v1706_v32  ;;  %v937_v37 = vld [vmem:[%s3964_s21 + $0x40] sm:$0xff]  ;;  %v939_v30 = vld [vmem:[%s3964_s21 + $0x50] sm:$0xff] }
 0x128   : > { %2703 = vmatpush1.msra.mxu1 %v2480_v11  ;;  %v2475_v8 = vsel %vm4616_vm4, %v2219_v17, %v3069_v0  ;;  %v2090_v31 = vmul.f32 0.5, %v1706_v32  ;;  %v1347_v14 = vsel %vm1313_vm0, %v1338_v57, %v1346_v38  ;;  %v1337_v13 = vsel %vm1313_vm0, %v1328_v33, %v1336_v61  ;;  %v936_v17 = vld [vmem:[%s3964_s21 + $0x38] sm:$0xff] }
 0x129   : > { %2633 = vmatprep.subr.mxu0 %v2475_v8  ;;  %v2477_v19 = vsel %vm4620_vm5, %v2221_v47, %v3071_v58  ;;  %vm4650_vm6 = vcmp.lt.f32.partialorder %v1834_v20, 1.0  ;;  %v3068_v59 = vadd.f32 -0.5, %v1834_v20  ;;  %v1708_v41 = vsub.f32 %v943_v26, %v1347_v14 }
 0x12a   : > { %2704 = vmatprep.subr.mxu1 %v2477_v19  ;;  %v2218_v38 = vmul.f32 %v2090_v31, %v1706_v32  ;;  %v1703_v24 = vsub.f32 %v938_v54, %v1337_v13  ;;  %v1332_v61 = vrot.slane %v1068_v28, 3  ;;  %v1326_v45 = vrot.slane %v4630_v55, 3  ;;  %v934_v32 = vld [vmem:[%s3964_s21 + $0x28] sm:$0xff]  ;;  %v933_v19 = vld [vmem:[%s3964_s21 + $0x20] sm:$0xff] }
 0x12b   : > { %v1836_v62 = vand.u32 2147483647, %v1708_v41  ;;  %v2092_v43 = vmul.f32 0.5, %v1708_v41  ;;  %v1330_v4 = vrot.slane %v4643_v34, 3  ;;  %v1318_v44 = vrot.slane %v4646_v22, 3 }
 0x12c   : > { %v2474_v29 = vsel %vm4650_vm6, %v2218_v38, %v3068_v59  ;;  %v1831_v21 = vand.u32 2147483647, %v1703_v24  ;;  %v2087_v53 = vmul.f32 0.5, %v1703_v24  ;;  %v1341_v52 = vsel %vm1313_vm0, %v1332_v61, %v1340_v35 }
 0x12d   : > { %2634 = vmatpush1.msra.mxu0 %v2474_v29  ;;  %vm1964_vm7 = vcmp.lt.f32.partialorder %v1836_v62, 1.0  ;;  %v2220_v9 = vmul.f32 %v2092_v43, %v1708_v41  ;;  %v3070_v42 = vadd.f32 -0.5, %v1836_v62  ;;  %v1705_v27 = vsub.f32 %v940_v50, %v1341_v52  ;;  %v4703_v50 = vld [vmem:[%s3966_s27 + $0x30] sm:$0xff]  ;;  %v1060_v29 = vld [vmem:[%s3966_s27 + $0x18] sm:$0xf8] }
 0x12e   : > { %vm4667_vm8 = vcmp.lt.f32.partialorder %v1831_v21, 1.0  ;;  %v2215_v15 = vmul.f32 %v2087_v53, %v1703_v24  ;;  %v3065_v36 = vadd.f32 -0.5, %v1831_v21  ;;  %v1335_v48 = vsel %vm1313_vm0, %v1326_v45, %v1334_v51  ;;  %v1057_v21 = vld [vmem:[%s3966_s27] sm:$0xf8] }
 0x12f   : > { %v2476_v35 = vsel %vm1964_vm7, %v2220_v9, %v3070_v42  ;;  %v1833_v25 = vand.u32 2147483647, %v1705_v27  ;;  %v2089_v60 = vmul.f32 0.5, %v1705_v27  ;;  %v1702_v63 = vsub.f32 %v937_v37, %v1335_v48  ;;  %v1059_v42 = vld [vmem:[%s3966_s27 + $0x10] sm:$0xf8] }
 0x130   : > { %2705 = vmatpush1.msra.mxu1 %v2476_v35  ;;  %v2471_v56 = vsel %vm4667_vm8, %v2215_v15, %v3065_v36  ;;  %v1339_v40 = vsel %vm1313_vm0, %v1330_v4, %v1338_v57  ;;  %v1329_v51 = vsel %vm1313_vm0, %v1318_v44, %v1328_v33  ;;  %v1324_v0 = vrot.slane %v4665_v1, 3  ;;  %v1061_v57 = vld [vmem:[%s3966_s27 + $0x20] sm:$0xff] }
 0x131   : > { %2635 = vmatprep.subr.mxu0 %v2471_v56  ;;  %vm1961_vm9 = vcmp.lt.f32.partialorder %v1833_v25, 1.0  ;;  %v2217_v46 = vmul.f32 %v2089_v60, %v1705_v27  ;;  %v3067_v26 = vadd.f32 -0.5, %v1833_v25  ;;  %v1830_v11 = vand.u32 2147483647, %v1702_v63  ;;  %v935_v25 = vld [vmem:[%s3964_s21 + $0x30] sm:$0xff]  ;;  %v932_v56 = vld [vmem:[%s3964_s21 + $0x18] sm:$0xff] }
 0x132   : > { %v2086_v49 = vmul.f32 0.5, %v1702_v63  ;;  %v1704_v47 = vsub.f32 %v939_v30, %v1339_v40  ;;  %v1699_v58 = vsub.f32 %v934_v32, %v1329_v51  ;;  %v1333_v6 = vsel %vm1313_vm0, %v1324_v0, %v1332_v61  ;;  %v4761_v53 = vld [vmem:[%s3966_s27 + $0x3e0] sm:$0x7f] }
 0x133   : > { %v2473_v33 = vsel %vm1961_vm9, %v2217_v46, %v3067_v26  ;;  %vm4696_vm10 = vcmp.lt.f32.partialorder %v1830_v11, 1.0  ;;  %v3064_v54 = vadd.f32 -0.5, %v1830_v11  ;;  %v1701_v28 = vsub.f32 %v936_v17, %v1333_v6 }
 0x134   : > { %2706 = vmatprep.subr.mxu1 %v2473_v33  ;;  %v2214_v8 = vmul.f32 %v2086_v49, %v1702_v63  ;;  %v1832_v31 = vand.u32 2147483647, %v1704_v47  ;;  %v2088_v14 = vmul.f32 0.5, %v1704_v47  ;;  %v1827_v13 = vand.u32 2147483647, %v1699_v58  ;;  %v930_v63 = vld [vmem:[%s3964_s21 + $0x8] sm:$0xff] }
 0x135   : > { %v2083_v59 = vmul.f32 0.5, %v1699_v58  ;;  %v1829_v41 = vand.u32 2147483647, %v1701_v28  ;;  %v2085_v38 = vmul.f32 0.5, %v1701_v28  ;;  %v1315_v24 = vrot.slane %v1061_v57, 3 }
 0x136   : > { %v2470_v61 = vsel %vm4696_vm10, %v2214_v8, %v3064_v54  ;;  %vm1960_vm11 = vcmp.lt.f32.partialorder %v1832_v31, 1.0  ;;  %v2216_v62 = vmul.f32 %v2088_v14, %v1704_v47  ;;  %v3066_v43 = vadd.f32 -0.5, %v1832_v31 }
 0x137   : > { %2636 = vmatpush1.msra.mxu0 %v2470_v61  ;;  %vm4709_vm12 = vcmp.lt.f32.partialorder %v1827_v13, 1.0  ;;  %v2211_v52 = vmul.f32 %v2083_v59, %v1699_v58  ;;  %v3061_v37 = vadd.f32 -0.5, %v1827_v13  ;;  %vm4713_vm13 = vcmp.lt.f32.partialorder %v1829_v41, 1.0  ;;  %v929_v58 = vld [vmem:[%s3964_s21] sm:$0xff]  ;;  %v4756_v61 = vld [vmem:[%s3966_s27 + $0x3f8] sm:$0x7f] }
 0x138   : > { %v2472_v27 = vsel %vm1960_vm11, %v2216_v62, %v3066_v43  ;;  %v2213_v3 = vmul.f32 %v2085_v38, %v1701_v28  ;;  %v3063_v15 = vadd.f32 -0.5, %v1829_v41  ;;  %v1327_v36 = vsel %vm1313_vm0, %v1315_v24, %v1326_v45 }
 0x139   : > { %2707 = vmatpush1.msra.mxu1 %v2472_v27  ;;  %v2467_v48 = vsel %vm4709_vm12, %v2211_v52, %v3061_v37  ;;  %v1698_v35 = vsub.f32 %v933_v19, %v1327_v36  ;;  %v1321_v60 = vrot.slane %v4703_v50, 3  ;;  %v1317_v30 = vrot.slane %v1058_v39, 3  ;;  %v931_v19 = vld [vmem:[%s3964_s21 + $0x10] sm:$0xff]  ;;  %v1182_v39 = vld [vmem:[%s3966_s27 + $0x3e8] sm:$0x7f] }
 0x13a   : > { %2637 = vmatprep.subr.mxu0 %v2467_v48  ;;  %v2469_v32 = vsel %vm4713_vm13, %v2213_v3, %v3063_v15  ;;  %v1323_v40 = vrot.slane %v1060_v29, 3  ;;  %v1314_v55 = vrot.slane %v1057_v21, 3  ;;  %v1320_v51 = vrot.slane %v1059_v42, 3  ;;  %v1054_v50 = vld [vmem:[%s3964_s21 + $0x3e8] sm:$0xf]  ;;  %v4773_v3 = vld [vmem:[%s3966_s27 + $0x3d8] sm:$0xff] }
 0x13b   : > { %2708 = vmatprep.subr.mxu1 %v2469_v32  ;;  %v1826_v45 = vand.u32 2147483647, %v1698_v35  ;;  %v2082_v17 = vmul.f32 0.5, %v1698_v35  ;;  %v1331_v46 = vsel %vm1313_vm0, %v1321_v60, %v1330_v4  ;;  %v1319_v26 = vsel %vm1313_vm0, %v1317_v30, %v1318_v44  ;;  %v4767_v42 = vld [vmem:[%s3966_s27 + $0x3f0] sm:$0x7f]  ;;  %v4770_v27 = vld [vmem:[%s3966_s27 + $0x3c8] sm:$0xff] }
 0x13c   : > { %v1700_v11 = vsub.f32 %v935_v25, %v1331_v46  ;;  %v1695_v49 = vsub.f32 %v930_v63, %v1319_v26  ;;  %v1325_v47 = vsel %vm1313_vm0, %v1323_v40, %v1324_v0  ;;  %v1316_v6 = vsel %vm1313_vm0, %v1314_v55, %v1315_v24  ;;  %v1053_v30 = vld [vmem:[%s3964_s21 + $0x3e0] sm:$0xf]  ;;  %v1050_v0 = vld [vmem:[%s3964_s21 + $0x3c8] sm:$0xff] }
 0x13d   : > { %vm1954_vm14 = vcmp.lt.f32.partialorder %v1826_v45, 1.0  ;;  %v2210_v57 = vmul.f32 %v2082_v17, %v1698_v35  ;;  %v3060_v33 = vadd.f32 -0.5, %v1826_v45  ;;  %v1697_v34 = vsub.f32 %v932_v56, %v1325_v47  ;;  %v1056_v35 = vld [vmem:[%s3964_s21 + $0x3f8] sm:$0xf]  ;;  %v1055_v56 = vld [vmem:[%s3964_s21 + $0x3f0] sm:$0xf] }
 0x13e   : > { %v1828_v4 = vand.u32 2147483647, %v1700_v11  ;;  %v2084_v20 = vmul.f32 0.5, %v1700_v11  ;;  %v1823_v22 = vand.u32 2147483647, %v1695_v49  ;;  %v2079_v54 = vmul.f32 0.5, %v1695_v49 }
 0x13f   : > { %v2466_v44 = vsel %vm1954_vm14, %v2210_v57, %v3060_v33  ;;  %v1825_v28 = vand.u32 2147483647, %v1697_v34  ;;  %v2081_v1 = vmul.f32 0.5, %v1697_v34  ;;  %v1694_v8 = vsub.f32 %v929_v58, %v1316_v6 }
 0x140   : > { %2638 = vmatpush1.msra.mxu0 %v2466_v44  ;;  %vm4740_vm15 = vcmp.lt.f32.partialorder %v1828_v4, 1.0  ;;  %v2212_v31 = vmul.f32 %v2084_v20, %v1700_v11  ;;  %v3062_v14 = vadd.f32 -0.5, %v1828_v4  ;;  %vm4744_vm1 = vcmp.lt.f32.partialorder %v1823_v22, 1.0 }
 0x141   : > { %v2207_v59 = vmul.f32 %v2079_v54, %v1695_v49  ;;  %v3057_v41 = vadd.f32 -0.5, %v1823_v22  ;;  %vm4750_vm2 = vcmp.lt.f32.partialorder %v1825_v28, 1.0  ;;  %v2209_v24 = vmul.f32 %v2081_v1, %v1697_v34  ;;  %v1048_v34 = vld [vmem:[%s3964_s21 + $0x3b8] sm:$0xff] }
 0x142   : > { %v2468_v62 = vsel %vm4740_vm15, %v2212_v31, %v3062_v14  ;;  %v3059_v43 = vadd.f32 -0.5, %v1825_v28  ;;  %v1822_v29 = vand.u32 2147483647, %v1694_v8  ;;  %v2078_v21 = vmul.f32 0.5, %v1694_v8 }
 0x143   : > { %2709 = vmatpush1.msra.mxu1 %v2468_v62  ;;  %v2463_v52 = vsel %vm4744_vm1, %v2207_v59, %v3057_v41  ;;  %v1322_v37 = vsel %vm1313_vm0, %v1320_v51, %v1321_v60  ;;  %v1560_v9 = vrot.slane %v1182_v39, 3  ;;  %vm2596_vm3 = vcmask 1043456   ;;  %v4800_v39 = vld [vmem:[%s3966_s27 + $0x3c0] sm:$0xff]  ;;  %v4803_v59 = vld [vmem:[%s3966_s27 + $0x3d0] sm:$0xff] }
 0x144   : > { %2639 = vmatprep.subr.mxu0 %v2463_v52  ;;  %v2465_v15 = vsel %vm4750_vm2, %v2209_v24, %v3059_v43  ;;  %vm1950_vm4 = vcmp.lt.f32.partialorder %v1822_v29, 1.0  ;;  %v2206_v36 = vmul.f32 %v2078_v21, %v1694_v8  ;;  %v3056_v48 = vadd.f32 -0.5, %v1822_v29  ;;  %v4821_v52 = vld [vmem:[%s3966_s27 + $0x3b8] sm:$0xff]  ;;  %v1045_v41 = vld [vmem:[%s3964_s21 + $0x3a0] sm:$0xff] }
 0x145   : > { %2710 = vmatprep.subr.mxu1 %v2465_v15  ;;  %v1696_v25 = vsub.f32 %v931_v19, %v1322_v37  ;;  %v1819_v60 = vsub.f32 %v1054_v50, %v1560_v9  ;;  %v1564_v63 = vrot.slane %v4756_v61, 3  ;;  %v1558_v32 = vrot.slane %v4761_v53, 3  ;;  %v1052_v61 = vld [vmem:[%s3964_s21 + $0x3d8] sm:$0xff]  ;;  %v4818_v53 = vld [vmem:[%s3966_s27 + $0x3a8] sm:$0xff] }
 0x146   : > { %v2462_v40 = vsel %vm1950_vm4, %v2206_v36, %v3056_v48  ;;  %v1562_v55 = vrot.slane %v4767_v42, 3  ;;  %v1552_v51 = vrot.slane %v4770_v27, 3  ;;  %v1556_v45 = vrot.slane %v4773_v3, 3 }
 0x147   : > { %2640 = vmatpush1.msra.mxu0 %v2462_v40  ;;  %v1824_v17 = vand.u32 2147483647, %v1696_v25  ;;  %v2080_v46 = vmul.f32 0.5, %v1696_v25  ;;  %v1947_v26 = vand.u32 2147483647, %v1819_v60  ;;  %v2203_v11 = vmul.f32 0.5, %v1819_v60 }
 0x148   : > { %v1821_v49 = vsub.f32 %v1056_v35, %v1564_v63  ;;  %v1818_v47 = vsub.f32 %v1053_v30, %v1558_v32  ;;  %v1820_v58 = vsub.f32 %v1055_v56, %v1562_v55  ;;  %v1561_v6 = vsel %vm1313_vm0, %v1552_v51, %v1560_v9  ;;  %v1051_v30 = vld [vmem:[%s3964_s21 + $0x3d0] sm:$0xff] }
 0x149   : > { %vm1952_vm5 = vcmp.lt.f32.partialorder %v1824_v17, 1.0  ;;  %v2208_v57 = vmul.f32 %v2080_v46, %v1696_v25  ;;  %v3058_v33 = vadd.f32 -0.5, %v1824_v17  ;;  %vm4788_vm6 = vcmp.lt.f32.partialorder %v1947_v26, 1.0  ;;  %v4841_v46 = vld [vmem:[%s3966_s27 + $0x3a0] sm:$0xff] }
 0x14a   : > { %v2331_v4 = vmul.f32 %v2203_v11, %v1819_v60  ;;  %v3181_v20 = vadd.f32 -0.5, %v1947_v26  ;;  %v1949_v22 = vand.u32 2147483647, %v1821_v49  ;;  %v2205_v54 = vmul.f32 0.5, %v1821_v49  ;;  %v1049_v60 = vld [vmem:[%s3964_s21 + $0x3c0] sm:$0xff] }
 0x14b   : > { %v2464_v44 = vsel %vm1952_vm5, %v2208_v57, %v3058_v33  ;;  %v1946_v28 = vand.u32 2147483647, %v1818_v47  ;;  %v2202_v1 = vmul.f32 0.5, %v1818_v47  ;;  %v1948_v8 = vand.u32 2147483647, %v1820_v58 }
 0x14c   : > { %2711 = vmatpush1.msra.mxu1 %v2464_v44  ;;  %v2587_v31 = vsel %vm4788_vm6, %v2331_v4, %v3181_v20  ;;  %vm4795_vm7 = vcmp.lt.f32.partialorder %v1949_v22, 1.0  ;;  %v2333_v13 = vmul.f32 %v2205_v54, %v1821_v49  ;;  %v3183_v19 = vadd.f32 -0.5, %v1949_v22 }
 0x14d   : > { %3184 = vmatprep.subr.msk.mxu0 %vm2596_vm3, %v2587_v31  ;;  %vm4806_vm8 = vcmp.lt.f32.partialorder %v1946_v28, 1.0  ;;  %v2330_v38 = vmul.f32 %v2202_v1, %v1818_v47  ;;  %v3180_v24 = vadd.f32 -0.5, %v1946_v28  ;;  %vm4810_vm9 = vcmp.lt.f32.partialorder %v1948_v8, 1.0  ;;  %v4864_v31 = vld [vmem:[%s3966_s27 + $0x3b0] sm:$0xff] }
 0x14e   : > { %v2589_v62 = vsel %vm4795_vm7, %v2333_v13, %v3183_v19  ;;  %v2204_v43 = vmul.f32 0.5, %v1820_v58  ;;  %v3182_v29 = vadd.f32 -0.5, %v1948_v8  ;;  %v1815_v21 = vsub.f32 %v1050_v0, %v1561_v6  ;;  %v4921_v13 = vld [vmem:[%s3966_s27 + $0x368] sm:$0xff] }
 0x14f   : > { %3187 = vmatprep.subr.msk.mxu1 %vm2596_vm3, %v2589_v62  ;;  %v2586_v37 = vsel %vm4806_vm8, %v2330_v38, %v3180_v24  ;;  %v1565_v9 = vsel %vm1313_vm0, %v1556_v45, %v1564_v63  ;;  %v1550_v42 = vrot.slane %v4800_v39, 3  ;;  %v1554_v15 = vrot.slane %v4803_v59, 3 }
 0x150   : > { %3185 = vmatpush2.msk.msra.mxu0 %vm2596_vm3, %v2586_v37  ;;  %v2332_v36 = vmul.f32 %v2204_v43, %v1820_v58  ;;  %v1943_v48 = vand.u32 2147483647, %v1815_v21  ;;  %v2199_v35 = vmul.f32 0.5, %v1815_v21  ;;  %v1817_v25 = vsub.f32 %v1052_v61, %v1565_v9  ;;  %v4881_v9 = vld [vmem:[%s3966_s27 + $0x388] sm:$0xff] }
 0x151   : > { %v1559_v56 = vsel %vm1313_vm0, %v1550_v42, %v1558_v32  ;;  %v1563_v40 = vsel %vm1313_vm0, %v1554_v15, %v1562_v55  ;;  %v1544_v63 = vrot.slane %v4818_v53, 3  ;;  %v1548_v17 = vrot.slane %v4821_v52, 3  ;;  %v1046_v55 = vld [vmem:[%s3964_s21 + $0x3a8] sm:$0xff]  ;;  %v1171_v53 = vld [vmem:[%s3966_s27 + $0x390] sm:$0xff] }
 0x152   : > { %v2588_v26 = vsel %vm4810_vm9, %v2332_v36, %v3182_v29  ;;  %vm2071_vm10 = vcmp.lt.f32.partialorder %v1943_v48, 1.0  ;;  %v2327_v11 = vmul.f32 %v2199_v35, %v1815_v21  ;;  %v3177_v49 = vadd.f32 -0.5, %v1943_v48  ;;  %v1047_v21 = vld [vmem:[%s3964_s21 + $0x3b0] sm:$0xff]  ;;  %v4884_v36 = vld [vmem:[%s3966_s27 + $0x398] sm:$0xff] }
 0x153   : > { %3188 = vmatpush2.msk.msra.mxu1 %vm2596_vm3, %v2588_v26  ;;  %v1945_v32 = vand.u32 2147483647, %v1817_v25  ;;  %v2201_v47 = vmul.f32 0.5, %v1817_v25  ;;  %v1814_v58 = vsub.f32 %v1049_v60, %v1559_v56  ;;  %v1816_v6 = vsub.f32 %v1051_v30, %v1563_v40  ;;  %v4891_v60 = vld [vmem:[%s3966_s27 + $0x380] sm:$0xff] }
 0x154   : > { %v2583_v57 = vsel %vm2071_vm10, %v2327_v11, %v3177_v49  ;;  %v1553_v33 = vsel %vm1313_vm0, %v1544_v63, %v1552_v51  ;;  %v1557_v4 = vsel %vm1313_vm0, %v1548_v17, %v1556_v45  ;;  %v1542_v20 = vrot.slane %v4841_v46, 3  ;;  %v1042_v49 = vld [vmem:[%s3964_s21 + $0x388] sm:$0xff] }
 0x155   : > { %2643 = vmatprep.subr.mxu0 %v2583_v57  ;;  %vm2073_vm11 = vcmp.lt.f32.partialorder %v1945_v32, 1.0  ;;  %v2329_v22 = vmul.f32 %v2201_v47, %v1817_v25  ;;  %v3179_v54 = vadd.f32 -0.5, %v1945_v32  ;;  %v1942_v27 = vand.u32 2147483647, %v1814_v58  ;;  %v1044_v57 = vld [vmem:[%s3964_s21 + $0x398] sm:$0xff]  ;;  %v4946_v25 = vld [vmem:[%s3966_s27 + $0x370] sm:$0xff] }
 0x156   : > { %v2198_v44 = vmul.f32 0.5, %v1814_v58  ;;  %v1944_v28 = vand.u32 2147483647, %v1816_v6  ;;  %v2200_v1 = vmul.f32 0.5, %v1816_v6  ;;  %v1811_v51 = vsub.f32 %v1046_v55, %v1553_v33 }
 0x157   : > { %v2585_v8 = vsel %vm2073_vm11, %v2329_v22, %v3179_v54  ;;  %vm4859_vm12 = vcmp.lt.f32.partialorder %v1942_v27, 1.0  ;;  %v3176_v0 = vadd.f32 -0.5, %v1942_v27  ;;  %v1813_v45 = vsub.f32 %v1048_v34, %v1557_v4 }
 0x158   : > { %2714 = vmatprep.subr.mxu1 %v2585_v8  ;;  %v2326_v14 = vmul.f32 %v2198_v44, %v1814_v58  ;;  %vm4866_vm13 = vcmp.lt.f32.partialorder %v1944_v28, 1.0  ;;  %v2328_v19 = vmul.f32 %v2200_v1, %v1816_v6  ;;  %v3178_v39 = vadd.f32 -0.5, %v1944_v28  ;;  %v1041_v44 = vld [vmem:[%s3964_s21 + $0x380] sm:$0xff] }
 0x159   : > { %v1939_v38 = vand.u32 2147483647, %v1811_v51  ;;  %v2195_v24 = vmul.f32 0.5, %v1811_v51  ;;  %v1941_v50 = vand.u32 2147483647, %v1813_v45  ;;  %v2197_v61 = vmul.f32 0.5, %v1813_v45 }
 0x15a   : > { %v2582_v62 = vsel %vm4859_vm12, %v2326_v14, %v3176_v0  ;;  %v2584_v43 = vsel %vm4866_vm13, %v2328_v19, %v3178_v39  ;;  %v1551_v29 = vsel %vm1313_vm0, %v1542_v20, %v1550_v42  ;;  %v1546_v37 = vrot.slane %v4864_v31, 3  ;;  %v4955_v31 = vld [vmem:[%s3966_s27 + $0x348] sm:$0xff] }
 0x15b   : > { %2644 = vmatpush2.msra.mxu0 %v2582_v62  ;;  %2715 = vmatpush2.msra.mxu1 %v2584_v43  ;;  %vm2067_vm14 = vcmp.lt.f32.partialorder %v1939_v38, 1.0  ;;  %v2323_v48 = vmul.f32 %v2195_v24, %v1811_v51  ;;  %v3173_v35 = vadd.f32 -0.5, %v1939_v38  ;;  %vm4886_vm15 = vcmp.lt.f32.partialorder %v1941_v50, 1.0  ;;  %v4933_v62 = vld [vmem:[%s3966_s27 + $0x378] sm:$0xff]  ;;  %v4936_v43 = vld [vmem:[%s3966_s27 + $0x360] sm:$0xff] }
 0x15c   : > { %v2325_v42 = vmul.f32 %v2197_v61, %v1813_v45  ;;  %v3175_v30 = vadd.f32 -0.5, %v1941_v50  ;;  %v1810_v56 = vsub.f32 %v1045_v41, %v1551_v29  ;;  %v1555_v40 = vsel %vm1313_vm0, %v1546_v37, %v1554_v15  ;;  %v1043_v41 = vld [vmem:[%s3964_s21 + $0x390] sm:$0xff]  ;;  %v1164_v38 = vld [vmem:[%s3966_s27 + $0x358] sm:$0xff] }
 0x15d   : > { %v2579_v26 = vsel %vm2067_vm14, %v2323_v48, %v3173_v35  ;;  %v1812_v11 = vsub.f32 %v1047_v21, %v1555_v40  ;;  %v1536_v32 = vrot.slane %v4881_v9, 3  ;;  %v1540_v47 = vrot.slane %v4884_v36, 3  ;;  %v1038_v48 = vld [vmem:[%s3964_s21 + $0x368] sm:$0xff] }
 0x15e   : > { %2645 = vmatprep.subr.mxu0 %v2579_v26  ;;  %v2581_v58 = vsel %vm4886_vm15, %v2325_v42, %v3175_v30  ;;  %v1938_v6 = vand.u32 2147483647, %v1810_v56  ;;  %v2194_v55 = vmul.f32 0.5, %v1810_v56  ;;  %v1534_v59 = vrot.slane %v4891_v60, 3 }
 0x15f   : > { %2716 = vmatprep.subr.mxu1 %v2581_v58  ;;  %v1940_v15 = vand.u32 2147483647, %v1812_v11  ;;  %v2196_v33 = vmul.f32 0.5, %v1812_v11  ;;  %v1545_v34 = vsel %vm1313_vm0, %v1536_v32, %v1544_v63  ;;  %v1549_v4 = vsel %vm1313_vm0, %v1540_v47, %v1548_v17 }
 0x160   : > { %vm2066_vm1 = vcmp.lt.f32.partialorder %v1938_v6, 1.0  ;;  %v2322_v22 = vmul.f32 %v2194_v55, %v1810_v56  ;;  %v3172_v54 = vadd.f32 -0.5, %v1938_v6  ;;  %v1807_v27 = vsub.f32 %v1042_v49, %v1545_v34 }
 0x161   : > { %vm2068_vm2 = vcmp.lt.f32.partialorder %v1940_v15, 1.0  ;;  %v2324_v28 = vmul.f32 %v2196_v33, %v1812_v11  ;;  %v3174_v1 = vadd.f32 -0.5, %v1940_v15  ;;  %v1809_v51 = vsub.f32 %v1044_v57, %v1549_v4  ;;  %v1040_v57 = vld [vmem:[%s3964_s21 + $0x378] sm:$0xff]  ;;  %v1037_v15 = vld [vmem:[%s3964_s21 + $0x360] sm:$0xff] }
 0x162   : > { %v2578_v8 = vsel %vm2066_vm1, %v2322_v22, %v3172_v54  ;;  %v1935_v63 = vand.u32 2147483647, %v1807_v27  ;;  %v2191_v3 = vmul.f32 0.5, %v1807_v27  ;;  %v1543_v52 = vsel %vm1313_vm0, %v1534_v59, %v1542_v20  ;;  %v1039_v22 = vld [vmem:[%s3964_s21 + $0x370] sm:$0xff] }
 0x163   : > { %2646 = vmatpush2.msra.mxu0 %v2578_v8  ;;  %v2580_v17 = vsel %vm2068_vm2, %v2324_v28, %v3174_v1  ;;  %v1937_v0 = vand.u32 2147483647, %v1809_v51  ;;  %v2193_v45 = vmul.f32 0.5, %v1809_v51  ;;  %v1806_v14 = vsub.f32 %v1041_v44, %v1543_v52 }
 0x164   : > { %2717 = vmatpush2.msra.mxu1 %v2580_v17  ;;  %vm4923_vm3 = vcmp.lt.f32.partialorder %v1935_v63, 1.0  ;;  %v2319_v46 = vmul.f32 %v2191_v3, %v1807_v27  ;;  %v3169_v39 = vadd.f32 -0.5, %v1935_v63  ;;  %v1538_v20 = vrot.slane %v1171_v53, 3 }
 0x165   : > { %vm4928_vm4 = vcmp.lt.f32.partialorder %v1937_v0, 1.0  ;;  %v2321_v24 = vmul.f32 %v2193_v45, %v1809_v51  ;;  %v3171_v50 = vadd.f32 -0.5, %v1937_v0  ;;  %v1934_v61 = vand.u32 2147483647, %v1806_v14 }
 0x166   : > { %v2575_v29 = vsel %vm4923_vm3, %v2319_v46, %v3169_v39  ;;  %v2190_v21 = vmul.f32 0.5, %v1806_v14  ;;  %v1547_v9 = vsel %vm1313_vm0, %v1538_v20, %v1546_v37  ;;  %v1528_v35 = vrot.slane %v4921_v13, 3  ;;  %v1034_v13 = vld [vmem:[%s3964_s21 + $0x348] sm:$0xff]  ;;  %v1157_v39 = vld [vmem:[%s3966_s27 + $0x320] sm:$0xff] }
 0x167   : > { %2647 = vmatprep.subr.mxu0 %v2575_v29  ;;  %v2577_v42 = vsel %vm4928_vm4, %v2321_v24, %v3171_v50  ;;  %vm4950_vm5 = vcmp.lt.f32.partialorder %v1934_v61, 1.0  ;;  %v3168_v56 = vadd.f32 -0.5, %v1934_v61  ;;  %v1808_v40 = vsub.f32 %v1043_v41, %v1547_v9  ;;  %v4996_v24 = vld [vmem:[%s3966_s27 + $0x340] sm:$0xff]  ;;  %v4999_v50 = vld [vmem:[%s3966_s27 + $0x350] sm:$0xff]  ;;  %v5077_v9 = vld [vmem:[%s3966_s27 + $0x318] sm:$0xff] }
 0x168   : > { %2718 = vmatprep.subr.mxu1 %v2577_v42  ;;  %v2318_v37 = vmul.f32 %v2190_v21, %v1806_v14  ;;  %v1537_v26 = vsel %vm1313_vm0, %v1528_v35, %v1536_v32  ;;  %v1532_v11 = vrot.slane %v4933_v62, 3  ;;  %v1526_v49 = vrot.slane %v4936_v43, 3 }
 0x169   : > { %v1936_v58 = vand.u32 2147483647, %v1808_v40  ;;  %v2192_v6 = vmul.f32 0.5, %v1808_v40  ;;  %v1803_v55 = vsub.f32 %v1038_v48, %v1537_v26  ;;  %v1530_v33 = vrot.slane %v4946_v25, 3  ;;  %v5010_v48 = vld [vmem:[%s3966_s27 + $0x328] sm:$0xff]  ;;  %v1036_v26 = vld [vmem:[%s3964_s21 + $0x358] sm:$0xff] }
 0x16a   : > { %v2574_v34 = vsel %vm4950_vm5, %v2318_v37, %v3168_v56  ;;  %v1541_v32 = vsel %vm1313_vm0, %v1532_v11, %v1540_v47  ;;  %v1535_v4 = vsel %vm1313_vm0, %v1526_v49, %v1534_v59  ;;  %v1520_v54 = vrot.slane %v4955_v31, 3 }
 0x16b   : > { %2648 = vmatpush2.msra.mxu0 %v2574_v34  ;;  %vm2064_vm6 = vcmp.lt.f32.partialorder %v1936_v58, 1.0  ;;  %v2320_v27 = vmul.f32 %v2192_v6, %v1808_v40  ;;  %v3170_v44 = vadd.f32 -0.5, %v1936_v58  ;;  %v1931_v28 = vand.u32 2147483647, %v1803_v55  ;;  %v5015_v40 = vld [vmem:[%s3966_s27 + $0x338] sm:$0xff] }
 0x16c   : > { %v2187_v1 = vmul.f32 0.5, %v1803_v55  ;;  %v1805_v36 = vsub.f32 %v1040_v57, %v1541_v32  ;;  %v1802_v51 = vsub.f32 %v1037_v15, %v1535_v4  ;;  %v1539_v60 = vsel %vm1313_vm0, %v1530_v33, %v1538_v20  ;;  %v1033_v32 = vld [vmem:[%s3964_s21 + $0x340] sm:$0xff]  ;;  %v1035_v4 = vld [vmem:[%s3964_s21 + $0x350] sm:$0xff] }
 0x16d   : > { %v2576_v47 = vsel %vm2064_vm6, %v2320_v27, %v3170_v44  ;;  %vm4980_vm7 = vcmp.lt.f32.partialorder %v1931_v28, 1.0  ;;  %v3165_v59 = vadd.f32 -0.5, %v1931_v28  ;;  %v1804_v8 = vsub.f32 %v1039_v22, %v1539_v60 }
 0x16e   : > { %2719 = vmatpush2.msra.mxu1 %v2576_v47  ;;  %v2315_v63 = vmul.f32 %v2187_v1, %v1803_v55  ;;  %v1933_v3 = vand.u32 2147483647, %v1805_v36  ;;  %v2189_v52 = vmul.f32 0.5, %v1805_v36  ;;  %v1930_v17 = vand.u32 2147483647, %v1802_v51  ;;  %v1030_v1 = vld [vmem:[%s3964_s21 + $0x328] sm:$0xff] }
 0x16f   : > { %v2186_v0 = vmul.f32 0.5, %v1802_v51  ;;  %v1932_v45 = vand.u32 2147483647, %v1804_v8  ;;  %v2188_v14 = vmul.f32 0.5, %v1804_v8  ;;  %v1529_v19 = vsel %vm1313_vm0, %v1520_v54, %v1528_v35 }
 0x170   : > { %v2571_v46 = vsel %vm4980_vm7, %v2315_v63, %v3165_v59  ;;  %vm4990_vm8 = vcmp.lt.f32.partialorder %v1933_v3, 1.0  ;;  %v2317_v41 = vmul.f32 %v2189_v52, %v1805_v36  ;;  %v3167_v20 = vadd.f32 -0.5, %v1933_v3 }
 0x171   : > { %2649 = vmatprep.subr.mxu0 %v2571_v46  ;;  %vm5001_vm9 = vcmp.lt.f32.partialorder %v1930_v17, 1.0  ;;  %v2314_v29 = vmul.f32 %v2186_v0, %v1802_v51  ;;  %v3164_v21 = vadd.f32 -0.5, %v1930_v17  ;;  %vm5005_vm10 = vcmp.lt.f32.partialorder %v1932_v45, 1.0 }
 0x172   : > { %v2573_v35 = vsel %vm4990_vm8, %v2317_v41, %v3167_v20  ;;  %v2316_v42 = vmul.f32 %v2188_v14, %v1804_v8  ;;  %v3166_v30 = vadd.f32 -0.5, %v1932_v45  ;;  %v1799_v56 = vsub.f32 %v1034_v13, %v1529_v19  ;;  %v1032_v45 = vld [vmem:[%s3964_s21 + $0x338] sm:$0xff]  ;;  %v5065_v41 = vld [vmem:[%s3966_s27 + $0x330] sm:$0xff]  ;;  %v5068_v20 = vld [vmem:[%s3966_s27 + $0x308] sm:$0xff] }
 0x173   : > { %2720 = vmatprep.subr.mxu1 %v2573_v35  ;;  %v2570_v37 = vsel %vm5001_vm9, %v2314_v29, %v3164_v21  ;;  %v1524_v58 = vrot.slane %v1164_v38, 3  ;;  %v1518_v6 = vrot.slane %v4996_v24, 3  ;;  %v1522_v55 = vrot.slane %v4999_v50, 3  ;;  %v1144_v14 = vld [vmem:[%s3966_s27 + $0x2b8] sm:$0xff] }
 0x174   : > { %2650 = vmatpush2.msra.mxu0 %v2570_v37  ;;  %v2572_v57 = vsel %vm5005_vm10, %v2316_v42, %v3166_v30  ;;  %v1927_v15 = vand.u32 2147483647, %v1799_v56  ;;  %v2183_v34 = vmul.f32 0.5, %v1799_v56  ;;  %v1512_v22 = vrot.slane %v5010_v48, 3  ;;  %v5082_v37 = vld [vmem:[%s3966_s27 + $0x300] sm:$0xff] }
 0x175   : > { %2721 = vmatpush2.msra.mxu1 %v2572_v57  ;;  %v1533_v27 = vsel %vm1313_vm0, %v1524_v58, %v1532_v11  ;;  %v1527_v44 = vsel %vm1313_vm0, %v1518_v6, %v1526_v49  ;;  %v1531_v28 = vsel %vm1313_vm0, %v1522_v55, %v1530_v33  ;;  %v1516_v36 = vrot.slane %v5015_v40, 3 }
 0x176   : > { %vm2055_vm11 = vcmp.lt.f32.partialorder %v1927_v15, 1.0  ;;  %v2311_v51 = vmul.f32 %v2183_v34, %v1799_v56  ;;  %v3161_v62 = vadd.f32 -0.5, %v1927_v15  ;;  %v1801_v60 = vsub.f32 %v1036_v26, %v1533_v27 }
 0x177   : > { %v1798_v11 = vsub.f32 %v1033_v32, %v1527_v44  ;;  %v1800_v47 = vsub.f32 %v1035_v4, %v1531_v28  ;;  %v1521_v43 = vsel %vm1313_vm0, %v1512_v22, %v1520_v54  ;;  %v1525_v25 = vsel %vm1313_vm0, %v1516_v36, %v1524_v58  ;;  %v1029_v58 = vld [vmem:[%s3964_s21 + $0x320] sm:$0xff]  ;;  %v1031_v44 = vld [vmem:[%s3964_s21 + $0x330] sm:$0xff]  ;;  %v1026_v28 = vld [vmem:[%s3964_s21 + $0x308] sm:$0xff] }
 0x178   : > { %v2567_v49 = vsel %vm2055_vm11, %v2311_v51, %v3161_v62  ;;  %v1929_v33 = vand.u32 2147483647, %v1801_v60  ;;  %v2185_v53 = vmul.f32 0.5, %v1801_v60  ;;  %v1795_v59 = vsub.f32 %v1030_v1, %v1521_v43  ;;  %v5106_v43 = vld [vmem:[%s3966_s27 + $0x310] sm:$0xff] }
 0x179   : > { %2651 = vmatprep.subr.mxu0 %v2567_v49  ;;  %v1926_v8 = vand.u32 2147483647, %v1798_v11  ;;  %v2182_v63 = vmul.f32 0.5, %v1798_v11  ;;  %v1928_v31 = vand.u32 2147483647, %v1800_v47  ;;  %v2184_v3 = vmul.f32 0.5, %v1800_v47 }
 0x17a   : > { %vm5050_vm12 = vcmp.lt.f32.partialorder %v1929_v33, 1.0  ;;  %v2313_v54 = vmul.f32 %v2185_v53, %v1801_v60  ;;  %v3163_v17 = vadd.f32 -0.5, %v1929_v33  ;;  %v1923_v0 = vand.u32 2147483647, %v1795_v59 }
 0x17b   : > { %vm5055_vm13 = vcmp.lt.f32.partialorder %v1926_v8, 1.0  ;;  %v2310_v13 = vmul.f32 %v2182_v63, %v1798_v11  ;;  %v3160_v19 = vadd.f32 -0.5, %v1926_v8  ;;  %vm5059_vm14 = vcmp.lt.f32.partialorder %v1928_v31, 1.0  ;;  %v1028_v11 = vld [vmem:[%s3964_s21 + $0x318] sm:$0xff] }
 0x17c   : > { %v2569_v38 = vsel %vm5050_vm12, %v2313_v54, %v3163_v17  ;;  %v2312_v61 = vmul.f32 %v2184_v3, %v1800_v47  ;;  %v3162_v29 = vadd.f32 -0.5, %v1928_v31  ;;  %vm5072_vm15 = vcmp.lt.f32.partialorder %v1923_v0, 1.0 }
 0x17d   : > { %2722 = vmatprep.subr.mxu1 %v2569_v38  ;;  %v2566_v35 = vsel %vm5055_vm13, %v2310_v13, %v3160_v19  ;;  %v2179_v42 = vmul.f32 0.5, %v1795_v59  ;;  %v3157_v30 = vadd.f32 -0.5, %v1923_v0  ;;  %v1797_v56 = vsub.f32 %v1032_v45, %v1525_v25  ;;  %v1025_v13 = vld [vmem:[%s3964_s21 + $0x300] sm:$0xff]  ;;  %v1027_v38 = vld [vmem:[%s3964_s21 + $0x310] sm:$0xff] }
 0x17e   : > { %2652 = vmatpush2.msra.mxu0 %v2566_v35  ;;  %v2568_v26 = vsel %vm5059_vm14, %v2312_v61, %v3162_v29  ;;  %v1510_v57 = vrot.slane %v1157_v39, 3  ;;  %v1514_v15 = vrot.slane %v5065_v41, 3  ;;  %v1504_v34 = vrot.slane %v5068_v20, 3  ;;  %v5134_v61 = vld [vmem:[%s3966_s27 + $0x2e8] sm:$0xff]  ;;  %v5137_v29 = vld [vmem:[%s3966_s27 + $0x2f8] sm:$0xff]  ;;  %v1151_v20 = vld [vmem:[%s3966_s27 + $0x2f0] sm:$0xff] }
 0x17f   : > { %2723 = vmatpush2.msra.mxu1 %v2568_v26  ;;  %v2307_v32 = vmul.f32 %v2179_v42, %v1795_v59  ;;  %v1925_v4 = vand.u32 2147483647, %v1797_v56  ;;  %v2181_v27 = vmul.f32 0.5, %v1797_v56  ;;  %v1508_v1 = vrot.slane %v5077_v9, 3  ;;  %v5190_v39 = vld [vmem:[%s3966_s27 + $0x2d8] sm:$0xff] }
 0x180   : > { %v1519_v51 = vsel %vm1313_vm0, %v1510_v57, %v1518_v6  ;;  %v1523_v62 = vsel %vm1313_vm0, %v1514_v15, %v1522_v55  ;;  %v1513_v60 = vsel %vm1313_vm0, %v1504_v34, %v1512_v22  ;;  %v1502_v47 = vrot.slane %v5082_v37, 3 }
 0x181   : > { %v2563_v24 = vsel %vm5072_vm15, %v2307_v32, %v3157_v30  ;;  %vm2053_vm1 = vcmp.lt.f32.partialorder %v1925_v4, 1.0  ;;  %v2309_v6 = vmul.f32 %v2181_v27, %v1797_v56  ;;  %v3159_v25 = vadd.f32 -0.5, %v1925_v4  ;;  %v5146_v56 = vld [vmem:[%s3966_s27 + $0x2e0] sm:$0xff] }
 0x182   : > { %2653 = vmatprep.subr.mxu0 %v2563_v24  ;;  %v1794_v50 = vsub.f32 %v1029_v58, %v1519_v51  ;;  %v1796_v55 = vsub.f32 %v1031_v44, %v1523_v62  ;;  %v1791_v49 = vsub.f32 %v1026_v28, %v1513_v60  ;;  %v1517_v48 = vsel %vm1313_vm0, %v1508_v1, %v1516_v36  ;;  %v1022_v44 = vld [vmem:[%s3964_s21 + $0x2e8] sm:$0xff]  ;;  %v1024_v24 = vld [vmem:[%s3964_s21 + $0x2f8] sm:$0xff] }
 0x183   : > { %v2565_v22 = vsel %vm2053_vm1, %v2309_v6, %v3159_v25  ;;  %v1793_v33 = vsub.f32 %v1028_v11, %v1517_v48  ;;  %v1511_v53 = vsel %vm1313_vm0, %v1502_v47, %v1510_v57  ;;  %v1506_v59 = vrot.slane %v5106_v43, 3  ;;  %v5212_v43 = vld [vmem:[%s3966_s27 + $0x2a8] sm:$0xff] }
 0x184   : > { %2724 = vmatprep.subr.mxu1 %v2565_v22  ;;  %v1922_v8 = vand.u32 2147483647, %v1794_v50  ;;  %v2178_v63 = vmul.f32 0.5, %v1794_v50  ;;  %v1924_v31 = vand.u32 2147483647, %v1796_v55  ;;  %v2180_v40 = vmul.f32 0.5, %v1796_v55 }
 0x185   : > { %v1919_v3 = vand.u32 2147483647, %v1791_v49  ;;  %v2175_v52 = vmul.f32 0.5, %v1791_v49  ;;  %v1921_v36 = vand.u32 2147483647, %v1793_v33  ;;  %v2177_v54 = vmul.f32 0.5, %v1793_v33 }
 0x186   : > { %vm5119_vm2 = vcmp.lt.f32.partialorder %v1922_v8, 1.0  ;;  %v2306_v0 = vmul.f32 %v2178_v63, %v1794_v50  ;;  %v3156_v45 = vadd.f32 -0.5, %v1922_v8  ;;  %vm5123_vm3 = vcmp.lt.f32.partialorder %v1924_v31, 1.0 }
 0x187   : > { %v2308_v19 = vmul.f32 %v2180_v40, %v1796_v55  ;;  %v3158_v46 = vadd.f32 -0.5, %v1924_v31  ;;  %vm5128_vm4 = vcmp.lt.f32.partialorder %v1919_v3, 1.0  ;;  %v2303_v41 = vmul.f32 %v2175_v52, %v1791_v49 }
 0x188   : > { %v2562_v21 = vsel %vm5119_vm2, %v2306_v0, %v3156_v45  ;;  %v3153_v35 = vadd.f32 -0.5, %v1919_v3  ;;  %vm5141_vm5 = vcmp.lt.f32.partialorder %v1921_v36, 1.0  ;;  %v2305_v30 = vmul.f32 %v2177_v54, %v1793_v33  ;;  %v1021_v33 = vld [vmem:[%s3964_s21 + $0x2e0] sm:$0xff]  ;;  %v5178_v54 = vld [vmem:[%s3966_s27 + $0x2c8] sm:$0xff]  ;;  %v1023_v45 = vld [vmem:[%s3964_s21 + $0x2f0] sm:$0xff] }
 0x189   : > { %2654 = vmatpush2.msra.mxu0 %v2562_v21  ;;  %v2564_v26 = vsel %vm5123_vm3, %v2308_v19, %v3158_v46  ;;  %v3155_v58 = vadd.f32 -0.5, %v1921_v36  ;;  %v1790_v57 = vsub.f32 %v1025_v13, %v1511_v53  ;;  %v1515_v32 = vsel %vm1313_vm0, %v1506_v59, %v1514_v15 }
 0x18a   : > { %2725 = vmatpush2.msra.mxu1 %v2564_v26  ;;  %v2559_v4 = vsel %vm5128_vm4, %v2303_v41, %v3153_v35  ;;  %v1792_v27 = vsub.f32 %v1027_v38, %v1515_v32  ;;  %v1496_v28 = vrot.slane %v5134_v61, 3  ;;  %v1500_v51 = vrot.slane %v5137_v29, 3  ;;  %v5193_v41 = vld [vmem:[%s3966_s27 + $0x2c0] sm:$0xff]  ;;  %v1018_v35 = vld [vmem:[%s3964_s21 + $0x2c8] sm:$0xff] }
 0x18b   : > { %2655 = vmatprep.subr.mxu0 %v2559_v4  ;;  %v2561_v62 = vsel %vm5141_vm5, %v2305_v30, %v3155_v58  ;;  %v1918_v60 = vand.u32 2147483647, %v1790_v57  ;;  %v2174_v11 = vmul.f32 0.5, %v1790_v57  ;;  %v1494_v15 = vrot.slane %v5146_v56, 3  ;;  %v5203_v30 = vld [vmem:[%s3966_s27 + $0x2d0] sm:$0xff] }
 0x18c   : > { %2726 = vmatprep.subr.mxu1 %v2561_v62  ;;  %v1920_v6 = vand.u32 2147483647, %v1792_v27  ;;  %v2176_v25 = vmul.f32 0.5, %v1792_v27  ;;  %v1505_v50 = vsel %vm1313_vm0, %v1496_v28, %v1504_v34  ;;  %v1509_v55 = vsel %vm1313_vm0, %v1500_v51, %v1508_v1 }
 0x18d   : > { %vm2046_vm6 = vcmp.lt.f32.partialorder %v1918_v60, 1.0  ;;  %v2302_v49 = vmul.f32 %v2174_v11, %v1790_v57  ;;  %v3152_v48 = vadd.f32 -0.5, %v1918_v60  ;;  %v1787_v22 = vsub.f32 %v1022_v44, %v1505_v50 }
 0x18e   : > { %vm2048_vm7 = vcmp.lt.f32.partialorder %v1920_v6, 1.0  ;;  %v2304_v53 = vmul.f32 %v2176_v25, %v1792_v27  ;;  %v3154_v8 = vadd.f32 -0.5, %v1920_v6  ;;  %v1789_v63 = vsub.f32 %v1024_v24, %v1509_v55  ;;  %v1020_v24 = vld [vmem:[%s3964_s21 + $0x2d8] sm:$0xff]  ;;  %v1017_v6 = vld [vmem:[%s3964_s21 + $0x2c0] sm:$0xff] }
 0x18f   : > { %v2558_v31 = vsel %vm2046_vm6, %v2302_v49, %v3152_v48  ;;  %v1915_v34 = vand.u32 2147483647, %v1787_v22  ;;  %v2171_v40 = vmul.f32 0.5, %v1787_v22  ;;  %v1503_v9 = vsel %vm1313_vm0, %v1494_v15, %v1502_v47  ;;  %v1019_v49 = vld [vmem:[%s3964_s21 + $0x2d0] sm:$0xff] }
 0x190   : > { %2656 = vmatpush2.msra.mxu0 %v2558_v31  ;;  %v2560_v1 = vsel %vm2048_vm7, %v2304_v53, %v3154_v8  ;;  %v1917_v3 = vand.u32 2147483647, %v1789_v63  ;;  %v2173_v52 = vmul.f32 0.5, %v1789_v63  ;;  %v1786_v36 = vsub.f32 %v1021_v33, %v1503_v9 }
 0x191   : > { %2727 = vmatpush2.msra.mxu1 %v2560_v1  ;;  %vm5180_vm8 = vcmp.lt.f32.partialorder %v1915_v34, 1.0  ;;  %v2299_v37 = vmul.f32 %v2171_v40, %v1787_v22  ;;  %v3149_v0 = vadd.f32 -0.5, %v1915_v34  ;;  %v1498_v47 = vrot.slane %v1151_v20, 3 }
 0x192   : > { %vm5185_vm9 = vcmp.lt.f32.partialorder %v1917_v3, 1.0  ;;  %v2301_v13 = vmul.f32 %v2173_v52, %v1789_v63  ;;  %v3151_v19 = vadd.f32 -0.5, %v1917_v3  ;;  %v1914_v46 = vand.u32 2147483647, %v1786_v36 }
 0x193   : > { %v2555_v38 = vsel %vm5180_vm8, %v2299_v37, %v3149_v0  ;;  %v2170_v61 = vmul.f32 0.5, %v1786_v36  ;;  %v1507_v21 = vsel %vm1313_vm0, %v1498_v47, %v1506_v59  ;;  %v1488_v42 = vrot.slane %v5178_v54, 3  ;;  %v1014_v54 = vld [vmem:[%s3964_s21 + $0x2a8] sm:$0xff]  ;;  %v1137_v0 = vld [vmem:[%s3966_s27 + $0x280] sm:$0xff] }
 0x194   : > { %2657 = vmatprep.subr.mxu0 %v2555_v38  ;;  %v2557_v26 = vsel %vm5185_vm9, %v2301_v13, %v3151_v19  ;;  %vm5207_vm10 = vcmp.lt.f32.partialorder %v1914_v46, 1.0  ;;  %v3148_v57 = vadd.f32 -0.5, %v1914_v46  ;;  %v1788_v32 = vsub.f32 %v1023_v45, %v1507_v21  ;;  %v5253_v13 = vld [vmem:[%s3966_s27 + $0x2a0] sm:$0xff]  ;;  %v5256_v19 = vld [vmem:[%s3966_s27 + $0x2b0] sm:$0xff]  ;;  %v5334_v21 = vld [vmem:[%s3966_s27 + $0x278] sm:$0xff] }
 0x195   : > { %2728 = vmatprep.subr.mxu1 %v2557_v26  ;;  %v2298_v59 = vmul.f32 %v2170_v61, %v1786_v36  ;;  %v1497_v4 = vsel %vm1313_vm0, %v1488_v42, %v1496_v28  ;;  %v1492_v27 = vrot.slane %v5190_v39, 3  ;;  %v1486_v44 = vrot.slane %v5193_v41, 3 }
 0x196   : > { %v1916_v62 = vand.u32 2147483647, %v1788_v32  ;;  %v2172_v60 = vmul.f32 0.5, %v1788_v32  ;;  %v1783_v11 = vsub.f32 %v1018_v35, %v1497_v4  ;;  %v1490_v25 = vrot.slane %v5203_v30, 3  ;;  %v5267_v35 = vld [vmem:[%s3966_s27 + $0x288] sm:$0xff]  ;;  %v1016_v4 = vld [vmem:[%s3964_s21 + $0x2b8] sm:$0xff] }
 0x197   : > { %v2554_v50 = vsel %vm5207_vm10, %v2298_v59, %v3148_v57  ;;  %v1501_v28 = vsel %vm1313_vm0, %v1492_v27, %v1500_v51  ;;  %v1495_v55 = vsel %vm1313_vm0, %v1486_v44, %v1494_v15  ;;  %v1480_v48 = vrot.slane %v5212_v43, 3 }
 0x198   : > { %2658 = vmatpush2.msra.mxu0 %v2554_v50  ;;  %vm2044_vm11 = vcmp.lt.f32.partialorder %v1916_v62, 1.0  ;;  %v2300_v22 = vmul.f32 %v2172_v60, %v1788_v32  ;;  %v3150_v33 = vadd.f32 -0.5, %v1916_v62  ;;  %v1911_v53 = vand.u32 2147483647, %v1783_v11  ;;  %v5272_v32 = vld [vmem:[%s3966_s27 + $0x298] sm:$0xff] }
 0x199   : > { %v2167_v8 = vmul.f32 0.5, %v1783_v11  ;;  %v1785_v29 = vsub.f32 %v1020_v24, %v1501_v28  ;;  %v1782_v63 = vsub.f32 %v1017_v6, %v1495_v55  ;;  %v1499_v56 = vsel %vm1313_vm0, %v1490_v25, %v1498_v47  ;;  %v1013_v28 = vld [vmem:[%s3964_s21 + $0x2a0] sm:$0xff]  ;;  %v1015_v55 = vld [vmem:[%s3964_s21 + $0x2b0] sm:$0xff] }
 0x19a   : > { %v2556_v51 = vsel %vm2044_vm11, %v2300_v22, %v3150_v33  ;;  %vm5237_vm12 = vcmp.lt.f32.partialorder %v1911_v53, 1.0  ;;  %v3145_v15 = vadd.f32 -0.5, %v1911_v53  ;;  %v1784_v31 = vsub.f32 %v1019_v49, %v1499_v56 }
 0x19b   : > { %2729 = vmatpush2.msra.mxu1 %v2556_v51  ;;  %v2295_v34 = vmul.f32 %v2167_v8, %v1783_v11  ;;  %v1913_v40 = vand.u32 2147483647, %v1785_v29  ;;  %v2169_v9 = vmul.f32 0.5, %v1785_v29  ;;  %v1910_v1 = vand.u32 2147483647, %v1782_v63  ;;  %v1010_v8 = vld [vmem:[%s3964_s21 + $0x288] sm:$0xff] }
 0x19c   : > { %v2166_v3 = vmul.f32 0.5, %v1782_v63  ;;  %v1912_v52 = vand.u32 2147483647, %v1784_v31  ;;  %v2168_v36 = vmul.f32 0.5, %v1784_v31  ;;  %v1489_v17 = vsel %vm1313_vm0, %v1480_v48, %v1488_v42 }
 0x19d   : > { %v2551_v37 = vsel %vm5237_vm12, %v2295_v34, %v3145_v15  ;;  %vm5247_vm13 = vcmp.lt.f32.partialorder %v1913_v40, 1.0  ;;  %v2297_v45 = vmul.f32 %v2169_v9, %v1785_v29  ;;  %v3147_v47 = vadd.f32 -0.5, %v1913_v40 }
 0x19e   : > { %2659 = vmatprep.subr.mxu0 %v2551_v37  ;;  %vm5258_vm14 = vcmp.lt.f32.partialorder %v1910_v1, 1.0  ;;  %v2294_v38 = vmul.f32 %v2166_v3, %v1782_v63  ;;  %v3144_v61 = vadd.f32 -0.5, %v1910_v1  ;;  %vm5262_vm15 = vcmp.lt.f32.partialorder %v1912_v52, 1.0 }
 0x19f   : > { %v2553_v42 = vsel %vm5247_vm13, %v2297_v45, %v3147_v47  ;;  %v2296_v26 = vmul.f32 %v2168_v36, %v1784_v31  ;;  %v3146_v58 = vadd.f32 -0.5, %v1912_v52  ;;  %v1779_v57 = vsub.f32 %v1014_v54, %v1489_v17  ;;  %v1012_v52 = vld [vmem:[%s3964_s21 + $0x298] sm:$0xff]  ;;  %v5322_v45 = vld [vmem:[%s3966_s27 + $0x290] sm:$0xff]  ;;  %v5325_v47 = vld [vmem:[%s3966_s27 + $0x268] sm:$0xff] }
 0x1a0   : > { %2730 = vmatprep.subr.mxu1 %v2553_v42  ;;  %v2550_v59 = vsel %vm5258_vm14, %v2294_v38, %v3144_v61  ;;  %v1484_v62 = vrot.slane %v1144_v14, 3  ;;  %v1478_v60 = vrot.slane %v5253_v13, 3  ;;  %v1482_v11 = vrot.slane %v5256_v19, 3 }
 0x1a1   : > { %2660 = vmatpush2.msra.mxu0 %v2550_v59  ;;  %v2552_v24 = vsel %vm5262_vm15, %v2296_v26, %v3146_v58  ;;  %v1907_v6 = vand.u32 2147483647, %v1779_v57  ;;  %v2163_v50 = vmul.f32 0.5, %v1779_v57  ;;  %v1472_v49 = vrot.slane %v5267_v35, 3  ;;  %v5339_v59 = vld [vmem:[%s3966_s27 + $0x260] sm:$0xff] }
 0x1a2   : > { %2731 = vmatpush2.msra.mxu1 %v2552_v24  ;;  %v1493_v22 = vsel %vm1313_vm0, %v1484_v62, %v1492_v27  ;;  %v1487_v33 = vsel %vm1313_vm0, %v1478_v60, %v1486_v44  ;;  %v1491_v53 = vsel %vm1313_vm0, %v1482_v11, %v1490_v25  ;;  %v1476_v29 = vrot.slane %v5272_v32, 3 }
 0x1a3   : > { %vm2035_vm1 = vcmp.lt.f32.partialorder %v1907_v6, 1.0  ;;  %v2291_v63 = vmul.f32 %v2163_v50, %v1779_v57  ;;  %v3141_v39 = vadd.f32 -0.5, %v1907_v6  ;;  %v1781_v56 = vsub.f32 %v1016_v4, %v1493_v22 }
 0x1a4   : > { %v1778_v27 = vsub.f32 %v1013_v28, %v1487_v33  ;;  %v1780_v51 = vsub.f32 %v1015_v55, %v1491_v53  ;;  %v1481_v41 = vsel %vm1313_vm0, %v1472_v49, %v1480_v48  ;;  %v1485_v30 = vsel %vm1313_vm0, %v1476_v29, %v1484_v62  ;;  %v1009_v62 = vld [vmem:[%s3964_s21 + $0x280] sm:$0xff]  ;;  %v1011_v33 = vld [vmem:[%s3964_s21 + $0x290] sm:$0xff]  ;;  %v1006_v53 = vld [vmem:[%s3964_s21 + $0x268] sm:$0xff] }
 0x1a5   : > { %v2547_v44 = vsel %vm2035_vm1, %v2291_v63, %v3141_v39  ;;  %v1909_v25 = vand.u32 2147483647, %v1781_v56  ;;  %v2165_v20 = vmul.f32 0.5, %v1781_v56  ;;  %v1775_v15 = vsub.f32 %v1010_v8, %v1481_v41  ;;  %v5363_v41 = vld [vmem:[%s3966_s27 + $0x270] sm:$0xff] }
 0x1a6   : > { %2661 = vmatprep.subr.mxu0 %v2547_v44  ;;  %v1906_v31 = vand.u32 2147483647, %v1778_v27  ;;  %v2162_v34 = vmul.f32 0.5, %v1778_v27  ;;  %v1908_v43 = vand.u32 2147483647, %v1780_v51  ;;  %v2164_v40 = vmul.f32 0.5, %v1780_v51 }
 0x1a7   : > { %vm5307_vm2 = vcmp.lt.f32.partialorder %v1909_v25, 1.0  ;;  %v2293_v48 = vmul.f32 %v2165_v20, %v1781_v56  ;;  %v3143_v1 = vadd.f32 -0.5, %v1909_v25  ;;  %v1903_v3 = vand.u32 2147483647, %v1775_v15 }
 0x1a8   : > { %vm5312_vm3 = vcmp.lt.f32.partialorder %v1906_v31, 1.0  ;;  %v2290_v54 = vmul.f32 %v2162_v34, %v1778_v27  ;;  %v3140_v17 = vadd.f32 -0.5, %v1906_v31  ;;  %vm5316_vm4 = vcmp.lt.f32.partialorder %v1908_v43, 1.0  ;;  %v1008_v27 = vld [vmem:[%s3964_s21 + $0x278] sm:$0xff] }
 0x1a9   : > { %v2549_v14 = vsel %vm5307_vm2, %v2293_v48, %v3143_v1  ;;  %v2292_v46 = vmul.f32 %v2164_v40, %v1780_v51  ;;  %v3142_v38 = vadd.f32 -0.5, %v1908_v43  ;;  %vm5329_vm5 = vcmp.lt.f32.partialorder %v1903_v3, 1.0 }
 0x1aa   : > { %2732 = vmatprep.subr.mxu1 %v2549_v14  ;;  %v2546_v42 = vsel %vm5312_vm3, %v2290_v54, %v3140_v17  ;;  %v2159_v26 = vmul.f32 0.5, %v1775_v15  ;;  %v3137_v58 = vadd.f32 -0.5, %v1903_v3  ;;  %v1777_v57 = vsub.f32 %v1012_v52, %v1485_v30  ;;  %v1005_v54 = vld [vmem:[%s3964_s21 + $0x260] sm:$0xff]  ;;  %v1007_v14 = vld [vmem:[%s3964_s21 + $0x270] sm:$0xff] }
 0x1ab   : > { %2662 = vmatpush2.msra.mxu0 %v2546_v42  ;;  %v2548_v4 = vsel %vm5316_vm4, %v2292_v46, %v3142_v38  ;;  %v1470_v24 = vrot.slane %v1137_v0, 3  ;;  %v1474_v6 = vrot.slane %v5322_v45, 3  ;;  %v1464_v50 = vrot.slane %v5325_v47, 3  ;;  %v5391_v46 = vld [vmem:[%s3966_s27 + $0x248] sm:$0xff]  ;;  %v5394_v38 = vld [vmem:[%s3966_s27 + $0x258] sm:$0xff]  ;;  %v1131_v47 = vld [vmem:[%s3966_s27 + $0x250] sm:$0xff] }
 0x1ac   : > { %2733 = vmatpush2.msra.mxu1 %v2548_v4  ;;  %v2287_v28 = vmul.f32 %v2159_v26, %v1775_v15  ;;  %v1905_v55 = vand.u32 2147483647, %v1777_v57  ;;  %v2161_v22 = vmul.f32 0.5, %v1777_v57  ;;  %v1468_v8 = vrot.slane %v5334_v21, 3  ;;  %v5445_v0 = vld [vmem:[%s3966_s27 + $0x238] sm:$0xff] }
 0x1ad   : > { %v1479_v63 = vsel %vm1313_vm0, %v1470_v24, %v1478_v60  ;;  %v1483_v39 = vsel %vm1313_vm0, %v1474_v6, %v1482_v11  ;;  %v1473_v56 = vsel %vm1313_vm0, %v1464_v50, %v1472_v49  ;;  %v1462_v51 = vrot.slane %v5339_v59, 3 }
 0x1ae   : > { %v2543_v13 = vsel %vm5329_vm5, %v2287_v28, %v3137_v58  ;;  %vm2033_vm6 = vcmp.lt.f32.partialorder %v1905_v55, 1.0  ;;  %v2289_v60 = vmul.f32 %v2161_v22, %v1777_v57  ;;  %v3139_v30 = vadd.f32 -0.5, %v1905_v55  ;;  %v5403_v57 = vld [vmem:[%s3966_s27 + $0x240] sm:$0xff] }
 0x1af   : > { %2663 = vmatprep.subr.mxu0 %v2543_v13  ;;  %v1774_v19 = vsub.f32 %v1009_v62, %v1479_v63  ;;  %v1776_v11 = vsub.f32 %v1011_v33, %v1483_v39  ;;  %v1771_v44 = vsub.f32 %v1006_v53, %v1473_v56  ;;  %v1477_v35 = vsel %vm1313_vm0, %v1468_v8, %v1476_v29  ;;  %v1002_v33 = vld [vmem:[%s3964_s21 + $0x248] sm:$0xff]  ;;  %v1004_v13 = vld [vmem:[%s3964_s21 + $0x258] sm:$0xff] }
 0x1b0   : > { %v2545_v49 = vsel %vm2033_vm6, %v2289_v60, %v3139_v30  ;;  %v1773_v25 = vsub.f32 %v1008_v27, %v1477_v35  ;;  %v1471_v20 = vsel %vm1313_vm0, %v1462_v51, %v1470_v24  ;;  %v1466_v15 = vrot.slane %v5363_v41, 3 }
 0x1b1   : > { %2734 = vmatprep.subr.mxu1 %v2545_v49  ;;  %v1902_v31 = vand.u32 2147483647, %v1774_v19  ;;  %v2158_v34 = vmul.f32 0.5, %v1774_v19  ;;  %v1904_v43 = vand.u32 2147483647, %v1776_v11  ;;  %v2160_v32 = vmul.f32 0.5, %v1776_v11 }
 0x1b2   : > { %v1899_v40 = vand.u32 2147483647, %v1771_v44  ;;  %v2155_v9 = vmul.f32 0.5, %v1771_v44  ;;  %v1901_v29 = vand.u32 2147483647, %v1773_v25  ;;  %v2157_v48 = vmul.f32 0.5, %v1773_v25 }
 0x1b3   : > { %vm5376_vm7 = vcmp.lt.f32.partialorder %v1902_v31, 1.0  ;;  %v2286_v3 = vmul.f32 %v2158_v34, %v1774_v19  ;;  %v3136_v52 = vadd.f32 -0.5, %v1902_v31  ;;  %vm5380_vm8 = vcmp.lt.f32.partialorder %v1904_v43, 1.0 }
 0x1b4   : > { %v2288_v17 = vmul.f32 %v2160_v32, %v1776_v11  ;;  %v3138_v37 = vadd.f32 -0.5, %v1904_v43  ;;  %vm5385_vm9 = vcmp.lt.f32.partialorder %v1899_v40, 1.0  ;;  %v2283_v45 = vmul.f32 %v2155_v9, %v1771_v44 }
 0x1b5   : > { %v2542_v61 = vsel %vm5376_vm7, %v2286_v3, %v3136_v52  ;;  %v3133_v42 = vadd.f32 -0.5, %v1899_v40  ;;  %vm5398_vm10 = vcmp.lt.f32.partialorder %v1901_v29, 1.0  ;;  %v2285_v58 = vmul.f32 %v2157_v48, %v1773_v25  ;;  %v1001_v25 = vld [vmem:[%s3964_s21 + $0x240] sm:$0xff]  ;;  %v1126_v48 = vld [vmem:[%s3966_s27 + $0x228] sm:$0xff]  ;;  %v1003_v52 = vld [vmem:[%s3964_s21 + $0x250] sm:$0xff] }
 0x1b6   : > { %2664 = vmatpush2.msra.mxu0 %v2542_v61  ;;  %v2544_v4 = vsel %vm5380_vm8, %v2288_v17, %v3138_v37  ;;  %v3135_v62 = vadd.f32 -0.5, %v1901_v29  ;;  %v1770_v24 = vsub.f32 %v1005_v54, %v1471_v20  ;;  %v1475_v28 = vsel %vm1313_vm0, %v1466_v15, %v1474_v6 }
 0x1b7   : > { %2735 = vmatpush2.msra.mxu1 %v2544_v4  ;;  %v2539_v55 = vsel %vm5385_vm9, %v2283_v45, %v3133_v42  ;;  %v1772_v22 = vsub.f32 %v1007_v14, %v1475_v28  ;;  %v1456_v53 = vrot.slane %v5391_v46, 3  ;;  %v1460_v63 = vrot.slane %v5394_v38, 3  ;;  %v5448_v45 = vld [vmem:[%s3966_s27 + $0x220] sm:$0xff]  ;;  %v998_v42 = vld [vmem:[%s3964_s21 + $0x228] sm:$0xff] }
 0x1b8   : > { %2665 = vmatprep.subr.mxu0 %v2539_v55  ;;  %v2541_v39 = vsel %vm5398_vm10, %v2285_v58, %v3135_v62  ;;  %v1898_v56 = vand.u32 2147483647, %v1770_v24  ;;  %v2154_v27 = vmul.f32 0.5, %v1770_v24  ;;  %v1454_v6 = vrot.slane %v5403_v57, 3  ;;  %v5457_v58 = vld [vmem:[%s3966_s27 + $0x230] sm:$0xff]  ;;  %v994_v57 = vld [vmem:[%s3964_s21 + $0x208] sm:$0xff] }
 0x1b9   : > { %2736 = vmatprep.subr.mxu1 %v2541_v39  ;;  %v1900_v60 = vand.u32 2147483647, %v1772_v22  ;;  %v2156_v30 = vmul.f32 0.5, %v1772_v22  ;;  %v1465_v19 = vsel %vm1313_vm0, %v1456_v53, %v1464_v50  ;;  %v1469_v11 = vsel %vm1313_vm0, %v1460_v63, %v1468_v8  ;;  %v5516_v62 = vld [vmem:[%s3962_s12] ss:$4 sm:$0xf] }
 0x1ba   : > { %vm2026_vm11 = vcmp.lt.f32.partialorder %v1898_v56, 1.0  ;;  %v2282_v44 = vmul.f32 %v2154_v27, %v1770_v24  ;;  %v3132_v35 = vadd.f32 -0.5, %v1898_v56  ;;  %v1767_v49 = vsub.f32 %v1002_v33, %v1465_v19  ;;  %v1000_v27 = vld [vmem:[%s3964_s21 + $0x238] sm:$0xff] }
 0x1bb   : > { %vm2028_vm12 = vcmp.lt.f32.partialorder %v1900_v60, 1.0  ;;  %v2284_v20 = vmul.f32 %v2156_v30, %v1772_v22  ;;  %v3134_v31 = vadd.f32 -0.5, %v1900_v60  ;;  %v1769_v34 = vsub.f32 %v1004_v13, %v1469_v11  ;;  %v997_v13 = vld [vmem:[%s3964_s21 + $0x220] sm:$0xff]  ;;  %v999_v11 = vld [vmem:[%s3964_s21 + $0x230] sm:$0xff] }
 0x1bc   : > { %v2538_v43 = vsel %vm2026_vm11, %v2282_v44, %v3132_v35  ;;  %v1895_v50 = vand.u32 2147483647, %v1767_v49  ;;  %v2151_v32 = vmul.f32 0.5, %v1767_v49  ;;  %v1463_v21 = vsel %vm1313_vm0, %v1454_v6, %v1462_v51  ;;  %v996_v51 = vld [vmem:[%s3964_s21 + $0x218] sm:$0xff] }
 0x1bd   : > { %2666 = vmatpush2.msra.mxu0 %v2538_v43  ;;  %v2540_v8 = vsel %vm2028_vm12, %v2284_v20, %v3134_v31  ;;  %v1897_v40 = vand.u32 2147483647, %v1769_v34  ;;  %v2153_v9 = vmul.f32 0.5, %v1769_v34  ;;  %v1766_v29 = vsub.f32 %v1001_v25, %v1463_v21 }
 0x1be   : > { %2737 = vmatpush2.msra.mxu1 %v2540_v8  ;;  %vm5435_vm13 = vcmp.lt.f32.partialorder %v1895_v50, 1.0  ;;  %v2279_v59 = vmul.f32 %v2151_v32, %v1767_v49  ;;  %v3129_v3 = vadd.f32 -0.5, %v1895_v50  ;;  %v1458_v36 = vrot.slane %v1131_v47, 3 }
 0x1bf   : > { %vm5440_vm14 = vcmp.lt.f32.partialorder %v1897_v40, 1.0  ;;  %v2281_v54 = vmul.f32 %v2153_v9, %v1769_v34  ;;  %v3131_v17 = vadd.f32 -0.5, %v1897_v40  ;;  %v1894_v37 = vand.u32 2147483647, %v1766_v29 }
 0x1c0   : > { %v2535_v14 = vsel %vm5435_vm13, %v2279_v59, %v3129_v3  ;;  %v2150_v46 = vmul.f32 0.5, %v1766_v29  ;;  %v1467_v61 = vsel %vm1313_vm0, %v1458_v36, %v1466_v15  ;;  %v1448_v26 = vrot.slane %v1126_v48, 3 }
 0x1c1   : > { %2667 = vmatprep.subr.mxu0 %v2535_v14  ;;  %v2537_v4 = vsel %vm5440_vm14, %v2281_v54, %v3131_v17  ;;  %vm5461_vm15 = vcmp.lt.f32.partialorder %v1894_v37, 1.0  ;;  %v3128_v24 = vadd.f32 -0.5, %v1894_v37  ;;  %v1768_v28 = vsub.f32 %v1003_v52, %v1467_v61 }
 0x1c2   : > { %2738 = vmatprep.subr.mxu1 %v2537_v4  ;;  %v2278_v41 = vmul.f32 %v2150_v46, %v1766_v29  ;;  %v1457_v15 = vsel %vm1313_vm0, %v1448_v26, %v1456_v53  ;;  %v1452_v55 = vrot.slane %v5445_v0, 3  ;;  %v1446_v22 = vrot.slane %v5448_v45, 3  ;;  %v993_v45 = vld [vmem:[%s3964_s21 + $0x200] sm:$0xff]  ;;  %v995_v4 = vld [vmem:[%s3964_s21 + $0x210] sm:$0xff] }
 0x1c3   : > { %v1896_v33 = vand.u32 2147483647, %v1768_v28  ;;  %v2152_v39 = vmul.f32 0.5, %v1768_v28  ;;  %v1763_v56 = vsub.f32 %v998_v42, %v1457_v15  ;;  %v1450_v60 = vrot.slane %v5457_v58, 3 }
 0x1c4   : > { %v2534_v30 = vsel %vm5461_vm15, %v2278_v41, %v3128_v24  ;;  %v1461_v19 = vsel %vm1313_vm0, %v1452_v55, %v1460_v63  ;;  %v1455_v53 = vsel %vm1313_vm0, %v1446_v22, %v1454_v6  ;;  %v1449_v44 = vsel %vm1313_vm0, %v1440_v5, %v1448_v26  ;;  %v2591_v26 = vld [vmem:[%s5596_s3 + $0x8] sm:$0xff] }
 0x1c5   : > { %2668 = vmatpush2.msra.mxu0 %v2534_v30  ;;  %vm2024_vm1 = vcmp.lt.f32.partialorder %v1896_v33, 1.0  ;;  %v2280_v35 = vmul.f32 %v2152_v39, %v1768_v28  ;;  %v3130_v49 = vadd.f32 -0.5, %v1896_v33  ;;  %v1891_v25 = vand.u32 2147483647, %v1763_v56 }
 0x1c6   : > { %v2147_v20 = vmul.f32 0.5, %v1763_v56  ;;  %v1765_v31 = vsub.f32 %v1000_v27, %v1461_v19  ;;  %v1762_v34 = vsub.f32 %v997_v13, %v1455_v53  ;;  %v1459_v38 = vsel %vm1313_vm0, %v1450_v60, %v1458_v36 }
 0x1c7   : > { %v2536_v63 = vsel %vm2024_vm1, %v2280_v35, %v3130_v49  ;;  %vm5487_vm2 = vcmp.lt.f32.partialorder %v1891_v25, 1.0  ;;  %v3125_v2 = vadd.f32 -0.5, %v1891_v25  ;;  %v1764_v5 = vsub.f32 %v999_v11, %v1459_v38 }
 0x1c8   : > { %2739 = vmatpush2.msra.mxu1 %v2536_v63  ;;  %v2275_v47 = vmul.f32 %v2147_v20, %v1763_v56  ;;  %v1893_v43 = vand.u32 2147483647, %v1765_v31  ;;  %v2149_v50 = vmul.f32 0.5, %v1765_v31  ;;  %v1890_v32 = vand.u32 2147483647, %v1762_v34 }
 0x1c9   : > { %v2146_v21 = vmul.f32 0.5, %v1762_v34  ;;  %v1892_v8 = vand.u32 2147483647, %v1764_v5  ;;  %v2148_v40 = vmul.f32 0.5, %v1764_v5  ;;  %v1759_v9 = vsub.f32 %v994_v57, %v1449_v44  ;;  %v2590_v44 = vld [vmem:[%s5596_s3] sm:$0xff] }
 0x1ca   : > { %v2531_v29 = vsel %vm5487_vm2, %v2275_v47, %v3125_v2  ;;  %vm2021_vm3 = vcmp.lt.f32.partialorder %v1893_v43, 1.0  ;;  %v2277_v48 = vmul.f32 %v2149_v50, %v1765_v31  ;;  %v3127_v1 = vadd.f32 -0.5, %v1893_v43  ;;  %v3052_v20 = vld [vmem:[%s3962_s12 + $0x2] ss:$4 sm:$0xf] }
 0x1cb   : > { %2669 = vmatprep.subr.mxu0 %v2531_v29  ;;  %vm5493_vm4 = vcmp.lt.f32.partialorder %v1890_v32, 1.0  ;;  %v2274_v3 = vmul.f32 %v2146_v21, %v1762_v34  ;;  %v3124_v52 = vadd.f32 -0.5, %v1890_v32  ;;  %vm5497_vm5 = vcmp.lt.f32.partialorder %v1892_v8, 1.0  ;;  %v3053_v31 = vld [vmem:[%s3962_s12 + $0x3] ss:$4 sm:$0xf] }
 0x1cc   : > { %v2533_v54 = vsel %vm2021_vm3, %v2277_v48, %v3127_v1  ;;  %v2276_v17 = vmul.f32 %v2148_v40, %v1764_v5  ;;  %v3126_v37 = vadd.f32 -0.5, %v1892_v8  ;;  %v1887_v0 = vand.u32 2147483647, %v1759_v9  ;;  %v886_v50 = vld [vmem:[%s3966_s27] ss:$8 sm:$0xf] }
 0x1cd   : > { %2740 = vmatprep.subr.mxu1 %v2533_v54  ;;  %v2530_v14 = vsel %vm5493_vm4, %v2274_v3, %v3124_v52  ;;  %v2143_v46 = vmul.f32 0.5, %v1759_v9  ;;  %v1453_v61 = vsel %vm1313_vm0, %v1444_v10, %v1452_v55  ;;  %v1447_v42 = vsel %vm1313_vm0, %v1438_v16, %v1446_v22  ;;  %v3055_v3 = vld [vmem:[%s3966_s27 + $0x2] ss:$8 sm:$0xf] }
 0x1ce   : > { %2670 = vmatpush2.msra.mxu0 %v2530_v14  ;;  %v2532_v24 = vsel %vm5497_vm5, %v2276_v17, %v3126_v37  ;;  %vm5520_vm6 = vcmp.lt.f32.partialorder %v1887_v0, 1.0  ;;  %v3121_v7 = vadd.f32 -0.5, %v1887_v0  ;;  %v1761_v10 = vsub.f32 %v996_v51, %v1453_v61  ;;  %v3054_v0 = vld [vmem:[%s3966_s27 + $0x1] ss:$8 sm:$0xf] }
 0x1cf   : > { %2741 = vmatpush2.msra.mxu1 %v2532_v24  ;;  %v2271_v16 = vmul.f32 %v2143_v46, %v1759_v9  ;;  %v1758_v41 = vsub.f32 %v993_v45, %v1447_v42  ;;  %vm2592_vm7 = vcmask 1014784   ;;  %v1451_v15 = vsel %vm1313_vm0, %v1442_v23, %v1450_v60 }
 0x1d0   : > { %v1889_v55 = vand.u32 2147483647, %v1761_v10  ;;  %v2145_v22 = vmul.f32 0.5, %v1761_v10  ;;  %3186 = vmatprep.mubr.msk.f32.mxu0 %vm2592_vm7, %v2591_v26  ;;  %v1760_v33 = vsub.f32 %v995_v4, %v1451_v15  ;;  %3189 = vmatprep.mubr.msk.f32.mxu1 %vm2592_vm7, %v2591_v26  ;;  %v892_v13 = vsub.f32 %v5516_v62, %v3051_v12 }
 0x1d1   : > { %v2527_v39 = vsel %vm5520_vm6, %v2271_v16, %v3121_v7  ;;  %v1886_v56 = vand.u32 2147483647, %v1758_v41  ;;  %v2142_v27 = vmul.f32 0.5, %v1758_v41  ;;  %v907_v63 = vsub.f32 %v3052_v20, %v3053_v31 }
 0x1d2   : > { %2671 = vmatprep.subr.mxu0 %v2527_v39  ;;  %vm2017_vm8 = vcmp.lt.f32.partialorder %v1889_v55, 1.0  ;;  %v2273_v58 = vmul.f32 %v2145_v22, %v1761_v10  ;;  %v3123_v18 = vadd.f32 -0.5, %v1889_v55  ;;  %v1888_v30 = vand.u32 2147483647, %v1760_v33 }
 0x1d3   : > { %vm2014_vm0 = vcmp.lt.f32.partialorder %v1886_v56, 1.0  ;;  %v2270_v23 = vmul.f32 %v2142_v27, %v1758_v41  ;;  %v3120_v60 = vadd.f32 -0.5, %v1886_v56  ;;  %v2144_v19 = vmul.f32 0.5, %v1760_v33  ;;  %v2776_v41 = vld [vmem:[#allocation2] ss:$8 sm:$0xf] }
 0x1d4   : > { %v2529_v53 = vsel %vm2017_vm8, %v2273_v58, %v3123_v18  ;;  %vm2016_vm9 = vcmp.lt.f32.partialorder %v1888_v30, 1.0  ;;  %v3122_v11 = vadd.f32 -0.5, %v1888_v30  ;;  %v893_v35 = vand.u32 2147483647, %v892_v13 }
 0x1d5   : > { %2742 = vmatprep.subr.mxu1 %v2529_v53  ;;  %v2526_v49 = vsel %vm2014_vm0, %v2270_v23, %v3120_v60  ;;  %v2272_v25 = vmul.f32 %v2144_v19, %v1760_v33  ;;  %v908_v6 = vand.u32 2147483647, %v907_v63  ;;  %v901_v32 = vsub.f32 1.0, %v886_v50  ;;  %v2782_v55 = vld [vmem:[#allocation2 + $0x1] ss:$8 sm:$0xf] }
 0x1d6   : > { %2672 = vmatpush2.msra.mxu0 %v2526_v49  ;;  %v894_v34 = vsub.f32 0.0, %v893_v35  ;;  %v903_v8 = vmul.f32 %v3051_v12, %v886_v50  ;;  %v891_v9 = vmax.f32 %v5516_v62, %v3051_v12  ;;  %v924_v51 = vlaneseq  ;;  %v2787_v56 = vld [vmem:[#allocation2 + $0x2] ss:$8 sm:$0xf] }
 0x1d7   : > { %v2528_v38 = vsel %vm2016_vm9, %v2272_v25, %v3122_v11  ;;  %2674 = vmatmul.mubr.f32.vlgmr.msra.gmra.mxu0 %v2590_v44  ;;  %v909_v2 = vsub.f32 0.0, %v908_v6  ;;  %v902_v21 = vmul.f32 %v901_v32, %v5516_v62  ;;  %v922_v36 = vmul.f32 %v3055_v3, %v901_v32  ;;  %v2792_v27 = vld [vmem:[#allocation2 + $0x3] ss:$8 sm:$0xf] }
 0x1d8   : > { %2743 = vmatpush2.msra.mxu1 %v2528_v38  ;;  %v895_v57 = vmul.f32 1.442695, %v894_v34  ;;  %vm5542_vm10 = vcmp.lt.s32.totalorder %v924_v51, 512  ;;  %v916_v45 = vsub.f32 1.0, %v3054_v0  ;;  %v906_v46 = vmax.f32 %v3052_v20, %v3053_v31 }
 0x1d9   : > { %2745 = vmatmul.mubr.f32.vlgmr.msra.gmra.mxu1 %v2590_v44  ;;  %v910_v5 = vmul.f32 1.442695, %v909_v2  ;;  %v904_v1 = vadd.f32 %v903_v8, %v902_v21  ;;  %v918_v26 = vmul.f32 %v3054_v0, %v3053_v31  ;;  %v921_v28 = vmul.f32 %v3055_v3, %v886_v50  ;;  %v2798_v30 = vld [vmem:[#allocation2 + $0x4] ss:$8 sm:$0xf] }
 0x1da   : > { %3251 = vpow2.f32 %v895_v57  ;;  %v917_v42 = vmul.f32 %v3052_v20, %v916_v45  ;;  %v2753_v7 = vshrl.u32 %v924_v51, 7  ;;  %v2788_v58 = vadd.f32 %v2787_v56, %v922_v36  ;;  %v2853_v60 = vld [vmem:[#allocation2 + $0x7] ss:$8 sm:$0xf] }
 0x1db   : > { %3253 = vpow2.f32 %v910_v5  ;;  %v2783_v39 = vadd.f32 %v2782_v55, %v921_v28  ;;  %v2799_v23 = vsub.f32 1.0, %v921_v28  ;;  %v3316_v20 = vmov 1966171168  }
 0x1dc   : > { %v919_v62 = vadd.f32 %v918_v26, %v917_v42  ;;  %v2754_v10 = vsub.s32 0, %v2753_v7  ;;  %v2762_v12 = vsub.s32 2, %v2753_v7  ;;  %v2758_v19 = vsub.s32 1, %v2753_v7  ;;  %2789 = vst.msk [vmem:[#allocation2 + $0x2] ss:$8 sm:$0xf] %vm5542_vm10, %v2788_v58 }
 0x1dd   : > { %2784 = vst.msk [vmem:[#allocation2 + $0x1] ss:$8 sm:$0xf] %vm5542_vm10, %v2783_v39  ;;  %v2766_v44 = vsub.s32 3, %v2753_v7  ;;  %v2813_v31 = vunpack.c.l.s4 %v3316_v20 }
 0x1de   : > { %v2755_v16 = vrot.slane %v921_v28, %v2754_v10  ;;  %v2763_v33 = vrot.slane %v921_v28, %v2762_v12  ;;  %v2759_v35 = vrot.slane %v921_v28, %v2758_v19 }
 0x1df   : > { %v2767_v25 = vrot.slane %v921_v28, %v2766_v44  ;;  %v2814_v34 = vunpack.c.0.s8 %v2813_v31 }
 0x1e1   : > { %v2817_v5 = vsub.s32 %v2814_v34, %v2753_v7 }
 0x1e7   : > { %v3252_v47 = vpop.eup %3251 }
 0x1e8   : > { %v897_v43 = vadd.f32 1.0, %v3252_v47  ;;  %v3254_v40 = vpop.eup %3253 }
 0x1e9   : > { %v912_v59 = vadd.f32 1.0, %v3254_v40 }
 0x1ea   : > { %3255 = vlog2.f32 %v897_v43 }
 0x1eb   : > { %3257 = vlog2.f32 %v912_v59 }
 0x1f7   : > { %v3256_v29 = vpop.eup %3255 }
 0x1f8   : > { %v899_v48 = vmul.f32 0.6931472, %v3256_v29  ;;  %v3258_v14 = vpop.eup %3257 }
 0x1f9   : > { %v914_v61 = vmul.f32 0.6931472, %v3258_v14 }
 0x1fa   : > { %v900_v52 = vadd.f32 %v899_v48, %v891_v9  ;;  %v2805_v48 = vld [vmem:[#allocation2 + $0x5] ss:$8 sm:$0xf] }
 0x1fb   : > { %v915_v4 = vadd.f32 %v914_v61, %v906_v46 }
 0x1fc   : > { %v905_v54 = vsub.f32 %v900_v52, %v904_v1  ;;  %v2839_v1 = vld [vmem:[#allocation2 + $0x6] ss:$8 sm:$0xf] }
 0x1fd   : > { %v920_v24 = vsub.f32 %v915_v4, %v919_v62 }
 0x1fe   : > { %v923_v37 = vmul.f32 %v922_v36, %v905_v54  ;;  %v2777_v15 = vmul.f32 %v921_v28, %v905_v54 }
 0x1ff   : > { %v2793_v22 = vmul.f32 %v921_v28, %v920_v24  ;;  %v2800_v53 = vmul.f32 %v2799_v23, %v920_v24 }
 0x200   : > { %928 = vst.msk [vmem:[%s865_s18] sm:$0xf] %vm5542_vm10, %v923_v37  ;;  %v2778_v13 = vadd.f32 %v2777_v15, %v2776_v41  ;;  %v2854_v11 = vadd.f32 %v2853_v60, %v923_v37 }
 0x201   : > { %v2794_v18 = vadd.f32 %v2793_v22, %v2792_v27  ;;  %v2801_v49 = vadd.f32 %v2800_v53, %v2798_v30 }
 0x202   : > { %2779 = vst.msk [vmem:[#allocation2] ss:$8 sm:$0xf] %vm5542_vm10, %v2778_v13  ;;  %2855 = vst.msk [vmem:[#allocation2 + $0x7] ss:$8 sm:$0xf] %vm5542_vm10, %v2854_v11 }
 0x203   : > { %2795 = vst.msk [vmem:[#allocation2 + $0x3] ss:$8 sm:$0xf] %vm5542_vm10, %v2794_v18  ;;  %2802 = vst.msk [vmem:[#allocation2 + $0x4] ss:$8 sm:$0xf] %vm5542_vm10, %v2801_v49 }
 0x297   : > { %v2675_v38 = vpop.f32.mrf.mxu0 }
 0x298   : > { %v2772_v6 = vmul.f32 %v2755_v16, %v2675_v38 }
 0x299   : > { %v2746_v57 = vpop.f32.mrf.mxu1  ;;  %v2677_v63 = vpop.f32.mrf.mxu0 }
 0x29a   : > { %v2773_v2 = vmul.f32 %v2759_v35, %v2677_v63  ;;  %v2774_v43 = vmul.f32 %v2763_v33, %v2746_v57 }
 0x29b   : > { %v2748_v47 = vpop.f32.mrf.mxu1 }
 0x29c   : > { %v2810_v50 = vcombine.low %v2772_v6, %v2773_v2  ;;  %v2775_v32 = vmul.f32 %v2767_v25, %v2748_v47 }
 0x29e   : > { %v2818_v21 = vrot.slane %v2810_v50, %v2817_v5  ;;  %v2811_v8 = vcombine.low %v2774_v43, %v2775_v32 }
 0x2a0   : > { %v2825_v40 = vrot.slane %v2811_v8, %v2817_v5 }
 0x2a2   : > { %v2826_v9 = vcombine.low %v2818_v21, %v2825_v40  ;;  %v2840_v29 = vcombine.high %v2818_v21, %v2825_v40 }
 0x2a4   : > { %v2833_v59 = vrot.slane %v2826_v9, %v2817_v5  ;;  %v2847_v3 = vrot.slane %v2840_v29, %v2817_v5  ;;  %2860 = sbr.rel (%p3190_p13) target bundleno = 833 (0x341), region = 90 }
 0x2a6   : > { %v2835_v52 = vadd.f32 %v2833_v59, %v2805_v48  ;;  %v2849_v36 = vadd.f32 %v2847_v3, %v2839_v1 }
 0x2a8   : > { %2836 = vst.msk [vmem:[#allocation2 + $0x5] ss:$8 sm:$0xf] %vm5542_vm10, %v2835_v52  ;;  %2850 = vst.msk [vmem:[#allocation2 + $0x6] ss:$8 sm:$0xf] %vm5542_vm10, %v2849_v36 }
 0x2a9   : > { %vm2870_vm11 = vcmask 7168  }
 0x2af   : > { %v2861_v51 = vld [vmem:[#allocation2] sm:$0xff]  ;;  %v2862_v54 = vld [vmem:[#allocation2 + $0x8] sm:$0xff]  ;;  %v2863_v37 = vld [vmem:[#allocation2 + $0x10] sm:$0xff] }
 0x2b0   : > { %v2865_v0 = vadd.f32 %v2862_v54, %v2861_v51  ;;  %v2864_v45 = vld [vmem:[#allocation2 + $0x18] sm:$0xff] }
 0x2b2   : > { %v2866_v14 = vadd.f32 %v2865_v0, %v2863_v37 }
 0x2b4   : > { %v2867_v46 = vadd.f32 %v2866_v14, %v2864_v45 }
 0x2b6   : > { %2868 = vadd.xlane.f32.xlu0 %v2867_v46 }
 0x33f   : > { %v2869_v61 = vpop.xlane.xlu0 %2868 }
 0x340   : > { %2871 = vst.msk [vmem:[%s3950_s29] sm:$0xff] %vm2870_vm11, %v2869_v61 }
 0x341 PF: > { %s16_s24 = sadd.s32 1, %s3313_s24   ;;  %s5780_s18 = smov %s3293_s19 }
 0x342   : > { %p13_p0 = scmp.ge.s32.totalorder %s16_s24, 6   ;;  %s5781_s19 = smov %s3402_s7 }
 0x343   : > { %s5782_s20 = smov %s3305_s22  ;;  %s5783_s21 = smov %s3309_s23 }
 0x344   : > { %s5784_s22 = smov %s5787_s25  ;;  %s5785_s23 = smov %s5791_s26 }
 0x345   :  { %15 = sbr.rel (!%p13_p0) target bundleno = 4 (0x4), region = 160 }

</bundles_post_ra>
